<compile_context>
chip_gen: v7x
topology: tpu7x:2x2x1
jax: 0.10.0
libtpu: 0.0.40
codegen_flags: <defaults>
</compile_context>

<pallas_src>
import math
import functools

import jax
import jax.numpy as jnp
from jax.experimental import pallas as pl
from jax.experimental.pallas import tpu as pltpu


# ----------------------------------------------------------------------------
# In-kernel helpers (all f32 statistics)
# ----------------------------------------------------------------------------
def _layernorm(v, g, b, eps):
    mu = jnp.mean(v, axis=-1, keepdims=True)
    var = jnp.mean(jnp.square(v - mu), axis=-1, keepdims=True)
    return (v - mu) * jax.lax.rsqrt(var + eps) * g + b


_SQRT1_2 = 0.7071067811865476


def _erf(x):
    # Abramowitz & Stegun 7.1.26 rational approximation, |err| < 1.5e-7.
    a1, a2, a3, a4, a5 = (0.254829592, -0.284496736, 1.421413741,
                          -1.453152027, 1.061405429)
    p = 0.3275911
    ax = jnp.abs(x)
    t = 1.0 / (1.0 + p * ax)
    poly = ((((a5 * t + a4) * t + a3) * t + a2) * t + a1) * t
    y = 1.0 - poly * jnp.exp(-ax * ax)
    return jnp.where(x >= 0, y, -y)


def _gelu_erf(x):
    # Matches PyTorch nn.GELU default (exact erf form) to ~1e-7 abs error.
    return 0.5 * x * (1.0 + _erf(x * _SQRT1_2))


# ----------------------------------------------------------------------------
# Fused all-layers kernel.  Grid = (batch_blocks, num_layers).
# ----------------------------------------------------------------------------
_STACK_ORDER = ("ln1_g", "ln1_b",
                "wq", "bq", "wk", "bk", "wv", "bv", "wo", "bo",
                "ln2_g", "ln2_b",
                "w1", "b1", "w2", "b2")
_MATMUL_WEIGHTS = frozenset(("wq", "wk", "wv", "wo", "w1", "w2"))


def _fused_layers_kernel(x_ref, y_ref, ybias_ref,
                         ln1_g_ref, ln1_b_ref,
                         wq_ref, bq_ref, wk_ref, bk_ref, wv_ref, bv_ref,
                         wo_ref, bo_ref,
                         ln2_g_ref, ln2_b_ref,
                         w1_ref, b1_ref, w2_ref, b2_ref,
                         out_ref, hid_ref,
                         *, num_heads, eps):
    layer = pl.program_id(1)
    last_layer = pl.num_programs(1) - 1

    # Initialize the resident hidden state from the (already pos-embedded) input.
    @pl.when(layer == 0)
    def _():
        hid_ref[...] = x_ref[...].astype(jnp.float32)

    Bb, Tx, D = hid_ref.shape
    Ty = y_ref.shape[1]
    H = num_heads
    dh = D // H

    x = hid_ref[...].reshape(Bb * Tx, D)                        # (Bb*Tx, D) f32
    y = y_ref[...].astype(jnp.float32).reshape(Bb * Ty, D)      # (Bb*Ty, D) f32
    bias = ybias_ref[...].astype(jnp.float32)                   # (Bb, 1, Ty)

    # Pre-LN (ln_1 shared between the query and key/value streams).
    g1, be1 = ln1_g_ref[0], ln1_b_ref[0]                        # (1, D)
    xn = _layernorm(x, g1, be1, eps).astype(jnp.bfloat16)
    yn = _layernorm(y, g1, be1, eps).astype(jnp.bfloat16)

    # QKV projections: full-width bf16 MXU matmuls, f32 accumulation.
    q = jnp.dot(xn, wq_ref[0], preferred_element_type=jnp.float32) + bq_ref[0]
    k = jnp.dot(yn, wk_ref[0], preferred_element_type=jnp.float32) + bk_ref[0]
    v = jnp.dot(yn, wv_ref[0], preferred_element_type=jnp.float32) + bv_ref[0]

    # Scale Q once (O(T*D)) instead of scaling every (H, Tx, Ty) score tile.
    q = q * (1.0 / math.sqrt(dh))

    # Head-selection mask: head h owns lanes [h*dh, (h+1)*dh).
    lane = jax.lax.broadcasted_iota(jnp.int32, (H, D), 1)
    hidx = jax.lax.broadcasted_iota(jnp.int32, (H, D), 0)
    lo = hidx * dh
    head_mask = ((lane >= lo) & (lane < lo + dh)).astype(jnp.float32)   # (H, D)

    q3 = q.reshape(Bb, Tx, D)
    k3 = k.reshape(Bb, Ty, D)
    v3 = v.reshape(Bb, Ty, D)

    attn = []
    for bi in range(Bb):                                        # static, 1-2 iters
        qb = q3[bi]                                             # (Tx, D)
        kb = k3[bi].astype(jnp.bfloat16)                        # (Ty, D)
        vb = v3[bi].astype(jnp.bfloat16)                        # (Ty, D)
        # All heads fused: row (h, q) of q_exp has non-head-h lanes zeroed, so
        # q_exp @ kb^T contracts the full K=D width yet yields per-head scores.
        q_exp = (qb[None, :, :] * head_mask[:, None, :]).reshape(H * Tx, D)
        s = jax.lax.dot_general(q_exp.astype(jnp.bfloat16), kb,
                                (((1,), (1,)), ((), ())),
                                preferred_element_type=jnp.float32)   # (H*Tx, Ty)
        s = s + bias[bi]                                        # key-mask bias
        s = s - jnp.max(s, axis=-1, keepdims=True)
        p = jnp.exp(s)
        p = p * pl.reciprocal(jnp.sum(p, axis=-1, keepdims=True), approx=True)
        av = jnp.dot(p.astype(jnp.bfloat16), vb,
                     preferred_element_type=jnp.float32)        # (H*Tx, D)
        # Keep head h's lane block from row-block h, fold heads back into D.
        attn.append(jnp.sum(av.reshape(H, Tx, D) * head_mask[:, None, :], axis=0))
    a = attn[0] if Bb == 1 else jnp.concatenate(attn, axis=0)   # (Bb*Tx, D)

    a = jnp.dot(a.astype(jnp.bfloat16), wo_ref[0],
                preferred_element_type=jnp.float32) + bo_ref[0]
    h1 = x + a                                                  # residual 1

    hn = _layernorm(h1, ln2_g_ref[0], ln2_b_ref[0], eps).astype(jnp.bfloat16)
    m = jnp.dot(hn, w1_ref[0], preferred_element_type=jnp.float32) + b1_ref[0]
    m = _gelu_erf(m)
    m = jnp.dot(m.astype(jnp.bfloat16), w2_ref[0],
                preferred_element_type=jnp.float32) + b2_ref[0]

    h2 = h1 + m                                                 # residual 2
    hid_ref[...] = h2.reshape(Bb, Tx, D)

    @pl.when(layer == last_layer)
    def _():
        out_ref[...] = h2.reshape(Bb, Tx, D).astype(out_ref.dtype)


# ----------------------------------------------------------------------------
# Pallas wrapper: one call for all layers.
# ----------------------------------------------------------------------------
def _stack_layer_params(layers):
    """Stack per-layer params to (L, ...); biases/LN -> (L, 1, D); weights -> bf16."""
    stacked = {}
    for name in _STACK_ORDER:
        a = jnp.stack([lp[name] for lp in layers], axis=0)
        if a.ndim == 2:                        # (L, D) -> (L, 1, D)
            a = a[:, None, :]
        if name in _MATMUL_WEIGHTS:
            a = a.astype(jnp.bfloat16)         # half the weight DMA bytes
        stacked[name] = a
    return stacked


def fused_transformer(seq_x, seq_y, ybias, stacked, *, num_heads, eps):
    B, Tx, D = seq_x.shape
    Ty = seq_y.shape[1]
    L = stacked["wq"].shape[0]
    assert D % num_heads == 0

    # >=2 parallel grid steps when possible so both v7x TensorCores get work;
    # otherwise process the whole batch in one step.
    nbb = 2 if (B >= 2 and B % 2 == 0) else 1
    bblk = B // nbb

    x_spec = pl.BlockSpec((bblk, Tx, D), lambda b, l: (b, 0, 0))
    y_spec = pl.BlockSpec((bblk, Ty, D), lambda b, l: (b, 0, 0))
    m_spec = pl.BlockSpec((bblk, 1, Ty), lambda b, l: (b, 0, 0))

    w_vals, w_specs = [], []
    for name in _STACK_ORDER:
        arr = stacked[name]
        w_vals.append(arr)
        w_specs.append(pl.BlockSpec((1,) + arr.shape[1:], lambda b, l: (l, 0, 0)))

    grid_spec = pltpu.PrefetchScalarGridSpec(
        num_scalar_prefetch=0,
        grid=(nbb, L),
        in_specs=[x_spec, y_spec, m_spec] + w_specs,
        out_specs=pl.BlockSpec((bblk, Tx, D), lambda b, l: (b, 0, 0)),
        scratch_shapes=[pltpu.VMEM((bblk, Tx, D), jnp.float32)],
    )
    return pl.pallas_call(
        functools.partial(_fused_layers_kernel, num_heads=num_heads, eps=eps),
        out_shape=jax.ShapeDtypeStruct((B, Tx, D), seq_x.dtype),
        grid_spec=grid_spec,
        compiler_params=pltpu.CompilerParams(
            dimension_semantics=("parallel", "arbitrary"),
            vmem_limit_bytes=64 * 1024 * 1024),
    )(seq_x, seq_y, ybias, *w_vals)


# ----------------------------------------------------------------------------
# Plain-JAX glue: fairseq-style sinusoidal positional embedding (padding_idx=0)
# ----------------------------------------------------------------------------
def sinusoidal_positional_embedding(first_channel, D):
    # first_channel: (B, T) floats == seq[:, :, 0]; value 0.0 == padding token.
    pad_mask = (first_channel != 0.0)
    positions = (jnp.cumsum(pad_mask.astype(jnp.int32), axis=1)
                 * pad_mask.astype(jnp.int32))
    half = D // 2
    freq = jnp.exp(jnp.arange(half, dtype=jnp.float32)
                   * -(math.log(10000.0) / (half - 1)))
    ang = positions[..., None].astype(jnp.float32) * freq            # (B, T, half)
    emb = jnp.concatenate([jnp.sin(ang), jnp.cos(ang)], axis=-1)      # (B, T, 2*half)
    if D % 2 == 1:
        emb = jnp.pad(emb, ((0, 0), (0, 0), (0, 1)))
    emb = jnp.where(pad_mask[..., None], emb, 0.0)                    # zero at padding
    return emb


# ----------------------------------------------------------------------------
# Full forward pass
# ----------------------------------------------------------------------------
def multimodal_transformer(seq_x, seq_y, params, *, num_heads=8,
                           eps=1e-5, mask=None, mask_y=None):
    B, Tx, D = seq_x.shape
    Ty = seq_y.shape[1]
    embed_scale = math.sqrt(D)

    seq_x = embed_scale * seq_x
    seq_x = seq_x + sinusoidal_positional_embedding(seq_x[:, :, 0], D)
    seq_y = embed_scale * seq_y
    seq_y = seq_y + sinusoidal_positional_embedding(seq_y[:, :, 0], D)
    # F.dropout(p=embed_dropout) -> identity in eval mode.

    if mask_y is None:
        ybias = jnp.zeros((B, 1, Ty), jnp.float32)
    else:
        ybias = jnp.where(mask_y.reshape(B, 1, Ty) > 0, 0.0, -1e9).astype(jnp.float32)
    # TODO(synk): query-side `mask` for seq_x accepted but not applied (reference
    #             MultiModalAttentionBlock definition is not in the snippet).

    stacked = _stack_layer_params(params["layers"])
    return fused_transformer(seq_x, seq_y, ybias, stacked,
                             num_heads=num_heads, eps=eps)


# ----------------------------------------------------------------------------
# Deterministic parameter init (synthetic; GPT-2-style N(0, 0.02) weights)
# ----------------------------------------------------------------------------
def init_params(key, num_layers, D):
    layers = []
    for i in range(num_layers):
        ks = jax.random.split(jax.random.fold_in(key, i), 6)
        std = 0.02
        layers.append(dict(
            ln1_g=jnp.ones((D,), jnp.float32), ln1_b=jnp.zeros((D,), jnp.float32),
            wq=std * jax.random.normal(ks[0], (D, D), jnp.float32), bq=jnp.zeros((D,), jnp.float32),
            wk=std * jax.random.normal(ks[1], (D, D), jnp.float32), bk=jnp.zeros((D,), jnp.float32),
            wv=std * jax.random.normal(ks[2], (D, D), jnp.float32), bv=jnp.zeros((D,), jnp.float32),
            wo=std * jax.random.normal(ks[3], (D, D), jnp.float32), bo=jnp.zeros((D,), jnp.float32),
            ln2_g=jnp.ones((D,), jnp.float32), ln2_b=jnp.zeros((D,), jnp.float32),
            w1=std * jax.random.normal(ks[4], (D, 4 * D), jnp.float32), b1=jnp.zeros((4 * D,), jnp.float32),
            w2=std * jax.random.normal(ks[5], (4 * D, D), jnp.float32), b2=jnp.zeros((D,), jnp.float32),
        ))
    return {"layers": layers}


if __name__ == "__main__":
    # Small but lane-dense shapes: D = 128 keeps the embedding (lane) axis a full
    # 128-lane tile; H = 8 heads, 4 layers, short cross-modal sequences.
    B, Tx, Ty, D, H, L = 2, 8, 8, 128, 8, 4
    key = jax.random.PRNGKey(0)
    kx, ky, kp = jax.random.split(key, 3)
    seq_x = jax.random.normal(kx, (B, Tx, D), jnp.float32)
    seq_y = jax.random.normal(ky, (B, Ty, D), jnp.float32)
    params = init_params(kp, L, D)

    out = multimodal_transformer(seq_x, seq_y, params, num_heads=H)
    jax.block_until_ready(out)
    assert out.shape == (B, Tx, D) and out.dtype == jnp.float32
    print("KERNEL_OK")
</pallas_src>

<mosaic_0001>
module attributes {stable_mosaic.version = 11 : i64} {
  func.func @_fused_layers_kernel(%arg0: i32, %arg1: i32, %arg2: memref<1x8x128xf32, #tpu.memory_space<vmem>>, %arg3: memref<1x8x128xf32, #tpu.memory_space<vmem>>, %arg4: memref<1x1x8xf32, #tpu.memory_space<vmem>>, %arg5: memref<1x1x128xf32, #tpu.memory_space<vmem>>, %arg6: memref<1x1x128xf32, #tpu.memory_space<vmem>>, %arg7: memref<1x128x128xbf16, #tpu.memory_space<vmem>>, %arg8: memref<1x1x128xf32, #tpu.memory_space<vmem>>, %arg9: memref<1x128x128xbf16, #tpu.memory_space<vmem>>, %arg10: memref<1x1x128xf32, #tpu.memory_space<vmem>>, %arg11: memref<1x128x128xbf16, #tpu.memory_space<vmem>>, %arg12: memref<1x1x128xf32, #tpu.memory_space<vmem>>, %arg13: memref<1x128x128xbf16, #tpu.memory_space<vmem>>, %arg14: memref<1x1x128xf32, #tpu.memory_space<vmem>>, %arg15: memref<1x1x128xf32, #tpu.memory_space<vmem>>, %arg16: memref<1x1x128xf32, #tpu.memory_space<vmem>>, %arg17: memref<1x128x512xbf16, #tpu.memory_space<vmem>>, %arg18: memref<1x1x512xf32, #tpu.memory_space<vmem>>, %arg19: memref<1x512x128xbf16, #tpu.memory_space<vmem>>, %arg20: memref<1x1x128xf32, #tpu.memory_space<vmem>>, %arg21: memref<1x8x128xf32, #tpu.memory_space<vmem>>, %arg22: memref<1x8x128xf32, #tpu.memory_space<vmem>>) attributes {dimension_semantics = [#tpu.dimension_semantics<parallel>, #tpu.dimension_semantics<arbitrary>], iteration_bounds = array<i64: 2, 4>, scalar_prefetch = 0 : i64, scratch_operands = 1 : i64, tpu.core_type = #tpu.core_type<tc>, window_params = [{transform_indices = @transform_0, window_bounds = array<i64: 1, 8, 128>}, {transform_indices = @transform_1, window_bounds = array<i64: 1, 8, 128>}, {transform_indices = @transform_2, window_bounds = array<i64: 1, 1, 8>}, {transform_indices = @transform_3, window_bounds = array<i64: 1, 1, 128>}, {transform_indices = @transform_4, window_bounds = array<i64: 1, 1, 128>}, {transform_indices = @transform_5, window_bounds = array<i64: 1, 128, 128>}, {transform_indices = @transform_6, window_bounds = array<i64: 1, 1, 128>}, {transform_indices = @transform_7, window_bounds = array<i64: 1, 128, 128>}, {transform_indices = @transform_8, window_bounds = array<i64: 1, 1, 128>}, {transform_indices = @transform_9, window_bounds = array<i64: 1, 128, 128>}, {transform_indices = @transform_10, window_bounds = array<i64: 1, 1, 128>}, {transform_indices = @transform_11, window_bounds = array<i64: 1, 128, 128>}, {transform_indices = @transform_12, window_bounds = array<i64: 1, 1, 128>}, {transform_indices = @transform_13, window_bounds = array<i64: 1, 1, 128>}, {transform_indices = @transform_14, window_bounds = array<i64: 1, 1, 128>}, {transform_indices = @transform_15, window_bounds = array<i64: 1, 128, 512>}, {transform_indices = @transform_16, window_bounds = array<i64: 1, 1, 512>}, {transform_indices = @transform_17, window_bounds = array<i64: 1, 512, 128>}, {transform_indices = @transform_18, window_bounds = array<i64: 1, 1, 128>}, {transform_indices = @transform_19, window_bounds = array<i64: 1, 8, 128>}]} {
    %c0_i32 = arith.constant 0 : i32
    %0 = arith.cmpi eq, %arg1, %c0_i32 : i32
    %1 = arith.extui %0 : i1 to i32
    %c0_i32_0 = arith.constant 0 : i32
    %2 = arith.cmpi ne, %1, %c0_i32_0 : i32
    scf.if %2 {
      %c0_103 = arith.constant 0 : index
      %c0_104 = arith.constant 0 : index
      %c0_105 = arith.constant 0 : index
      %225 = vector.load %arg2[%c0_103, %c0_104, %c0_105] : memref<1x8x128xf32, #tpu.memory_space<vmem>>, vector<1x8x128xf32>
      %c0_106 = arith.constant 0 : index
      %c0_107 = arith.constant 0 : index
      %c0_108 = arith.constant 0 : index
      %226 = vector.load %arg22[%c0_106, %c0_107, %c0_108] : memref<1x8x128xf32, #tpu.memory_space<vmem>>, vector<1x8x128xf32>
      tpu.vector_store %arg22[%c0_106, %c0_107, %c0_108], %225 {strides = array<i32>} : memref<1x8x128xf32, #tpu.memory_space<vmem>>, vector<1x8x128xf32>,
    } else {
    }
    %c0 = arith.constant 0 : index
    %c0_1 = arith.constant 0 : index
    %c0_2 = arith.constant 0 : index
    %3 = vector.load %arg22[%c0, %c0_1, %c0_2] : memref<1x8x128xf32, #tpu.memory_space<vmem>>, vector<1x8x128xf32>
    %4 = vector.shape_cast %3 : vector<1x8x128xf32> to vector<8x128xf32>
    %c0_3 = arith.constant 0 : index
    %c0_4 = arith.constant 0 : index
    %c0_5 = arith.constant 0 : index
    %5 = vector.load %arg3[%c0_3, %c0_4, %c0_5] : memref<1x8x128xf32, #tpu.memory_space<vmem>>, vector<1x8x128xf32>
    %6 = vector.shape_cast %5 : vector<1x8x128xf32> to vector<8x128xf32>
    %c0_6 = arith.constant 0 : index
    %c0_7 = arith.constant 0 : index
    %c0_8 = arith.constant 0 : index
    %7 = vector.load %arg4[%c0_6, %c0_7, %c0_8] : memref<1x1x8xf32, #tpu.memory_space<vmem>>, vector<1x1x8xf32>
    %c0_9 = arith.constant 0 : index
    %c0_10 = arith.constant 0 : index
    %c0_11 = arith.constant 0 : index
    %8 = vector.load %arg5[%c0_9, %c0_10, %c0_11] : memref<1x1x128xf32, #tpu.memory_space<vmem>>, vector<1x1x128xf32>
    %9 = vector.shape_cast %8 : vector<1x1x128xf32> to vector<1x128xf32>
    %c0_12 = arith.constant 0 : index
    %c0_13 = arith.constant 0 : index
    %c0_14 = arith.constant 0 : index
    %10 = vector.load %arg6[%c0_12, %c0_13, %c0_14] : memref<1x1x128xf32, #tpu.memory_space<vmem>>, vector<1x1x128xf32>
    %11 = vector.shape_cast %10 : vector<1x1x128xf32> to vector<1x128xf32>
    %cst = arith.constant dense<0.000000e+00> : vector<8xf32>
    %12 = vector.multi_reduction <add>, %4, %cst [1] : vector<8x128xf32> to vector<8xf32>
    %13 = vector.shape_cast %12 : vector<8xf32> to vector<8x1xf32>
    %cst_15 = arith.constant 1.280000e+02 : f32
    %14 = vector.broadcast %cst_15 : f32 to vector<8x1xf32>
    %15 = arith.divf %13, %14 : vector<8x1xf32>
    %16 = vector.broadcast %15 : vector<8x1xf32> to vector<8x128xf32>
    %17 = arith.subf %4, %16 : vector<8x128xf32>
    %18 = arith.mulf %17, %17 : vector<8x128xf32>
    %cst_16 = arith.constant dense<0.000000e+00> : vector<8xf32>
    %19 = vector.multi_reduction <add>, %18, %cst_16 [1] : vector<8x128xf32> to vector<8xf32>
    %20 = vector.shape_cast %19 : vector<8xf32> to vector<8x1xf32>
    %cst_17 = arith.constant 1.280000e+02 : f32
    %21 = vector.broadcast %cst_17 : f32 to vector<8x1xf32>
    %22 = arith.divf %20, %21 : vector<8x1xf32>
    %23 = vector.broadcast %15 : vector<8x1xf32> to vector<8x128xf32>
    %24 = arith.subf %4, %23 : vector<8x128xf32>
    %cst_18 = arith.constant 9.99999974E-6 : f32
    %25 = vector.broadcast %cst_18 : f32 to vector<8x1xf32>
    %26 = arith.addf %22, %25 : vector<8x1xf32>
    %27 = math.rsqrt %26 : vector<8x1xf32>
    %28 = vector.broadcast %27 : vector<8x1xf32> to vector<8x128xf32>
    %29 = arith.mulf %24, %28 : vector<8x128xf32>
    %30 = vector.broadcast %9 : vector<1x128xf32> to vector<8x128xf32>
    %31 = arith.mulf %29, %30 : vector<8x128xf32>
    %32 = vector.broadcast %11 : vector<1x128xf32> to vector<8x128xf32>
    %33 = arith.addf %31, %32 : vector<8x128xf32>
    %34 = arith.truncf %33 : vector<8x128xf32> to vector<8x128xbf16>
    %cst_19 = arith.constant dense<0.000000e+00> : vector<8xf32>
    %35 = vector.multi_reduction <add>, %6, %cst_19 [1] : vector<8x128xf32> to vector<8xf32>
    %36 = vector.shape_cast %35 : vector<8xf32> to vector<8x1xf32>
    %cst_20 = arith.constant 1.280000e+02 : f32
    %37 = vector.broadcast %cst_20 : f32 to vector<8x1xf32>
    %38 = arith.divf %36, %37 : vector<8x1xf32>
    %39 = vector.broadcast %38 : vector<8x1xf32> to vector<8x128xf32>
    %40 = arith.subf %6, %39 : vector<8x128xf32>
    %41 = arith.mulf %40, %40 : vector<8x128xf32>
    %cst_21 = arith.constant dense<0.000000e+00> : vector<8xf32>
    %42 = vector.multi_reduction <add>, %41, %cst_21 [1] : vector<8x128xf32> to vector<8xf32>
    %43 = vector.shape_cast %42 : vector<8xf32> to vector<8x1xf32>
    %cst_22 = arith.constant 1.280000e+02 : f32
    %44 = vector.broadcast %cst_22 : f32 to vector<8x1xf32>
    %45 = arith.divf %43, %44 : vector<8x1xf32>
    %46 = vector.broadcast %38 : vector<8x1xf32> to vector<8x128xf32>
    %47 = arith.subf %6, %46 : vector<8x128xf32>
    %cst_23 = arith.constant 9.99999974E-6 : f32
    %48 = vector.broadcast %cst_23 : f32 to vector<8x1xf32>
    %49 = arith.addf %45, %48 : vector<8x1xf32>
    %50 = math.rsqrt %49 : vector<8x1xf32>
    %51 = vector.broadcast %50 : vector<8x1xf32> to vector<8x128xf32>
    %52 = arith.mulf %47, %51 : vector<8x128xf32>
    %53 = vector.broadcast %9 : vector<1x128xf32> to vector<8x128xf32>
    %54 = arith.mulf %52, %53 : vector<8x128xf32>
    %55 = vector.broadcast %11 : vector<1x128xf32> to vector<8x128xf32>
    %56 = arith.addf %54, %55 : vector<8x128xf32>
    %57 = arith.truncf %56 : vector<8x128xf32> to vector<8x128xbf16>
    %c0_24 = arith.constant 0 : index
    %c0_25 = arith.constant 0 : index
    %c0_26 = arith.constant 0 : index
    %58 = vector.load %arg7[%c0_24, %c0_25, %c0_26] : memref<1x128x128xbf16, #tpu.memory_space<vmem>>, vector<1x128x128xbf16>
    %59 = vector.shape_cast %58 : vector<1x128x128xbf16> to vector<128x128xbf16>
    %cst_27 = arith.constant dense<0.000000e+00> : vector<8x128xf32>
    %60 = tpu.matmul %34, %59, %cst_27 {dimension_numbers = #tpu.dot_dimension_numbers<[1], [0], [0], [1], [0, 0, 1, 1], [], []>} : vector<8x128xbf16>, vector<128x128xbf16>, vector<8x128xf32> -> vector<8x128xf32>
    %c0_28 = arith.constant 0 : index
    %c0_29 = arith.constant 0 : index
    %c0_30 = arith.constant 0 : index
    %61 = vector.load %arg8[%c0_28, %c0_29, %c0_30] : memref<1x1x128xf32, #tpu.memory_space<vmem>>, vector<1x1x128xf32>
    %62 = vector.shape_cast %61 : vector<1x1x128xf32> to vector<1x128xf32>
    %63 = vector.broadcast %62 : vector<1x128xf32> to vector<8x128xf32>
    %64 = arith.addf %60, %63 : vector<8x128xf32>
    %c0_31 = arith.constant 0 : index
    %c0_32 = arith.constant 0 : index
    %c0_33 = arith.constant 0 : index
    %65 = vector.load %arg9[%c0_31, %c0_32, %c0_33] : memref<1x128x128xbf16, #tpu.memory_space<vmem>>, vector<1x128x128xbf16>
    %66 = vector.shape_cast %65 : vector<1x128x128xbf16> to vector<128x128xbf16>
    %cst_34 = arith.constant dense<0.000000e+00> : vector<8x128xf32>
    %67 = tpu.matmul %57, %66, %cst_34 {dimension_numbers = #tpu.dot_dimension_numbers<[1], [0], [0], [1], [0, 0, 1, 1], [], []>} : vector<8x128xbf16>, vector<128x128xbf16>, vector<8x128xf32> -> vector<8x128xf32>
    %c0_35 = arith.constant 0 : index
    %c0_36 = arith.constant 0 : index
    %c0_37 = arith.constant 0 : index
    %68 = vector.load %arg10[%c0_35, %c0_36, %c0_37] : memref<1x1x128xf32, #tpu.memory_space<vmem>>, vector<1x1x128xf32>
    %69 = vector.shape_cast %68 : vector<1x1x128xf32> to vector<1x128xf32>
    %70 = vector.broadcast %69 : vector<1x128xf32> to vector<8x128xf32>
    %71 = arith.addf %67, %70 : vector<8x128xf32>
    %c0_38 = arith.constant 0 : index
    %c0_39 = arith.constant 0 : index
    %c0_40 = arith.constant 0 : index
    %72 = vector.load %arg11[%c0_38, %c0_39, %c0_40] : memref<1x128x128xbf16, #tpu.memory_space<vmem>>, vector<1x128x128xbf16>
    %73 = vector.shape_cast %72 : vector<1x128x128xbf16> to vector<128x128xbf16>
    %cst_41 = arith.constant dense<0.000000e+00> : vector<8x128xf32>
    %74 = tpu.matmul %57, %73, %cst_41 {dimension_numbers = #tpu.dot_dimension_numbers<[1], [0], [0], [1], [0, 0, 1, 1], [], []>} : vector<8x128xbf16>, vector<128x128xbf16>, vector<8x128xf32> -> vector<8x128xf32>
    %c0_42 = arith.constant 0 : index
    %c0_43 = arith.constant 0 : index
    %c0_44 = arith.constant 0 : index
    %75 = vector.load %arg12[%c0_42, %c0_43, %c0_44] : memref<1x1x128xf32, #tpu.memory_space<vmem>>, vector<1x1x128xf32>
    %76 = vector.shape_cast %75 : vector<1x1x128xf32> to vector<1x128xf32>
    %77 = vector.broadcast %76 : vector<1x128xf32> to vector<8x128xf32>
    %78 = arith.addf %74, %77 : vector<8x128xf32>
    %cst_45 = arith.constant 2.500000e-01 : f32
    %79 = vector.broadcast %cst_45 : f32 to vector<8x128xf32>
    %80 = arith.mulf %64, %79 : vector<8x128xf32>
    %81 = tpu.iota {dimensions = array<i32: 1>} : vector<8x128xi32>
    %82 = tpu.iota {dimensions = array<i32: 0>} : vector<8x128xi32>
    %c16_i32 = arith.constant 16 : i32
    %83 = vector.broadcast %c16_i32 : i32 to vector<8x128xi32>
    %84 = arith.muli %82, %83 : vector<8x128xi32>
    %85 = arith.cmpi sge, %81, %84 : vector<8x128xi32>
    %c16_i32_46 = arith.constant 16 : i32
    %86 = vector.broadcast %c16_i32_46 : i32 to vector<8x128xi32>
    %87 = arith.addi %84, %86 : vector<8x128xi32>
    %88 = arith.cmpi slt, %81, %87 : vector<8x128xi32>
    %89 = arith.andi %85, %88 : vector<8x128xi1>
    %90 = arith.extui %89 : vector<8x128xi1> to vector<8x128xi32>
    %91 = arith.sitofp %90 : vector<8x128xi32> to vector<8x128xf32>
    %92 = vector.shape_cast %80 : vector<8x128xf32> to vector<1x8x128xf32>
    %93 = vector.shape_cast %71 : vector<8x128xf32> to vector<1x8x128xf32>
    %94 = vector.shape_cast %78 : vector<8x128xf32> to vector<1x8x128xf32>
    %95 = vector.shape_cast %92 : vector<1x8x128xf32> to vector<8x128xf32>
    %96 = vector.shape_cast %93 : vector<1x8x128xf32> to vector<8x128xf32>
    %97 = arith.truncf %96 : vector<8x128xf32> to vector<8x128xbf16>
    %98 = vector.shape_cast %94 : vector<1x8x128xf32> to vector<8x128xf32>
    %99 = arith.truncf %98 : vector<8x128xf32> to vector<8x128xbf16>
    %100 = vector.shape_cast %95 : vector<8x128xf32> to vector<1x8x128xf32>
    %101 = vector.shape_cast %91 : vector<8x128xf32> to vector<8x1x128xf32>
    %102 = vector.broadcast %100 : vector<1x8x128xf32> to vector<8x8x128xf32>
    %103 = vector.broadcast %101 : vector<8x1x128xf32> to vector<8x8x128xf32>
    %104 = arith.mulf %102, %103 : vector<8x8x128xf32>
    %105 = vector.shape_cast %104 : vector<8x8x128xf32> to vector<64x128xf32>
    %106 = arith.truncf %105 : vector<64x128xf32> to vector<64x128xbf16>
    %cst_47 = arith.constant dense<0.000000e+00> : vector<64x8xf32>
    %107 = tpu.matmul %106, %97, %cst_47 {dimension_numbers = #tpu.dot_dimension_numbers<[1], [1], [0], [0], [0, 0, 1, 0], [], []>} : vector<64x128xbf16>, vector<8x128xbf16>, vector<64x8xf32> -> vector<64x8xf32>
    %108 = vector.shape_cast %7 : vector<1x1x8xf32> to vector<1x8xf32>
    %109 = vector.broadcast %108 : vector<1x8xf32> to vector<64x8xf32>
    %110 = arith.addf %107, %109 : vector<64x8xf32>
    %cst_48 = arith.constant dense<0xFF800000> : vector<64xf32>
    %111 = vector.multi_reduction <maximumf>, %110, %cst_48 [1] : vector<64x8xf32> to vector<64xf32>
    %112 = vector.shape_cast %111 : vector<64xf32> to vector<64x1xf32>
    %113 = vector.broadcast %112 : vector<64x1xf32> to vector<64x8xf32>
    %114 = arith.subf %110, %113 : vector<64x8xf32>
    %115 = math.exp %114 : vector<64x8xf32>
    %cst_49 = arith.constant dense<0.000000e+00> : vector<64xf32>
    %116 = vector.multi_reduction <add>, %115, %cst_49 [1] : vector<64x8xf32> to vector<64xf32>
    %117 = vector.shape_cast %116 : vector<64xf32> to vector<64x1xf32>
    %118 = tpu.reciprocal %117 {approx = true} : vector<64x1xf32> -> vector<64x1xf32>
    %119 = vector.broadcast %118 : vector<64x1xf32> to vector<64x8xf32>
    %120 = arith.mulf %115, %119 : vector<64x8xf32>
    %121 = arith.truncf %120 : vector<64x8xf32> to vector<64x8xbf16>
    %cst_50 = arith.constant dense<0.000000e+00> : vector<64x128xf32>
    %122 = tpu.matmul %121, %99, %cst_50 {dimension_numbers = #tpu.dot_dimension_numbers<[1], [0], [0], [1], [0, 0, 1, 1], [], []>} : vector<64x8xbf16>, vector<8x128xbf16>, vector<64x128xf32> -> vector<64x128xf32>
    %123 = vector.shape_cast %122 : vector<64x128xf32> to vector<8x8x128xf32>
    %124 = vector.shape_cast %91 : vector<8x128xf32> to vector<8x1x128xf32>
    %125 = vector.broadcast %124 : vector<8x1x128xf32> to vector<8x8x128xf32>
    %126 = arith.mulf %123, %125 : vector<8x8x128xf32>
    %cst_51 = arith.constant dense<0.000000e+00> : vector<8x128xf32>
    %127 = vector.multi_reduction <add>, %126, %cst_51 [0] : vector<8x8x128xf32> to vector<8x128xf32>
    %128 = arith.truncf %127 : vector<8x128xf32> to vector<8x128xbf16>
    %c0_52 = arith.constant 0 : index
    %c0_53 = arith.constant 0 : index
    %c0_54 = arith.constant 0 : index
    %129 = vector.load %arg13[%c0_52, %c0_53, %c0_54] : memref<1x128x128xbf16, #tpu.memory_space<vmem>>, vector<1x128x128xbf16>
    %130 = vector.shape_cast %129 : vector<1x128x128xbf16> to vector<128x128xbf16>
    %cst_55 = arith.constant dense<0.000000e+00> : vector<8x128xf32>
    %131 = tpu.matmul %128, %130, %cst_55 {dimension_numbers = #tpu.dot_dimension_numbers<[1], [0], [0], [1], [0, 0, 1, 1], [], []>} : vector<8x128xbf16>, vector<128x128xbf16>, vector<8x128xf32> -> vector<8x128xf32>
    %c0_56 = arith.constant 0 : index
    %c0_57 = arith.constant 0 : index
    %c0_58 = arith.constant 0 : index
    %132 = vector.load %arg14[%c0_56, %c0_57, %c0_58] : memref<1x1x128xf32, #tpu.memory_space<vmem>>, vector<1x1x128xf32>
    %133 = vector.shape_cast %132 : vector<1x1x128xf32> to vector<1x128xf32>
    %134 = vector.broadcast %133 : vector<1x128xf32> to vector<8x128xf32>
    %135 = arith.addf %131, %134 : vector<8x128xf32>
    %136 = arith.addf %4, %135 : vector<8x128xf32>
    %c0_59 = arith.constant 0 : index
    %c0_60 = arith.constant 0 : index
    %c0_61 = arith.constant 0 : index
    %137 = vector.load %arg15[%c0_59, %c0_60, %c0_61] : memref<1x1x128xf32, #tpu.memory_space<vmem>>, vector<1x1x128xf32>
    %138 = vector.shape_cast %137 : vector<1x1x128xf32> to vector<1x128xf32>
    %c0_62 = arith.constant 0 : index
    %c0_63 = arith.constant 0 : index
    %c0_64 = arith.constant 0 : index
    %139 = vector.load %arg16[%c0_62, %c0_63, %c0_64] : memref<1x1x128xf32, #tpu.memory_space<vmem>>, vector<1x1x128xf32>
    %140 = vector.shape_cast %139 : vector<1x1x128xf32> to vector<1x128xf32>
    %cst_65 = arith.constant dense<0.000000e+00> : vector<8xf32>
    %141 = vector.multi_reduction <add>, %136, %cst_65 [1] : vector<8x128xf32> to vector<8xf32>
    %142 = vector.shape_cast %141 : vector<8xf32> to vector<8x1xf32>
    %cst_66 = arith.constant 1.280000e+02 : f32
    %143 = vector.broadcast %cst_66 : f32 to vector<8x1xf32>
    %144 = arith.divf %142, %143 : vector<8x1xf32>
    %145 = vector.broadcast %144 : vector<8x1xf32> to vector<8x128xf32>
    %146 = arith.subf %136, %145 : vector<8x128xf32>
    %147 = arith.mulf %146, %146 : vector<8x128xf32>
    %cst_67 = arith.constant dense<0.000000e+00> : vector<8xf32>
    %148 = vector.multi_reduction <add>, %147, %cst_67 [1] : vector<8x128xf32> to vector<8xf32>
    %149 = vector.shape_cast %148 : vector<8xf32> to vector<8x1xf32>
    %cst_68 = arith.constant 1.280000e+02 : f32
    %150 = vector.broadcast %cst_68 : f32 to vector<8x1xf32>
    %151 = arith.divf %149, %150 : vector<8x1xf32>
    %152 = vector.broadcast %144 : vector<8x1xf32> to vector<8x128xf32>
    %153 = arith.subf %136, %152 : vector<8x128xf32>
    %cst_69 = arith.constant 9.99999974E-6 : f32
    %154 = vector.broadcast %cst_69 : f32 to vector<8x1xf32>
    %155 = arith.addf %151, %154 : vector<8x1xf32>
    %156 = math.rsqrt %155 : vector<8x1xf32>
    %157 = vector.broadcast %156 : vector<8x1xf32> to vector<8x128xf32>
    %158 = arith.mulf %153, %157 : vector<8x128xf32>
    %159 = vector.broadcast %138 : vector<1x128xf32> to vector<8x128xf32>
    %160 = arith.mulf %158, %159 : vector<8x128xf32>
    %161 = vector.broadcast %140 : vector<1x128xf32> to vector<8x128xf32>
    %162 = arith.addf %160, %161 : vector<8x128xf32>
    %163 = arith.truncf %162 : vector<8x128xf32> to vector<8x128xbf16>
    %c0_70 = arith.constant 0 : index
    %c0_71 = arith.constant 0 : index
    %c0_72 = arith.constant 0 : index
    %164 = vector.load %arg17[%c0_70, %c0_71, %c0_72] : memref<1x128x512xbf16, #tpu.memory_space<vmem>>, vector<1x128x512xbf16>
    %165 = vector.shape_cast %164 : vector<1x128x512xbf16> to vector<128x512xbf16>
    %cst_73 = arith.constant dense<0.000000e+00> : vector<8x512xf32>
    %166 = tpu.matmul %163, %165, %cst_73 {dimension_numbers = #tpu.dot_dimension_numbers<[1], [0], [0], [1], [0, 0, 1, 1], [], []>} : vector<8x128xbf16>, vector<128x512xbf16>, vector<8x512xf32> -> vector<8x512xf32>
    %c0_74 = arith.constant 0 : index
    %c0_75 = arith.constant 0 : index
    %c0_76 = arith.constant 0 : index
    %167 = vector.load %arg18[%c0_74, %c0_75, %c0_76] : memref<1x1x512xf32, #tpu.memory_space<vmem>>, vector<1x1x512xf32>
    %168 = vector.shape_cast %167 : vector<1x1x512xf32> to vector<1x512xf32>
    %169 = vector.broadcast %168 : vector<1x512xf32> to vector<8x512xf32>
    %170 = arith.addf %166, %169 : vector<8x512xf32>
    %cst_77 = arith.constant 5.000000e-01 : f32
    %171 = vector.broadcast %cst_77 : f32 to vector<8x512xf32>
    %172 = arith.mulf %171, %170 : vector<8x512xf32>
    %cst_78 = arith.constant 0.707106769 : f32
    %173 = vector.broadcast %cst_78 : f32 to vector<8x512xf32>
    %174 = arith.mulf %170, %173 : vector<8x512xf32>
    %175 = math.absf %174 : vector<8x512xf32>
    %cst_79 = arith.constant 0.327591091 : f32
    %176 = vector.broadcast %cst_79 : f32 to vector<8x512xf32>
    %177 = arith.mulf %176, %175 : vector<8x512xf32>
    %cst_80 = arith.constant 1.000000e+00 : f32
    %178 = vector.broadcast %cst_80 : f32 to vector<8x512xf32>
    %179 = arith.addf %178, %177 : vector<8x512xf32>
    %cst_81 = arith.constant 1.000000e+00 : f32
    %180 = vector.broadcast %cst_81 : f32 to vector<8x512xf32>
    %181 = arith.divf %180, %179 : vector<8x512xf32>
    %cst_82 = arith.constant 1.06140542 : f32
    %182 = vector.broadcast %cst_82 : f32 to vector<8x512xf32>
    %183 = arith.mulf %182, %181 : vector<8x512xf32>
    %cst_83 = arith.constant -1.45315206 : f32
    %184 = vector.broadcast %cst_83 : f32 to vector<8x512xf32>
    %185 = arith.addf %183, %184 : vector<8x512xf32>
    %186 = arith.mulf %185, %181 : vector<8x512xf32>
    %cst_84 = arith.constant 1.42141378 : f32
    %187 = vector.broadcast %cst_84 : f32 to vector<8x512xf32>
    %188 = arith.addf %186, %187 : vector<8x512xf32>
    %189 = arith.mulf %188, %181 : vector<8x512xf32>
    %cst_85 = arith.constant -0.284496725 : f32
    %190 = vector.broadcast %cst_85 : f32 to vector<8x512xf32>
    %191 = arith.addf %189, %190 : vector<8x512xf32>
    %192 = arith.mulf %191, %181 : vector<8x512xf32>
    %cst_86 = arith.constant 0.254829586 : f32
    %193 = vector.broadcast %cst_86 : f32 to vector<8x512xf32>
    %194 = arith.addf %192, %193 : vector<8x512xf32>
    %195 = arith.mulf %194, %181 : vector<8x512xf32>
    %cst_87 = arith.constant 0.000000e+00 : f32
    %196 = vector.broadcast %cst_87 : f32 to vector<8x512xf32>
    %197 = arith.subf %196, %175 : vector<8x512xf32>
    %198 = arith.mulf %197, %175 : vector<8x512xf32>
    %199 = math.exp %198 : vector<8x512xf32>
    %200 = arith.mulf %195, %199 : vector<8x512xf32>
    %cst_88 = arith.constant 1.000000e+00 : f32
    %201 = vector.broadcast %cst_88 : f32 to vector<8x512xf32>
    %202 = arith.subf %201, %200 : vector<8x512xf32>
    %cst_89 = arith.constant 0.000000e+00 : f32
    %203 = vector.broadcast %cst_89 : f32 to vector<8x512xf32>
    %204 = arith.cmpf oge, %174, %203 : vector<8x512xf32>
    %cst_90 = arith.constant 0.000000e+00 : f32
    %205 = vector.broadcast %cst_90 : f32 to vector<8x512xf32>
    %206 = arith.subf %205, %202 : vector<8x512xf32>
    %207 = arith.select %204, %202, %206 : vector<8x512xi1>, vector<8x512xf32>
    %cst_91 = arith.constant 1.000000e+00 : f32
    %208 = vector.broadcast %cst_91 : f32 to vector<8x512xf32>
    %209 = arith.addf %208, %207 : vector<8x512xf32>
    %210 = arith.mulf %172, %209 : vector<8x512xf32>
    %211 = arith.truncf %210 : vector<8x512xf32> to vector<8x512xbf16>
    %c0_92 = arith.constant 0 : index
    %c0_93 = arith.constant 0 : index
    %c0_94 = arith.constant 0 : index
    %212 = vector.load %arg19[%c0_92, %c0_93, %c0_94] : memref<1x512x128xbf16, #tpu.memory_space<vmem>>, vector<1x512x128xbf16>
    %213 = vector.shape_cast %212 : vector<1x512x128xbf16> to vector<512x128xbf16>
    %cst_95 = arith.constant dense<0.000000e+00> : vector<8x128xf32>
    %214 = tpu.matmul %211, %213, %cst_95 {dimension_numbers = #tpu.dot_dimension_numbers<[1], [0], [0], [1], [0, 0, 1, 1], [], []>} : vector<8x512xbf16>, vector<512x128xbf16>, vector<8x128xf32> -> vector<8x128xf32>
    %c0_96 = arith.constant 0 : index
    %c0_97 = arith.constant 0 : index
    %c0_98 = arith.constant 0 : index
    %215 = vector.load %arg20[%c0_96, %c0_97, %c0_98] : memref<1x1x128xf32, #tpu.memory_space<vmem>>, vector<1x1x128xf32>
    %216 = vector.shape_cast %215 : vector<1x1x128xf32> to vector<1x128xf32>
    %217 = vector.broadcast %216 : vector<1x128xf32> to vector<8x128xf32>
    %218 = arith.addf %214, %217 : vector<8x128xf32>
    %219 = arith.addf %136, %218 : vector<8x128xf32>
    %220 = vector.shape_cast %219 : vector<8x128xf32> to vector<1x8x128xf32>
    %c0_99 = arith.constant 0 : index
    %c0_100 = arith.constant 0 : index
    %c0_101 = arith.constant 0 : index
    %221 = vector.load %arg22[%c0_99, %c0_100, %c0_101] : memref<1x8x128xf32, #tpu.memory_space<vmem>>, vector<1x8x128xf32>
    tpu.vector_store %arg22[%c0_99, %c0_100, %c0_101], %220 {strides = array<i32>} : memref<1x8x128xf32, #tpu.memory_space<vmem>>, vector<1x8x128xf32>,
    %c3_i32 = arith.constant 3 : i32
    %222 = arith.cmpi eq, %arg1, %c3_i32 : i32
    %223 = arith.extui %222 : i1 to i32
    %c0_i32_102 = arith.constant 0 : i32
    %224 = arith.cmpi ne, %223, %c0_i32_102 : i32
    scf.if %224 {
      %225 = vector.shape_cast %219 : vector<8x128xf32> to vector<1x8x128xf32>
      %c0_103 = arith.constant 0 : index
      %c0_104 = arith.constant 0 : index
      %c0_105 = arith.constant 0 : index
      %226 = vector.load %arg21[%c0_103, %c0_104, %c0_105] : memref<1x8x128xf32, #tpu.memory_space<vmem>>, vector<1x8x128xf32>
      tpu.vector_store %arg21[%c0_103, %c0_104, %c0_105], %225 {strides = array<i32>} : memref<1x8x128xf32, #tpu.memory_space<vmem>>, vector<1x8x128xf32>,
    } else {
    }
    return
  }
  func.func @transform_0(%arg0: i32, %arg1: i32) -> (i32, i32, i32) {
    %c0_i32 = arith.constant 0 : i32
    %c0_i32_0 = arith.constant 0 : i32
    %c0_i32_1 = arith.constant 0 : i32
    return %arg0, %c0_i32, %c0_i32_0 : i32, i32, i32
  }
  func.func @transform_1(%arg0: i32, %arg1: i32) -> (i32, i32, i32) {
    %c0_i32 = arith.constant 0 : i32
    %c0_i32_0 = arith.constant 0 : i32
    %c0_i32_1 = arith.constant 0 : i32
    return %arg0, %c0_i32, %c0_i32_0 : i32, i32, i32
  }
  func.func @transform_2(%arg0: i32, %arg1: i32) -> (i32, i32, i32) {
    %c0_i32 = arith.constant 0 : i32
    %c0_i32_0 = arith.constant 0 : i32
    %c0_i32_1 = arith.constant 0 : i32
    return %arg0, %c0_i32, %c0_i32_0 : i32, i32, i32
  }
  func.func @transform_3(%arg0: i32, %arg1: i32) -> (i32, i32, i32) {
    %c0_i32 = arith.constant 0 : i32
    %c0_i32_0 = arith.constant 0 : i32
    %c0_i32_1 = arith.constant 0 : i32
    return %arg1, %c0_i32, %c0_i32_0 : i32, i32, i32
  }
  func.func @transform_4(%arg0: i32, %arg1: i32) -> (i32, i32, i32) {
    %c0_i32 = arith.constant 0 : i32
    %c0_i32_0 = arith.constant 0 : i32
    %c0_i32_1 = arith.constant 0 : i32
    return %arg1, %c0_i32, %c0_i32_0 : i32, i32, i32
  }
  func.func @transform_5(%arg0: i32, %arg1: i32) -> (i32, i32, i32) {
    %c0_i32 = arith.constant 0 : i32
    %c0_i32_0 = arith.constant 0 : i32
    %c0_i32_1 = arith.constant 0 : i32
    return %arg1, %c0_i32, %c0_i32_0 : i32, i32, i32
  }
  func.func @transform_6(%arg0: i32, %arg1: i32) -> (i32, i32, i32) {
    %c0_i32 = arith.constant 0 : i32
    %c0_i32_0 = arith.constant 0 : i32
    %c0_i32_1 = arith.constant 0 : i32
    return %arg1, %c0_i32, %c0_i32_0 : i32, i32, i32
  }
  func.func @transform_7(%arg0: i32, %arg1: i32) -> (i32, i32, i32) {
    %c0_i32 = arith.constant 0 : i32
    %c0_i32_0 = arith.constant 0 : i32
    %c0_i32_1 = arith.constant 0 : i32
    return %arg1, %c0_i32, %c0_i32_0 : i32, i32, i32
  }
  func.func @transform_8(%arg0: i32, %arg1: i32) -> (i32, i32, i32) {
    %c0_i32 = arith.constant 0 : i32
    %c0_i32_0 = arith.constant 0 : i32
    %c0_i32_1 = arith.constant 0 : i32
    return %arg1, %c0_i32, %c0_i32_0 : i32, i32, i32
  }
  func.func @transform_9(%arg0: i32, %arg1: i32) -> (i32, i32, i32) {
    %c0_i32 = arith.constant 0 : i32
    %c0_i32_0 = arith.constant 0 : i32
    %c0_i32_1 = arith.constant 0 : i32
    return %arg1, %c0_i32, %c0_i32_0 : i32, i32, i32
  }
  func.func @transform_10(%arg0: i32, %arg1: i32) -> (i32, i32, i32) {
    %c0_i32 = arith.constant 0 : i32
    %c0_i32_0 = arith.constant 0 : i32
    %c0_i32_1 = arith.constant 0 : i32
    return %arg1, %c0_i32, %c0_i32_0 : i32, i32, i32
  }
  func.func @transform_11(%arg0: i32, %arg1: i32) -> (i32, i32, i32) {
    %c0_i32 = arith.constant 0 : i32
    %c0_i32_0 = arith.constant 0 : i32
    %c0_i32_1 = arith.constant 0 : i32
    return %arg1, %c0_i32, %c0_i32_0 : i32, i32, i32
  }
  func.func @transform_12(%arg0: i32, %arg1: i32) -> (i32, i32, i32) {
    %c0_i32 = arith.constant 0 : i32
    %c0_i32_0 = arith.constant 0 : i32
    %c0_i32_1 = arith.constant 0 : i32
    return %arg1, %c0_i32, %c0_i32_0 : i32, i32, i32
  }
  func.func @transform_13(%arg0: i32, %arg1: i32) -> (i32, i32, i32) {
    %c0_i32 = arith.constant 0 : i32
    %c0_i32_0 = arith.constant 0 : i32
    %c0_i32_1 = arith.constant 0 : i32
    return %arg1, %c0_i32, %c0_i32_0 : i32, i32, i32
  }
  func.func @transform_14(%arg0: i32, %arg1: i32) -> (i32, i32, i32) {
    %c0_i32 = arith.constant 0 : i32
    %c0_i32_0 = arith.constant 0 : i32
    %c0_i32_1 = arith.constant 0 : i32
    return %arg1, %c0_i32, %c0_i32_0 : i32, i32, i32
  }
  func.func @transform_15(%arg0: i32, %arg1: i32) -> (i32, i32, i32) {
    %c0_i32 = arith.constant 0 : i32
    %c0_i32_0 = arith.constant 0 : i32
    %c0_i32_1 = arith.constant 0 : i32
    return %arg1, %c0_i32, %c0_i32_0 : i32, i32, i32
  }
  func.func @transform_16(%arg0: i32, %arg1: i32) -> (i32, i32, i32) {
    %c0_i32 = arith.constant 0 : i32
    %c0_i32_0 = arith.constant 0 : i32
    %c0_i32_1 = arith.constant 0 : i32
    return %arg1, %c0_i32, %c0_i32_0 : i32, i32, i32
  }
  func.func @transform_17(%arg0: i32, %arg1: i32) -> (i32, i32, i32) {
    %c0_i32 = arith.constant 0 : i32
    %c0_i32_0 = arith.constant 0 : i32
    %c0_i32_1 = arith.constant 0 : i32
    return %arg1, %c0_i32, %c0_i32_0 : i32, i32, i32
  }
  func.func @transform_18(%arg0: i32, %arg1: i32) -> (i32, i32, i32) {
    %c0_i32 = arith.constant 0 : i32
    %c0_i32_0 = arith.constant 0 : i32
    %c0_i32_1 = arith.constant 0 : i32
    return %arg1, %c0_i32, %c0_i32_0 : i32, i32, i32
  }
  func.func @transform_19(%arg0: i32, %arg1: i32) -> (i32, i32, i32) {
    %c0_i32 = arith.constant 0 : i32
    %c0_i32_0 = arith.constant 0 : i32
    %c0_i32_1 = arith.constant 0 : i32
    return %arg0, %c0_i32, %c0_i32_0 : i32, i32, i32
  }
}

</mosaic_0001>

<bundles_post_ra>
// kernel: tpu_custom_call.1
= control target key start
LH: loop header
LB: loop body
LE: loop exit
PB: predicated region body
PF: predicated region fallthrough
CT: control target
= control target key end

     0   :  { %s6028_s0 = inlined_call_operand.hbm [shape: f32[2,8,128], index: 0, kind: input, shape index: {}]   ;;  %s6029_s1 = inlined_call_operand.hbm [shape: f32[2,8,128], index: 1, kind: input, shape index: {}]   ;;  %s6030_s2 = inlined_call_operand.hbm [shape: f32[2,1,8], index: 2, kind: input, shape index: {}]   ;;  %s6031_s3 = inlined_call_operand.hbm [shape: f32[4,1,128], index: 3, kind: input, shape index: {}]   ;;  %s6032_s4 = inlined_call_operand.hbm [shape: f32[4,1,128], index: 4, kind: input, shape index: {}]   ;;  %s6033_s5 = inlined_call_operand.hbm [shape: bf16[4,128,128], index: 5, kind: input, shape index: {}]   ;;  %s6034_s6 = inlined_call_operand.hbm [shape: f32[4,1,128], index: 6, kind: input, shape index: {}]   ;;  %s6035_s7 = inlined_call_operand.hbm [shape: bf16[4,128,128], index: 7, kind: input, shape index: {}]   ;;  %s6036_s8 = inlined_call_operand.hbm [shape: f32[4,1,128], index: 8, kind: input, shape index: {}]   ;;  %s6037_s9 = inlined_call_operand.hbm [shape: bf16[4,128,128], index: 9, kind: input, shape index: {}]   ;;  %s6038_s10 = inlined_call_operand.hbm [shape: f32[4,1,128], index: 10, kind: input, shape index: {}]   ;;  %s6039_s11 = inlined_call_operand.hbm [shape: bf16[4,128,128], index: 11, kind: input, shape index: {}]   ;;  %s6040_s12 = inlined_call_operand.hbm [shape: f32[4,1,128], index: 12, kind: input, shape index: {}]   ;;  %s6041_s13 = inlined_call_operand.hbm [shape: f32[4,1,128], index: 13, kind: input, shape index: {}]   ;;  %s6042_s14 = inlined_call_operand.hbm [shape: f32[4,1,128], index: 14, kind: input, shape index: {}]   ;;  %s6043_s15 = inlined_call_operand.hbm [shape: bf16[4,128,512], index: 15, kind: input, shape index: {}]   ;;  %s6044_s16 = inlined_call_operand.hbm [shape: f32[4,1,512], index: 16, kind: input, shape index: {}]   ;;  %s6045_s17 = inlined_call_operand.hbm [shape: bf16[4,512,128], index: 17, kind: input, shape index: {}]   ;;  %s6046_s18 = inlined_call_operand.hbm [shape: f32[4,1,128], index: 18, kind: input, shape index: {}]   ;;  %s6047_s19 = inlined_call_operand.hbm [shape: f32[2,8,128], index: 19, kind: output, shape index: {}]  }
   0x1   :  { %6099 = sst [smem:[#allocation61_spill]] %s6028_s0 }
   0x2   :  { %6100 = sst [smem:[#allocation62_spill]] %s6029_s1 }
   0x3   :  { %6101 = sst [smem:[#allocation63_spill]] %s6030_s2 }
   0x4   :  { %6102 = sst [smem:[#allocation64_spill]] %s6031_s3 }
   0x5   :  { %6103 = sst [smem:[#allocation65_spill]] %s6032_s4 }
   0x6   :  { %6104 = sst [smem:[#allocation66_spill]] %s6033_s5 }
   0x7   :  { %6105 = sst [smem:[#allocation67_spill]] %s6034_s6 }
   0x8   :  { %6106 = sst [smem:[#allocation68_spill]] %s6035_s7 }
   0x9   :  { %6107 = sst [smem:[#allocation69_spill]] %s6036_s8 }
   0xa   :  { %6108 = sst [smem:[#allocation70_spill]] %s6037_s9 }
   0xb   :  { %6109 = sst [smem:[#allocation71_spill]] %s6038_s10 }
   0xc   :  { %6110 = sst [smem:[#allocation72_spill]] %s6040_s12 }
   0xd   :  { %6111 = sst [smem:[#allocation73_spill]] %s6042_s14 }
   0xe   :  { %6112 = sst [smem:[#allocation74_spill]] %s6044_s16 }
   0xf   :  { %6113 = sst [smem:[#allocation75_spill]] %s6046_s18 }
  0x10   :  { %6114 = sst [smem:[#allocation76_spill]] %s6047_s19 }
  0x11   :  { %24 = vsyncpa [#allocation4], 0 }
  0x12   :  { %26 = vsyncpa [#allocation4 + $0x1], 0 }
  0x13   :  { %27 = vsyncpa [#allocation7], 0 }
  0x14   :  { %29 = vsyncpa [#allocation7 + $0x1], 0 }
  0x15   :  { %30 = vsyncpa [#allocation10], 0 }
  0x16   :  { %32 = vsyncpa [#allocation10 + $0x1], 0 }
  0x17   :  { %33 = vsyncpa [#allocation13], 0 }
  0x18   :  { %35 = vsyncpa [#allocation13 + $0x1], 0 }
  0x19   :  { %36 = vsyncpa [#allocation16], 0 }
  0x1a   :  { %38 = vsyncpa [#allocation16 + $0x1], 0 }
  0x1b   :  { %39 = vsyncpa [#allocation19], 0 }
  0x1c   :  { %41 = vsyncpa [#allocation19 + $0x1], 0 }
  0x1d   :  { %42 = vsyncpa [#allocation22], 0 }
  0x1e   :  { %44 = vsyncpa [#allocation22 + $0x1], 0 }
  0x1f   :  { %45 = vsyncpa [#allocation25], 0 }
  0x20   :  { %47 = vsyncpa [#allocation25 + $0x1], 0 }
  0x21   :  { %48 = vsyncpa [#allocation28], 0 }
  0x22   :  { %50 = vsyncpa [#allocation28 + $0x1], 0 }
  0x23   :  { %51 = vsyncpa [#allocation31], 0 }
  0x24   :  { %53 = vsyncpa [#allocation31 + $0x1], 0 }
  0x25   :  { %54 = vsyncpa [#allocation5], 0 }
  0x26   :  { %56 = vsyncpa [#allocation5 + $0x1], 0  ;;  %s4864_s0 = smov 0   ;;  %s4866_s30 = smov 0  }
  0x27   :  { %s4868_s20 = smov 0   ;;  %s4870_s21 = smov 0  }
  0x28   :  { %s4872_s1 = smov 0   ;;  %s4874_s22 = smov 0  }
  0x29   :  { %s4876_s2 = smov 0   ;;  %s4878_s23 = smov 0  }
  0x2a   :  { %s4880_s24 = smov 0   ;;  %s4882_s25 = smov 0  }
  0x2b   :  { %s4884_s3 = smov 0  }
  0x2c LB: > { %6115 = sst [smem:[#allocation45_spill]] %s4698_s30  ;;  %s4920_s26 = sadd.s32 4294967295, %s4734_s3   ;;  %s4734_s3 = sphi %s4884_s3, %s62_s3   ;;  %s4730_s25 = sphi %s4882_s25, %s6213_s25   ;;  %s4726_s24 = sphi %s4880_s24, %s6212_s24   ;;  %s4722_s23 = sphi %s4878_s23, %s6211_s23   ;;  %s4718_s2 = sphi %s4876_s2, %s6210_s2   ;;  %s4714_s22 = sphi %s4874_s22, %s6207_s22   ;;  %s4710_s1 = sphi %s4872_s1, %s6206_s1   ;;  %s4706_s21 = sphi %s4870_s21, %s6205_s21   ;;  %s4702_s20 = sphi %s4868_s20, %s6204_s20   ;;  %s4698_s30 = sphi %s4866_s30, %s6203_s30   ;;  %s4694_s0 = sphi %s4864_s0, %s6202_s0  }
  0x2d   : > { %6116 = sst [smem:[#allocation46_spill]] %s4702_s20  ;;  %s3372_s27 = sadd.s32 4294967294, %s4734_s3  }
  0x2e   : > { %6117 = sst [smem:[#allocation47_spill]] %s4706_s21  ;;  %s71_s28 = sadd.s32 1, %s4726_s24 }
  0x2f   : > { %6118 = sst [smem:[#allocation48_spill]] %s4710_s1  ;;  %s74_s29 = sadd.s32 1, %s4730_s25 }
  0x30   : > { %6119 = sst [smem:[#allocation49_spill]] %s4714_s22  ;;  %p72_p0 = scmp.ge.s32.totalorder %s71_s28, 4 }
  0x31   : > { %6120 = sst [smem:[#allocation50_spill]] %s4718_s2  ;;  %s81_s19 = sadd.s32 1, %s4714_s22 }
  0x32   : > { %6121 = sst [smem:[#allocation51_spill]] %s4722_s23  ;;  %p88_p1 = scmp.ne.s32.totalorder %s4714_s22, %s4710_s1 }
  0x33   : > { %6122 = sst [smem:[#allocation52_spill]] %s4920_s26  ;;  %p89_p2 = scmp.eq.s32.totalorder %s4734_s3, 0 }
  0x34   : > { %s6215_s28 = smov (%p72_p0, %s71_s28), 0  ;;  %s6217_s29 = smov (!%p72_p0, %s74_s29), %s4730_s25 }
  0x35   : > { %6123 = sst [smem:[#allocation53_spill]] %s6215_s28  ;;  %p4937_p3 = por %p89_p2, %p88_p1 }
  0x36   : > { %p6060_p4 = scmp.ne.s32.totalorder %s4710_s1, %s4706_s21  ;;  %p76_p5 = scmp.ge.s32.totalorder %s6217_s29, 2 }
  0x37   : > { %s6124_s23 = scalar_select %p4937_p3, 1, 0 }
  0x38   : > { %p95_p6 = scmp.eq.s32.totalorder %s4920_s26, 0  ;;  %s156_s2 = ssub.s32 %s4726_s24, %s6215_s28 }
  0x39   : > { %s159_s18 = sadd.s32 1, %s4702_s20  ;;  %s6219_s29 = smov (%p76_p5, %s6217_s29), 0 }
  0x3a   : > { %6125 = sst [smem:[#allocation54_spill]] %s6219_s29  ;;  %p4954_p7 = por %p95_p6, %p6060_p4 }
  0x3b   : > { %p157_p8 = scmp.eq.s32.totalorder %s156_s2, 0  ;;  %s78_s14 = ssub.s32 %s4730_s25, %s6219_s29 }
  0x3c   : > { %s6126_s16 = scalar_select %p4954_p7, 1, 0 }
  0x3d   : > { %p166_p9 = scmp.ne.s32.totalorder %s4702_s20, %s4698_s30  ;;  %p79_p10 = scmp.eq.s32.totalorder %s78_s14, 0 }
  0x3e   : > { %6127 = sst [smem:[#allocation55_spill]] %s6126_s16  ;;  %p172_p11 = scmp.ne.s32.totalorder %s4698_s30, %s4694_s0 }
  0x3f   : > { %s4965_s12 = scalar_select %p157_p8, %s4702_s20, %s159_s18  }
  0x40   : > { %s4968_s28 = scalar_select %p79_p10, %s4714_s22, %s81_s19  }
  0x41   : > { %6128 = sst [smem:[#allocation56_spill]] %s4965_s12  ;;  %p4972_p12 = por %p166_p9, %p89_p2 }
  0x42   : > { %6129 = sst [smem:[#allocation57_spill]] %s4968_s28  ;;  %p4978_p13 = por %p172_p11, %p95_p6 }
  0x43   : > { %s6130_s10 = scalar_select %p4972_p12, 1, 0 }
  0x44   : > { %s6131_s8 = scalar_select %p4978_p13, 1, 0 }
  0x45   : > { %p586_p0 = scmp.eq.s32.totalorder %s4920_s26, 7  ;;  %p592_p5 = scmp.eq.s32.totalorder %s3372_s27, 7 }
  0x46   : > { %6132 = sst [smem:[#allocation58_spill]] %s6131_s8  ;;  %p6135_p8 = scmp.ne.s32.totalorder %s4710_s1, %s4706_s21 }
  0x47   : > { %p4986_p4 = por %p586_p0, %p88_p1  ;;  %p3374_p2 = scmp.ge.s32.totalorder %s4734_s3, 8 }
  0x48   : > { %p4993_p10 = por %p592_p5, %p6135_p8  ;;  %s4999_s19 = sand.u32 (!%p3374_p2), 1, %s4714_s22  }
  0x49   : > { %s6133_s14 = scalar_select %p4986_p4, 1, 0 }
  0x4a   : > { %s6136_s18 = scalar_select %p4993_p10, 1, 0 }
  0x4b   : > { %6134 = sst [smem:[#allocation59_spill]] %s6133_s14  ;;  %608 = sbr.rel (%p3374_p2) target bundleno = 599 (0x257), region = 16 }
  0x4c   : > { %6137 = sst [smem:[#allocation60_spill]] %s6136_s18  ;;  %s6071_s0 = sshll.u32 (!%p3374_p2), %s4730_s25, 7 }
  0x4d   : > { %s6073_s2 = sshll.u32 (!%p3374_p2), %s4999_s19, 3  ;;  %s5004_s27 = sand.u32 (!%p3374_p2), 1, %s4734_s3  }
  0x4e   : > { %s6138_s12 = sld [smem:[#allocation62_spill]] (!%p3374_p2)  ;;  %s634_s22 = scalar_lea.vmem (!%p3374_p2), [#allocation6], %s6073_s2 }
  0x4f   : > { %s641_s21 = sshll.u32 (!%p3374_p2), %s634_s22, 4  ;;  %s642_s21 = int_to_ptr.vmem [resolvable:$true] %s641_s21 }
  0x54   : > { %s5011_s18 = scalar_lea.hbm %s6138_s12, %s6071_s0  ;;  %s4048_s28 = scalar_lea.hbm %s6138_s12, 256 }
  0x55   : > { %s4044_s8 = scalar_lea.hbm %s5011_s18, 128  ;;  %p4049_p11 = scmp.lt.u32.totalorder %s5011_s18, %s6138_s12 }
  0x56   : > { %p4045_p1 = scmp.ne.s32.totalorder %s5011_s18, %s4044_s8  ;;  %p4050_p0 = scmp.lt.u32.totalorder %s4048_s28, %s4044_s8 }
  0x57   : > { %p4052_p8 = scmp.lt.u32.totalorder %s4044_s8, %s5011_s18 }
  0x58   : > { %p4046_p6 = pnand %p4045_p1, %p4937_p3  ;;  %p4051_p5 = por %p4050_p0, %p4049_p11 }
  0x5a   : > { %p4047_p9 = pneg %p4046_p6  ;;  %p4053_p2 = por %p4052_p8, %p4051_p5 }
  0x5c   : > { %p4054_p10 = pnand %p4053_p2, %p4047_p9 }
  0x5e   : > { %4057 = shalt.err (!%p4054_p10)
}
  0x5f   : > { %s4058_s22 = scalar_lea.vmem %s642_s21, 128  ;;  %s4736_s2 = smov [#allocation6]  }
  0x60   : > { %p4059_p4 = scmp.ne.s32.totalorder %s642_s21, %s4058_s22  ;;  %s4062_s14 = sshll.u32 %s4736_s2, 4  ;;  %s4063_s14 = int_to_ptr.vmem [resolvable:$false] %s4062_s14 }
  0x61   : > { %s4064_s30 = scalar_lea.vmem %s4063_s14, 256  ;;  %p4065_p13 = scmp.lt.s32.totalorder %s642_s21, %s4063_s14 }
  0x62   : > { %p4060_p1 = pnand %p4059_p4, %p4937_p3  ;;  %p4066_p7 = scmp.lt.s32.totalorder %s4064_s30, %s4058_s22 }
  0x64   : > { %p4061_p6 = pneg %p4060_p1  ;;  %p4067_p12 = por %p4066_p7, %p4065_p13 }
  0x66   : > { %p4068_p0 = pnand %p4067_p12, %p4061_p6 }
  0x68   : > { %4071 = shalt.err (!%p4068_p0)
}
  0x69   : > { %s6139_s8 = scalar_lea.sflag [#allocation7], %s5004_s27  ;;  %s5036_s26 = sand.u32 1, %s4702_s20  }
  0x6a   : > { %3737 = dma.hbm_to_vmem [thread:$0]  (%p4937_p3), %s5011_s18, 128, %s642_s21, %s6139_s8  }
  0x6b   : > { %s5039_s0 = sshll.u32 %s4726_s24, 4  ;;  %s6140_s28 = sld [smem:[#allocation64_spill]] }
  0x6c   : > { %s668_s22 = scalar_lea.vmem [#allocation9], %s5036_s26  ;;  %s5051_s21 = sshll.u32 %s5036_s26, 6 }
  0x6d   : > { %s675_s30 = sshll.u32 %s668_s22, 4  ;;  %s6082_s18 = scalar_lea.sflag [#allocation10], %s5004_s27  ;;  %s5048_s30 = int_to_ptr.vmem [resolvable:$true] %s675_s30 }
  0x6e   : > { %p6141_p7 = scmp.ne.s32.totalorder %s6130_s10, 0 }
  0x71   : > { %s5045_s29 = scalar_lea.hbm %s6140_s28, %s5039_s0  ;;  %s4076_s2 = scalar_lea.hbm %s6140_s28, 64 }
  0x72   : > { %s4072_s8 = scalar_lea.hbm %s5045_s29, 16  ;;  %p4077_p10 = scmp.lt.u32.totalorder %s5045_s29, %s6140_s28 }
  0x73   : > { %p4073_p4 = scmp.ne.s32.totalorder %s5045_s29, %s4072_s8  ;;  %p4078_p9 = scmp.lt.u32.totalorder %s4076_s2, %s4072_s8 }
  0x74   : > { %p4080_p5 = scmp.lt.u32.totalorder %s4072_s8, %s5045_s29 }
  0x75   : > { %p4074_p12 = pnand %p4073_p4, %p6141_p7  ;;  %p4079_p11 = por %p4078_p9, %p4077_p10 }
  0x77   : > { %p4075_p13 = pneg %p4074_p12  ;;  %p4081_p8 = por %p4080_p5, %p4079_p11 }
  0x79   : > { %p4082_p2 = pnand %p4081_p8, %p4075_p13 }
  0x7b   : > { %4085 = shalt.err (!%p4082_p2)
}
  0x7c   : > { %s4086_s22 = scalar_lea.vmem %s5048_s30, 16  ;;  %s4737_s12 = smov [#allocation9]  }
  0x7d   : > { %p4087_p1 = scmp.ne.s32.totalorder %s5048_s30, %s4086_s22  ;;  %s4090_s14 = sshll.u32 %s4737_s12, 4  ;;  %s4091_s14 = int_to_ptr.vmem [resolvable:$false] %s4090_s14 }
  0x7e   : > { %s4092_s16 = scalar_lea.vmem %s4091_s14, 32  ;;  %p4093_p4 = scmp.lt.s32.totalorder %s5048_s30, %s4091_s14 }
  0x7f   : > { %p4088_p6 = pnand %p4087_p1, %p6141_p7  ;;  %p4094_p12 = scmp.lt.s32.totalorder %s4092_s16, %s4086_s22 }
  0x81   : > { %p4089_p0 = pneg %p4088_p6  ;;  %p4095_p10 = por %p4094_p12, %p4093_p4 }
  0x83   : > { %p4096_p9 = pnand %p4095_p10, %p4089_p0 }
  0x85   : > { %4099 = shalt.err (!%p4096_p9)
}
  0x86   : > { %3739 = dma.hbm_to_vmem [thread:$0]  (%p6141_p7), %s5045_s29, 16, %s5048_s30, %s6082_s18  }
  0x87   : > { %s5078_s20 = sshll.u32 %s4726_s24, 10  ;;  %s6142_s5 = sld [smem:[#allocation66_spill]] }
  0x88   : > { %s703_s12 = scalar_lea.vmem [#allocation12], %s5051_s21  ;;  %s6084_s16 = scalar_lea.sflag [#allocation13], %s5004_s27 }
  0x89   : > { %s710_s14 = sshll.u32 %s703_s12, 4  ;;  %s5087_s14 = int_to_ptr.vmem [resolvable:$true] %s710_s14 }
  0x8d   : > { %s5084_s22 = scalar_lea.hbm %s6142_s5, %s5078_s20  ;;  %s4104_s8 = scalar_lea.hbm %s6142_s5, 4096 }
  0x8e   : > { %s4100_s28 = scalar_lea.hbm %s5084_s22, 1024  ;;  %p4105_p8 = scmp.lt.u32.totalorder %s5084_s22, %s6142_s5 }
  0x8f   : > { %p4101_p13 = scmp.ne.s32.totalorder %s5084_s22, %s4100_s28  ;;  %p4106_p2 = scmp.lt.u32.totalorder %s4104_s8, %s4100_s28 }
  0x90   : > { %p4108_p6 = scmp.lt.u32.totalorder %s4100_s28, %s5084_s22 }
  0x91   : > { %p4102_p11 = pnand %p4101_p13, %p6141_p7  ;;  %p4107_p1 = por %p4106_p2, %p4105_p8 }
  0x93   : > { %p4103_p5 = pneg %p4102_p11  ;;  %p4109_p0 = por %p4108_p6, %p4107_p1 }
  0x95   : > { %p4110_p4 = pnand %p4109_p0, %p4103_p5 }
  0x97   : > { %4113 = shalt.err (!%p4110_p4)
}
  0x98   : > { %s4114_s12 = scalar_lea.vmem %s5087_s14, 1024  ;;  %s4738_s29 = smov [#allocation12]  }
  0x99   : > { %p4115_p12 = scmp.ne.s32.totalorder %s5087_s14, %s4114_s12  ;;  %s4118_s30 = sshll.u32 %s4738_s29, 4  ;;  %s4119_s30 = int_to_ptr.vmem [resolvable:$false] %s4118_s30 }
  0x9a   : > { %s4120_s18 = scalar_lea.vmem %s4119_s30, 2048  ;;  %p4121_p13 = scmp.lt.s32.totalorder %s5087_s14, %s4119_s30 }
  0x9b   : > { %p4116_p10 = pnand %p4115_p12, %p6141_p7  ;;  %p4122_p11 = scmp.lt.s32.totalorder %s4120_s18, %s4114_s12 }
  0x9d   : > { %p4117_p9 = pneg %p4116_p10  ;;  %p4123_p8 = por %p4122_p11, %p4121_p13 }
  0x9f   : > { %p4124_p2 = pnand %p4123_p8, %p4117_p9 }
  0xa1   : > { %4127 = shalt.err (!%p4124_p2)
}
  0xa2   : > { %s6091_s28 = smov 64   ;;  %s6092_s8 = smov 4  }
  0xa3   : > { %3741 = dma.hbm_to_vmem [thread:$0]  (%p6141_p7), %s5084_s22, 1024, %s5087_s14, %s6084_s16, %s6091_s28, %s6091_s28, %s6092_s8  }
  0xa4   : > { %s6143_s7 = sld [smem:[#allocation68_spill]]  ;;  %s741_s30 = scalar_lea.vmem [#allocation15], %s5051_s21 }
  0xa5   : > { %s748_s18 = sshll.u32 %s741_s30, 4  ;;  %s6085_s5 = scalar_lea.sflag [#allocation16], %s5004_s27  ;;  %s5123_s18 = int_to_ptr.vmem [resolvable:$true] %s748_s18 }
  0xaa   : > { %s5120_s29 = scalar_lea.hbm %s6143_s7, %s5078_s20  ;;  %s4132_s2 = scalar_lea.hbm %s6143_s7, 4096 }
  0xab   : > { %s4128_s1 = scalar_lea.hbm %s5120_s29, 1024  ;;  %p4133_p0 = scmp.lt.u32.totalorder %s5120_s29, %s6143_s7 }
  0xac   : > { %p4129_p5 = scmp.ne.s32.totalorder %s5120_s29, %s4128_s1  ;;  %p4134_p4 = scmp.lt.u32.totalorder %s4132_s2, %s4128_s1 }
  0xad   : > { %p4136_p10 = scmp.lt.u32.totalorder %s4128_s1, %s5120_s29 }
  0xae   : > { %p4130_p1 = pnand %p4129_p5, %p6141_p7  ;;  %p4135_p12 = por %p4134_p4, %p4133_p0 }
  0xb0   : > { %p4131_p6 = pneg %p4130_p1  ;;  %p4137_p9 = por %p4136_p10, %p4135_p12 }
  0xb2   : > { %p4138_p13 = pnand %p4137_p9, %p4131_p6 }
  0xb4   : > { %4141 = shalt.err (!%p4138_p13)
}
  0xb5   : > { %s4142_s30 = scalar_lea.vmem %s5123_s18, 1024  ;;  %s4741_s22 = smov [#allocation15]  }
  0xb6   : > { %p4143_p11 = scmp.ne.s32.totalorder %s5123_s18, %s4142_s30  ;;  %s4146_s14 = sshll.u32 %s4741_s22, 4  ;;  %s4147_s14 = int_to_ptr.vmem [resolvable:$false] %s4146_s14 }
  0xb7   : > { %s4148_s16 = scalar_lea.vmem %s4147_s14, 2048  ;;  %p4149_p5 = scmp.lt.s32.totalorder %s5123_s18, %s4147_s14 }
  0xb8   : > { %p4144_p8 = pnand %p4143_p11, %p6141_p7  ;;  %p4150_p1 = scmp.lt.s32.totalorder %s4148_s16, %s4142_s30 }
  0xba   : > { %p4145_p2 = pneg %p4144_p8  ;;  %p4151_p0 = por %p4150_p1, %p4149_p5 }
  0xbc   : > { %p4152_p4 = pnand %p4151_p0, %p4145_p2 }
  0xbe   : > { %4155 = shalt.err (!%p4152_p4)
}
  0xbf   : > { %3743 = dma.hbm_to_vmem [thread:$0]  (%p6141_p7), %s5120_s29, 1024, %s5123_s18, %s6085_s5, %s6091_s28, %s6091_s28, %s6092_s8  }
  0xc0   : > { %s6144_s9 = sld [smem:[#allocation70_spill]]  ;;  %s779_s30 = scalar_lea.vmem [#allocation18], %s5051_s21 }
  0xc1   : > { %s786_s22 = sshll.u32 %s779_s30, 4  ;;  %s6087_s14 = scalar_lea.sflag [#allocation19], %s5004_s27  ;;  %s5159_s22 = int_to_ptr.vmem [resolvable:$true] %s786_s22 }
  0xc6   : > { %s5156_s12 = scalar_lea.hbm %s6144_s9, %s5078_s20  ;;  %s4160_s1 = scalar_lea.hbm %s6144_s9, 4096 }
  0xc7   : > { %s4156_s16 = scalar_lea.hbm %s5156_s12, 1024  ;;  %p4161_p9 = scmp.lt.u32.totalorder %s5156_s12, %s6144_s9 }
  0xc8   : > { %p4157_p6 = scmp.ne.s32.totalorder %s5156_s12, %s4156_s16  ;;  %p4162_p13 = scmp.lt.u32.totalorder %s4160_s1, %s4156_s16 }
  0xc9   : > { %p4164_p8 = scmp.lt.u32.totalorder %s4156_s16, %s5156_s12 }
  0xca   : > { %p4158_p12 = pnand %p4157_p6, %p6141_p7  ;;  %p4163_p11 = por %p4162_p13, %p4161_p9 }
  0xcc   : > { %p4159_p10 = pneg %p4158_p12  ;;  %p4165_p2 = por %p4164_p8, %p4163_p11 }
  0xce   : > { %p4166_p5 = pnand %p4165_p2, %p4159_p10 }
  0xd0   : > { %4169 = shalt.err (!%p4166_p5)
}
  0xd1   : > { %s4170_s30 = scalar_lea.vmem %s5159_s22, 1024  ;;  %s4742_s29 = smov [#allocation18]  }
  0xd2   : > { %p4171_p1 = scmp.ne.s32.totalorder %s5159_s22, %s4170_s30  ;;  %s4174_s18 = sshll.u32 %s4742_s29, 4  ;;  %s4175_s18 = int_to_ptr.vmem [resolvable:$false] %s4174_s18 }
  0xd3   : > { %s4176_s5 = scalar_lea.vmem %s4175_s18, 2048  ;;  %p4177_p6 = scmp.lt.s32.totalorder %s5159_s22, %s4175_s18 }
  0xd4   : > { %p4172_p0 = pnand %p4171_p1, %p6141_p7  ;;  %p4178_p12 = scmp.lt.s32.totalorder %s4176_s5, %s4170_s30 }
  0xd6   : > { %p4173_p4 = pneg %p4172_p0  ;;  %p4179_p9 = por %p4178_p12, %p4177_p6 }
  0xd8   : > { %p4180_p13 = pnand %p4179_p9, %p4173_p4 }
  0xda   : > { %4183 = shalt.err (!%p4180_p13)
}
  0xdb   : > { %3745 = dma.hbm_to_vmem [thread:$0]  (%p6141_p7), %s5156_s12, 1024, %s5159_s22, %s6087_s14, %s6091_s28, %s6091_s28, %s6092_s8  }
  0xdc   : > { %s5192_s2 = scalar_lea.hbm %s6039_s11, %s5078_s20  ;;  %s817_s30 = scalar_lea.vmem [#allocation21], %s5051_s21 }
  0xdd   : > { %s824_s29 = sshll.u32 %s817_s30, 4  ;;  %s6086_s18 = scalar_lea.sflag [#allocation22], %s5004_s27  ;;  %s5195_s29 = int_to_ptr.vmem [resolvable:$true] %s824_s29 }
  0xde   : > { %s4184_s5 = scalar_lea.hbm %s5192_s2, 1024  ;;  %s4188_s16 = scalar_lea.hbm %s6039_s11, 4096 }
  0xdf   : > { %p4185_p10 = scmp.ne.s32.totalorder %s5192_s2, %s4184_s5  ;;  %p4189_p2 = scmp.lt.u32.totalorder %s5192_s2, %s6039_s11 }
  0xe0   : > { %p4190_p5 = scmp.lt.u32.totalorder %s4188_s16, %s4184_s5  ;;  %p4192_p0 = scmp.lt.u32.totalorder %s4184_s5, %s5192_s2 }
  0xe1   : > { %p4186_p11 = pnand %p4185_p10, %p6141_p7 }
  0xe2   : > { %p4191_p1 = por %p4190_p5, %p4189_p2 }
  0xe3   : > { %p4187_p8 = pneg %p4186_p11 }
  0xe4   : > { %p4193_p4 = por %p4192_p0, %p4191_p1 }
  0xe6   : > { %p4194_p6 = pnand %p4193_p4, %p4187_p8 }
  0xe8   : > { %4197 = shalt.err (!%p4194_p6)
}
  0xe9   : > { %s4198_s21 = scalar_lea.vmem %s5195_s29, 1024  ;;  %s4743_s30 = smov [#allocation21]  }
  0xea   : > { %p4199_p12 = scmp.ne.s32.totalorder %s5195_s29, %s4198_s21  ;;  %s4202_s12 = sshll.u32 %s4743_s30, 4  ;;  %s4203_s12 = int_to_ptr.vmem [resolvable:$false] %s4202_s12 }
  0xeb   : > { %s4204_s22 = scalar_lea.vmem %s4203_s12, 2048  ;;  %p4205_p10 = scmp.lt.s32.totalorder %s5195_s29, %s4203_s12 }
  0xec   : > { %p4200_p9 = pnand %p4199_p12, %p6141_p7  ;;  %p4206_p11 = scmp.lt.s32.totalorder %s4204_s22, %s4198_s21 }
  0xee   : > { %p4201_p13 = pneg %p4200_p9  ;;  %p4207_p2 = por %p4206_p11, %p4205_p10 }
  0xf0   : > { %p4208_p5 = pnand %p4207_p2, %p4201_p13 }
  0xf2   : > { %4211 = shalt.err (!%p4208_p5)
}
  0xf3   : > { %3747 = dma.hbm_to_vmem [thread:$0]  (%p6141_p7), %s5192_s2, 1024, %s5195_s29, %s6086_s18, %s6091_s28, %s6091_s28, %s6092_s8  }
  0xf4   : > { %s5228_s20 = scalar_lea.hbm %s6041_s13, %s5039_s0  ;;  %s854_s1 = scalar_lea.vmem [#allocation24], %s5036_s26 }
  0xf5   : > { %s861_s21 = sshll.u32 %s854_s1, 4  ;;  %s6090_s30 = scalar_lea.sflag [#allocation25], %s5004_s27  ;;  %s862_s21 = int_to_ptr.vmem [resolvable:$true] %s861_s21 }
  0xf6   : > { %s4212_s12 = scalar_lea.hbm %s5228_s20, 16  ;;  %s4216_s29 = scalar_lea.hbm %s6041_s13, 64 }
  0xf7   : > { %p4213_p8 = scmp.ne.s32.totalorder %s5228_s20, %s4212_s12  ;;  %p4217_p4 = scmp.lt.u32.totalorder %s5228_s20, %s6041_s13 }
  0xf8   : > { %p4218_p6 = scmp.lt.u32.totalorder %s4216_s29, %s4212_s12  ;;  %p4220_p9 = scmp.lt.u32.totalorder %s4212_s12, %s5228_s20 }
  0xf9   : > { %p4214_p1 = pnand %p4213_p8, %p6141_p7 }
  0xfa   : > { %p4219_p12 = por %p4218_p6, %p4217_p4 }
  0xfb   : > { %p4215_p0 = pneg %p4214_p1 }
  0xfc   : > { %p4221_p13 = por %p4220_p9, %p4219_p12 }
  0xfe   : > { %p4222_p10 = pnand %p4221_p13, %p4215_p0 }
 0x100   : > { %4225 = shalt.err (!%p4222_p10)
}
 0x101   : > { %s4226_s1 = scalar_lea.vmem %s862_s21, 16  ;;  %s4744_s18 = smov [#allocation24]  }
 0x102   : > { %p4227_p11 = scmp.ne.s32.totalorder %s862_s21, %s4226_s1  ;;  %s4230_s14 = sshll.u32 %s4744_s18, 4  ;;  %s4231_s14 = int_to_ptr.vmem [resolvable:$false] %s4230_s14 }
 0x103   : > { %s4232_s22 = scalar_lea.vmem %s4231_s14, 32  ;;  %p4233_p8 = scmp.lt.s32.totalorder %s862_s21, %s4231_s14 }
 0x104   : > { %p4228_p2 = pnand %p4227_p11, %p6141_p7  ;;  %p4234_p1 = scmp.lt.s32.totalorder %s4232_s22, %s4226_s1 }
 0x106   : > { %p4229_p5 = pneg %p4228_p2  ;;  %p4235_p3 = por %p4234_p1, %p4233_p8 }
 0x108   : > { %p4236_p4 = pnand %p4235_p3, %p4229_p5 }
 0x10a   : > { %4239 = shalt.err (!%p4236_p4)
}
 0x10b   : > { %3749 = dma.hbm_to_vmem [thread:$0]  (%p6141_p7), %s5228_s20, 16, %s862_s21, %s6090_s30  }
 0x10c   : > { %s3400_s18 = sshll.u32 %s5036_s26, 8  ;;  %s3542_s12 = sshll.u32 %s4726_s24, 12 }
 0x10d   : > { %s5258_s29 = scalar_lea.hbm %s6043_s15, %s3542_s12  ;;  %s889_s5 = scalar_lea.vmem [#allocation27], %s3400_s18 }
 0x10e   : > { %s896_s16 = sshll.u32 %s889_s5, 4  ;;  %s6093_s1 = scalar_lea.sflag [#allocation28], %s5004_s27  ;;  %s5262_s16 = int_to_ptr.vmem [resolvable:$true] %s896_s16 }
 0x10f   : > { %s4240_s22 = scalar_lea.hbm %s5258_s29, 4096  ;;  %s4244_s14 = scalar_lea.hbm %s6043_s15, 16384 }
 0x110   : > { %p4241_p3 = scmp.ne.s32.totalorder %s5258_s29, %s4240_s22  ;;  %p4245_p12 = scmp.lt.u32.totalorder %s5258_s29, %s6043_s15 }
 0x111   : > { %p4246_p9 = scmp.lt.u32.totalorder %s4244_s14, %s4240_s22  ;;  %p4248_p10 = scmp.lt.u32.totalorder %s4240_s22, %s5258_s29 }
 0x112   : > { %p4242_p0 = pnand %p4241_p3, %p6141_p7 }
 0x113   : > { %p4247_p13 = por %p4246_p9, %p4245_p12 }
 0x114   : > { %p4243_p6 = pneg %p4242_p0 }
 0x115   : > { %p4249_p11 = por %p4248_p10, %p4247_p13 }
 0x117   : > { %p4250_p2 = pnand %p4249_p11, %p4243_p6 }
 0x119   : > { %4253 = shalt.err (!%p4250_p2)
}
 0x11a   : > { %s4254_s5 = scalar_lea.vmem %s5262_s16, 4096  ;;  %s4745_s20 = smov [#allocation27]  }
 0x11b   : > { %p4255_p5 = scmp.ne.s32.totalorder %s5262_s16, %s4254_s5  ;;  %s4258_s21 = sshll.u32 %s4745_s20, 4  ;;  %s4259_s21 = int_to_ptr.vmem [resolvable:$false] %s4258_s21 }
 0x11c   : > { %s4260_s30 = scalar_lea.vmem %s4259_s21, 8192  ;;  %p4261_p4 = scmp.lt.s32.totalorder %s5262_s16, %s4259_s21 }
 0x11d   : > { %p4256_p8 = pnand %p4255_p5, %p6141_p7  ;;  %p4262_p3 = scmp.lt.s32.totalorder %s4260_s30, %s4254_s5 }
 0x11f   : > { %p4257_p1 = pneg %p4256_p8  ;;  %p4263_p0 = por %p4262_p3, %p4261_p4 }
 0x121   : > { %p4264_p12 = pnand %p4263_p0, %p4257_p1 }
 0x123   : > { %4267 = shalt.err (!%p4264_p12)
}
 0x124   : > { %s4746_s22 = smov 256   ;;  %s4747_s14 = smov 16  }
 0x125   : > { %3751 = dma.hbm_to_vmem [thread:$0]  (%p6141_p7), %s5258_s29, 4096, %s5262_s16, %s6093_s1, %s4746_s22, %s4746_s22, %s4747_s14  }
 0x126   : > { %s5293_s5 = scalar_lea.hbm %s6045_s17, %s3542_s12  ;;  %s929_s21 = scalar_lea.vmem [#allocation30], %s3400_s18 }
 0x127   : > { %s936_s30 = sshll.u32 %s929_s21, 4  ;;  %s6095_s28 = scalar_lea.sflag [#allocation31], %s5004_s27  ;;  %s5297_s30 = int_to_ptr.vmem [resolvable:$true] %s936_s30 }
 0x128   : > { %s4268_s8 = scalar_lea.hbm %s5293_s5, 4096  ;;  %s4272_s12 = scalar_lea.hbm %s6045_s17, 16384 }
 0x129   : > { %p4269_p6 = scmp.ne.s32.totalorder %s5293_s5, %s4268_s8  ;;  %p4273_p10 = scmp.lt.u32.totalorder %s5293_s5, %s6045_s17 }
 0x12a   : > { %p4274_p11 = scmp.lt.u32.totalorder %s4272_s12, %s4268_s8  ;;  %p4276_p5 = scmp.lt.u32.totalorder %s4268_s8, %s5293_s5 }
 0x12b   : > { %p4270_p9 = pnand %p4269_p6, %p6141_p7 }
 0x12c   : > { %p4275_p2 = por %p4274_p11, %p4273_p10 }
 0x12d   : > { %p4271_p13 = pneg %p4270_p9 }
 0x12e   : > { %p4277_p8 = por %p4276_p5, %p4275_p2 }
 0x130   : > { %p4278_p1 = pnand %p4277_p8, %p4271_p13 }
 0x132   : > { %4281 = shalt.err (!%p4278_p1)
}
 0x133   : > { %s4282_s18 = scalar_lea.vmem %s5297_s30, 4096  ;;  %s4748_s2 = smov [#allocation30]  }
 0x134   : > { %p4283_p4 = scmp.ne.s32.totalorder %s5297_s30, %s4282_s18  ;;  %s4286_s20 = sshll.u32 %s4748_s2, 4  ;;  %s4287_s20 = int_to_ptr.vmem [resolvable:$false] %s4286_s20 }
 0x135   : > { %s4288_s21 = scalar_lea.vmem %s4287_s20, 8192  ;;  %p4289_p12 = scmp.lt.s32.totalorder %s5297_s30, %s4287_s20 }
 0x136   : > { %p4284_p3 = pnand %p4283_p4, %p6141_p7  ;;  %p4290_p6 = scmp.lt.s32.totalorder %s4288_s21, %s4282_s18 }
 0x138   : > { %p4285_p0 = pneg %p4284_p3  ;;  %p4291_p9 = por %p4290_p6, %p4289_p12 }
 0x13a   : > { %p4292_p10 = pnand %p4291_p9, %p4285_p0 }
 0x13c   : > { %4295 = shalt.err (!%p4292_p10)
}
 0x13d   : > { %s6145_s8 = smov 4   ;;  %s6146_s29 = smov 64  }
 0x13e   : > { %3753 = dma.hbm_to_vmem [thread:$0]  (%p6141_p7), %s5293_s5, 4096, %s5297_s30, %s6095_s28, %s6146_s29, %s6146_s29, %s6145_s8  }
 0x13f   : > { %s6147_s16 = sshll.u32 %s4730_s25, 7  ;;  %s6148_s14 = sld [smem:[#allocation61_spill]] }
 0x140   : > { %s6149_s2 = sshll.u32 %s4999_s19, 3  ;;  %s3379_s1 = sshll.u32 %s4730_s25, 4 }
 0x141   : > { %s616_s20 = scalar_lea.vmem [#allocation3], %s6149_s2  ;;  %s613_s7 = scalar_lea.sflag [#allocation4], %s4999_s19 }
 0x142   : > { %s623_s21 = sshll.u32 %s616_s20, 4  ;;  %p6150_p11 = scmp.ne.s32.totalorder %s6124_s23, 0  ;;  %s5335_s21 = int_to_ptr.vmem [resolvable:$true] %s623_s21 }
 0x145   : > { %s5331_s18 = scalar_lea.hbm %s6148_s14, %s6147_s16  ;;  %s4300_s8 = scalar_lea.hbm %s6148_s14, 256 }
 0x146   : > { %s4296_s9 = scalar_lea.hbm %s5331_s18, 128  ;;  %p4301_p8 = scmp.lt.u32.totalorder %s5331_s18, %s6148_s14 }
 0x147   : > { %p4297_p13 = scmp.ne.s32.totalorder %s5331_s18, %s4296_s9  ;;  %p4302_p1 = scmp.lt.u32.totalorder %s4300_s8, %s4296_s9 }
 0x148   : > { %p4304_p3 = scmp.lt.u32.totalorder %s4296_s9, %s5331_s18 }
 0x149   : > { %p4298_p2 = pnand %p4297_p13, %p6150_p11  ;;  %p4303_p4 = por %p4302_p1, %p4301_p8 }
 0x14b   : > { %p4299_p5 = pneg %p4298_p2  ;;  %p4305_p0 = por %p4304_p3, %p4303_p4 }
 0x14d   : > { %p4306_p12 = pnand %p4305_p0, %p4299_p5 }
 0x14f   : > { %4309 = shalt.err (!%p4306_p12)
}
 0x150   : > { %s4310_s12 = scalar_lea.vmem %s5335_s21, 128  ;;  %s4749_s22 = smov [#allocation3]  }
 0x151   : > { %p4311_p6 = scmp.ne.s32.totalorder %s5335_s21, %s4310_s12  ;;  %s4314_s2 = sshll.u32 %s4749_s22, 4  ;;  %s4315_s2 = int_to_ptr.vmem [resolvable:$false] %s4314_s2 }
 0x152   : > { %s4316_s20 = scalar_lea.vmem %s4315_s2, 256  ;;  %p4317_p13 = scmp.lt.s32.totalorder %s5335_s21, %s4315_s2 }
 0x153   : > { %p4312_p9 = pnand %p4311_p6, %p6150_p11  ;;  %p4318_p2 = scmp.lt.s32.totalorder %s4316_s20, %s4310_s12 }
 0x155   : > { %p4313_p10 = pneg %p4312_p9  ;;  %p4319_p8 = por %p4318_p2, %p4317_p13 }
 0x157   : > { %p4320_p1 = pnand %p4319_p8, %p4313_p10 }
 0x159   : > { %4323 = shalt.err (!%p4320_p1)
}
 0x15a   : > { %3736 = dma.hbm_to_vmem [thread:$0]  (%p6150_p11), %s5331_s18, 128, %s5335_s21, %s613_s7  }
 0x15b   : > { %s6151_s30 = sld [smem:[#allocation63_spill]]  ;;  %s651_s16 = scalar_lea.vmem [#allocation8], %s4999_s19 }
 0x15c   : > { %s658_s12 = sshll.u32 %s651_s16, 4  ;;  %s659_s12 = int_to_ptr.vmem [resolvable:$true] %s658_s12 }
 0x161   : > { %s6152_s8 = smov %s6151_s30  ;;  %s5365_s29 = scalar_lea.hbm %s6151_s30, %s3379_s1 }
 0x162   : > { %s4324_s22 = scalar_lea.hbm %s5365_s29, 16  ;;  %s4328_s18 = scalar_lea.hbm %s6152_s8, 32 }
 0x163   : > { %p4325_p5 = scmp.ne.s32.totalorder %s5365_s29, %s4324_s22  ;;  %p4329_p0 = scmp.lt.u32.totalorder %s5365_s29, %s6152_s8 }
 0x164   : > { %p4330_p12 = scmp.lt.u32.totalorder %s4328_s18, %s4324_s22  ;;  %p4332_p9 = scmp.lt.u32.totalorder %s4324_s22, %s5365_s29 }
 0x165   : > { %p4326_p4 = pnand %p4325_p5, %p6150_p11 }
 0x166   : > { %p4331_p6 = por %p4330_p12, %p4329_p0 }
 0x167   : > { %p4327_p3 = pneg %p4326_p4 }
 0x168   : > { %p4333_p10 = por %p4332_p9, %p4331_p6 }
 0x16a   : > { %p4334_p13 = pnand %p4333_p10, %p4327_p3 }
 0x16c   : > { %4337 = shalt.err (!%p4334_p13)
}
 0x16d   : > { %s4338_s19 = scalar_lea.vmem %s659_s12, 16  ;;  %s4750_s1 = smov [#allocation8]  }
 0x16e   : > { %p4339_p2 = scmp.ne.s32.totalorder %s659_s12, %s4338_s19  ;;  %s4342_s9 = sshll.u32 %s4750_s1, 4  ;;  %s4343_s9 = int_to_ptr.vmem [resolvable:$false] %s4342_s9 }
 0x16f   : > { %s4344_s5 = scalar_lea.vmem %s4343_s9, 32  ;;  %p4345_p5 = scmp.lt.s32.totalorder %s659_s12, %s4343_s9 }
 0x170   : > { %p4340_p8 = pnand %p4339_p2, %p6150_p11  ;;  %p4346_p4 = scmp.lt.s32.totalorder %s4344_s5, %s4338_s19 }
 0x172   : > { %p4341_p1 = pneg %p4340_p8  ;;  %p4347_p7 = por %p4346_p4, %p4345_p5 }
 0x174   : > { %p4348_p0 = pnand %p4347_p7, %p4341_p1 }
 0x176   : > { %4351 = shalt.err (!%p4348_p0)
}
 0x177   : > { %s6153_s30 = scalar_lea.sflag [#allocation7], %s5004_s27  ;;  %s6154_s4 = sld [smem:[#allocation65_spill]] }
 0x178   : > { %3738 = dma.hbm_to_vmem [thread:$0]  (%p6150_p11), %s5365_s29, 16, %s659_s12, %s6153_s30  }
 0x179   : > { %s685_s7 = scalar_lea.vmem [#allocation11], %s5036_s26  ;;  %p6155_p3 = scmp.ne.s32.totalorder %s6130_s10, 0 }
 0x17a   : > { %s692_s18 = sshll.u32 %s685_s7, 4  ;;  %s693_s18 = int_to_ptr.vmem [resolvable:$true] %s692_s18 }
 0x17d   : > { %s5391_s2 = scalar_lea.hbm %s6154_s4, %s5039_s0  ;;  %s4356_s29 = scalar_lea.hbm %s6154_s4, 64 }
 0x17e   : > { %s4352_s23 = scalar_lea.hbm %s5391_s2, 16  ;;  %p4357_p11 = scmp.lt.u32.totalorder %s5391_s2, %s6154_s4 }
 0x17f   : > { %p4353_p7 = scmp.ne.s32.totalorder %s5391_s2, %s4352_s23  ;;  %p4358_p9 = scmp.lt.u32.totalorder %s4356_s29, %s4352_s23 }
 0x180   : > { %p4360_p13 = scmp.lt.u32.totalorder %s4352_s23, %s5391_s2 }
 0x181   : > { %p4354_p12 = pnand %p4353_p7, %p6155_p3  ;;  %p4359_p10 = por %p4358_p9, %p4357_p11 }
 0x183   : > { %p4355_p6 = pneg %p4354_p12  ;;  %p4361_p2 = por %p4360_p13, %p4359_p10 }
 0x185   : > { %p4362_p8 = pnand %p4361_p2, %p4355_p6 }
 0x187   : > { %4365 = shalt.err (!%p4362_p8)
}
 0x188   : > { %s4366_s1 = scalar_lea.vmem %s693_s18, 16  ;;  %s4751_s9 = smov [#allocation11]  }
 0x189   : > { %p4367_p1 = scmp.ne.s32.totalorder %s693_s18, %s4366_s1  ;;  %s4370_s5 = sshll.u32 %s4751_s9, 4  ;;  %s4371_s5 = int_to_ptr.vmem [resolvable:$false] %s4370_s5 }
 0x18a   : > { %s4372_s30 = scalar_lea.vmem %s4371_s5, 32  ;;  %p4373_p0 = scmp.lt.s32.totalorder %s693_s18, %s4371_s5 }
 0x18b   : > { %p4368_p5 = pnand %p4367_p1, %p6155_p3  ;;  %p4374_p7 = scmp.lt.s32.totalorder %s4372_s30, %s4366_s1 }
 0x18d   : > { %p4369_p4 = pneg %p4368_p5  ;;  %p4375_p12 = por %p4374_p7, %p4373_p0 }
 0x18f   : > { %p4376_p9 = pnand %p4375_p12, %p4369_p4 }
 0x191   : > { %4379 = shalt.err (!%p4376_p9)
}
 0x192   : > { %s6156_s16 = scalar_lea.sflag [#allocation10], %s5004_s27  ;;  %s6157_s6 = sld [smem:[#allocation67_spill]] }
 0x193   : > { %3740 = dma.hbm_to_vmem [thread:$0]  (%p6155_p3), %s5391_s2, 16, %s693_s18, %s6156_s16  }
 0x194   : > { %s723_s21 = scalar_lea.vmem [#allocation14], %s5036_s26 }
 0x195   : > { %s730_s20 = sshll.u32 %s723_s21, 4  ;;  %s731_s20 = int_to_ptr.vmem [resolvable:$true] %s730_s20 }
 0x198   : > { %s5417_s23 = scalar_lea.hbm %s6157_s6, %s5039_s0  ;;  %s4384_s2 = scalar_lea.hbm %s6157_s6, 64 }
 0x199   : > { %s4380_s29 = scalar_lea.hbm %s5417_s23, 16  ;;  %p4385_p13 = scmp.lt.u32.totalorder %s5417_s23, %s6157_s6 }
 0x19a   : > { %p4381_p6 = scmp.ne.s32.totalorder %s5417_s23, %s4380_s29  ;;  %p4386_p2 = scmp.lt.u32.totalorder %s4384_s2, %s4380_s29 }
 0x19b   : > { %p4388_p1 = scmp.lt.u32.totalorder %s4380_s29, %s5417_s23 }
 0x19c   : > { %p4382_p11 = pnand %p4381_p6, %p6155_p3  ;;  %p4387_p8 = por %p4386_p2, %p4385_p13 }
 0x19e   : > { %p4383_p10 = pneg %p4382_p11  ;;  %p4389_p5 = por %p4388_p1, %p4387_p8 }
 0x1a0   : > { %p4390_p4 = pnand %p4389_p5, %p4383_p10 }
 0x1a2   : > { %4393 = shalt.err (!%p4390_p4)
}
 0x1a3   : > { %s4394_s9 = scalar_lea.vmem %s731_s20, 16  ;;  %s4752_s5 = smov [#allocation14]  }
 0x1a4   : > { %p4395_p0 = scmp.ne.s32.totalorder %s731_s20, %s4394_s9  ;;  %s4398_s30 = sshll.u32 %s4752_s5, 4  ;;  %s4399_s30 = int_to_ptr.vmem [resolvable:$false] %s4398_s30 }
 0x1a5   : > { %s4400_s16 = scalar_lea.vmem %s4399_s30, 32  ;;  %p4401_p9 = scmp.lt.s32.totalorder %s731_s20, %s4399_s30 }
 0x1a6   : > { %p4396_p7 = pnand %p4395_p0, %p6155_p3  ;;  %p4402_p6 = scmp.lt.s32.totalorder %s4400_s16, %s4394_s9 }
 0x1a8   : > { %p4397_p12 = pneg %p4396_p7  ;;  %p4403_p11 = por %p4402_p6, %p4401_p9 }
 0x1aa   : > { %p4404_p2 = pnand %p4403_p11, %p4397_p12 }
 0x1ac   : > { %4407 = shalt.err (!%p4404_p2)
}
 0x1ad   : > { %s6158_s22 = scalar_lea.sflag [#allocation13], %s5004_s27  ;;  %s6159_s29 = sld [smem:[#allocation69_spill]] }
 0x1ae   : > { %3742 = dma.hbm_to_vmem [thread:$0]  (%p6155_p3), %s5417_s23, 16, %s731_s20, %s6158_s22  }
 0x1af   : > { %s761_s19 = scalar_lea.vmem [#allocation17], %s5036_s26 }
 0x1b0   : > { %s768_s2 = sshll.u32 %s761_s19, 4  ;;  %s769_s2 = int_to_ptr.vmem [resolvable:$true] %s768_s2 }
 0x1b3   : > { %s5443_s12 = scalar_lea.hbm %s6159_s29, %s5039_s0  ;;  %s4412_s23 = scalar_lea.hbm %s6159_s29, 64 }
 0x1b4   : > { %s4408_s18 = scalar_lea.hbm %s5443_s12, 16  ;;  %p4413_p1 = scmp.lt.u32.totalorder %s5443_s12, %s6159_s29 }
 0x1b5   : > { %p4409_p10 = scmp.ne.s32.totalorder %s5443_s12, %s4408_s18  ;;  %p4414_p5 = scmp.lt.u32.totalorder %s4412_s23, %s4408_s18 }
 0x1b6   : > { %p4416_p0 = scmp.lt.u32.totalorder %s4408_s18, %s5443_s12 }
 0x1b7   : > { %p4410_p13 = pnand %p4409_p10, %p6155_p3  ;;  %p4415_p4 = por %p4414_p5, %p4413_p1 }
 0x1b9   : > { %p4411_p8 = pneg %p4410_p13  ;;  %p4417_p7 = por %p4416_p0, %p4415_p4 }
 0x1bb   : > { %p4418_p12 = pnand %p4417_p7, %p4411_p8 }
 0x1bd   : > { %4421 = shalt.err (!%p4418_p12)
}
 0x1be   : > { %s4422_s30 = scalar_lea.vmem %s769_s2, 16  ;;  %s4753_s16 = smov [#allocation17]  }
 0x1bf   : > { %p4423_p9 = scmp.ne.s32.totalorder %s769_s2, %s4422_s30  ;;  %s4426_s22 = sshll.u32 %s4753_s16, 4  ;;  %s4427_s22 = int_to_ptr.vmem [resolvable:$false] %s4426_s22 }
 0x1c0   : > { %s4428_s7 = scalar_lea.vmem %s4427_s22, 32  ;;  %p4429_p2 = scmp.lt.s32.totalorder %s769_s2, %s4427_s22 }
 0x1c1   : > { %p4424_p6 = pnand %p4423_p9, %p6155_p3  ;;  %p4430_p10 = scmp.lt.s32.totalorder %s4428_s7, %s4422_s30 }
 0x1c3   : > { %p4425_p11 = pneg %p4424_p6  ;;  %p4431_p13 = por %p4430_p10, %p4429_p2 }
 0x1c5   : > { %p4432_p1 = pnand %p4431_p13, %p4425_p11 }
 0x1c7   : > { %4435 = shalt.err (!%p4432_p1)
}
 0x1c8   : > { %s6160_s21 = scalar_lea.sflag [#allocation16], %s5004_s27  ;;  %s6161_s1 = sld [smem:[#allocation71_spill]] }
 0x1c9   : > { %3744 = dma.hbm_to_vmem [thread:$0]  (%p6155_p3), %s5443_s12, 16, %s769_s2, %s6160_s21  }
 0x1ca   : > { %s799_s20 = scalar_lea.vmem [#allocation20], %s5036_s26 }
 0x1cb   : > { %s806_s5 = sshll.u32 %s799_s20, 4  ;;  %s807_s5 = int_to_ptr.vmem [resolvable:$true] %s806_s5 }
 0x1ce   : > { %s6162_s9 = smov %s6161_s1  ;;  %s5469_s23 = scalar_lea.hbm %s6161_s1, %s5039_s0 }
 0x1cf   : > { %s4436_s30 = scalar_lea.hbm %s5469_s23, 16  ;;  %s4440_s12 = scalar_lea.hbm %s6162_s9, 64 }
 0x1d0   : > { %p4437_p8 = scmp.ne.s32.totalorder %s5469_s23, %s4436_s30  ;;  %p4441_p0 = scmp.lt.u32.totalorder %s5469_s23, %s6162_s9 }
 0x1d1   : > { %p4442_p7 = scmp.lt.u32.totalorder %s4440_s12, %s4436_s30  ;;  %p4444_p9 = scmp.lt.u32.totalorder %s4436_s30, %s5469_s23 }
 0x1d2   : > { %p4438_p5 = pnand %p4437_p8, %p6155_p3 }
 0x1d3   : > { %p4443_p12 = por %p4442_p7, %p4441_p0 }
 0x1d4   : > { %p4439_p4 = pneg %p4438_p5 }
 0x1d5   : > { %p4445_p6 = por %p4444_p9, %p4443_p12 }
 0x1d7   : > { %p4446_p11 = pnand %p4445_p6, %p4439_p4 }
 0x1d9   : > { %4449 = shalt.err (!%p4446_p11)
}
 0x1da   : > { %s4450_s21 = scalar_lea.vmem %s807_s5, 16  ;;  %s4754_s19 = smov [#allocation20]  }
 0x1db   : > { %p4451_p2 = scmp.ne.s32.totalorder %s807_s5, %s4450_s21  ;;  %s4454_s18 = sshll.u32 %s4754_s19, 4  ;;  %s4455_s18 = int_to_ptr.vmem [resolvable:$false] %s4454_s18 }
 0x1dc   : > { %s4456_s1 = scalar_lea.vmem %s4455_s18, 32  ;;  %p4457_p1 = scmp.lt.s32.totalorder %s807_s5, %s4455_s18 }
 0x1dd   : > { %p4452_p10 = pnand %p4451_p2, %p6155_p3  ;;  %p4458_p8 = scmp.lt.s32.totalorder %s4456_s1, %s4450_s21 }
 0x1df   : > { %p4453_p13 = pneg %p4452_p10  ;;  %p4459_p5 = por %p4458_p8, %p4457_p1 }
 0x1e1   : > { %p4460_p0 = pnand %p4459_p5, %p4453_p13 }
 0x1e3   : > { %4463 = shalt.err (!%p4460_p0)
}
 0x1e4   : > { %s6163_s20 = scalar_lea.sflag [#allocation19], %s5004_s27  ;;  %s6164_s22 = sld [smem:[#allocation72_spill]] }
 0x1e5   : > { %3746 = dma.hbm_to_vmem [thread:$0]  (%p6155_p3), %s5469_s23, 16, %s807_s5, %s6163_s20  }
 0x1e6   : > { %s837_s7 = scalar_lea.vmem [#allocation23], %s5036_s26 }
 0x1e7   : > { %s844_s21 = sshll.u32 %s837_s7, 4  ;;  %s845_s21 = int_to_ptr.vmem [resolvable:$true] %s844_s21 }
 0x1ea   : > { %s6165_s12 = smov %s6164_s22  ;;  %s5495_s2 = scalar_lea.hbm %s6164_s22, %s5039_s0 }
 0x1eb   : > { %s4464_s19 = scalar_lea.hbm %s5495_s2, 16  ;;  %s4468_s23 = scalar_lea.hbm %s6165_s12, 64 }
 0x1ec   : > { %p4465_p4 = scmp.ne.s32.totalorder %s5495_s2, %s4464_s19  ;;  %p4469_p9 = scmp.lt.u32.totalorder %s5495_s2, %s6165_s12 }
 0x1ed   : > { %p4470_p6 = scmp.lt.u32.totalorder %s4468_s23, %s4464_s19  ;;  %p4472_p2 = scmp.lt.u32.totalorder %s4464_s19, %s5495_s2 }
 0x1ee   : > { %p4466_p7 = pnand %p4465_p4, %p6155_p3 }
 0x1ef   : > { %p4471_p11 = por %p4470_p6, %p4469_p9 }
 0x1f0   : > { %p4467_p12 = pneg %p4466_p7 }
 0x1f1   : > { %p4473_p10 = por %p4472_p2, %p4471_p11 }
 0x1f3   : > { %p4474_p13 = pnand %p4473_p10, %p4467_p12 }
 0x1f5   : > { %4477 = shalt.err (!%p4474_p13)
}
 0x1f6   : > { %s4478_s30 = scalar_lea.vmem %s845_s21, 16  ;;  %s4755_s16 = smov [#allocation23]  }
 0x1f7   : > { %p4479_p1 = scmp.ne.s32.totalorder %s845_s21, %s4478_s30  ;;  %s4482_s22 = sshll.u32 %s4755_s16, 4  ;;  %s4483_s22 = int_to_ptr.vmem [resolvable:$false] %s4482_s22 }
 0x1f8   : > { %s4484_s7 = scalar_lea.vmem %s4483_s22, 32  ;;  %p4485_p0 = scmp.lt.s32.totalorder %s845_s21, %s4483_s22 }
 0x1f9   : > { %p4480_p8 = pnand %p4479_p1, %p6155_p3  ;;  %p4486_p4 = scmp.lt.s32.totalorder %s4484_s7, %s4478_s30 }
 0x1fb   : > { %p4481_p5 = pneg %p4480_p8  ;;  %p4487_p7 = por %p4486_p4, %p4485_p0 }
 0x1fd   : > { %p4488_p6 = pnand %p4487_p7, %p4481_p5 }
 0x1ff   : > { %4491 = shalt.err (!%p4488_p6)
}
 0x200   : > { %s6166_s19 = scalar_lea.sflag [#allocation22], %s5004_s27  ;;  %s6167_s23 = sld [smem:[#allocation73_spill]] }
 0x201   : > { %3748 = dma.hbm_to_vmem [thread:$0]  (%p6155_p3), %s5495_s2, 16, %s845_s21, %s6166_s19  }
 0x202   : > { %s871_s30 = scalar_lea.vmem [#allocation26], %s5036_s26  ;;  %s3403_s22 = sshll.u32 %s5036_s26, 2 }
 0x203   : > { %s878_s16 = sshll.u32 %s871_s30, 4  ;;  %s879_s16 = int_to_ptr.vmem [resolvable:$true] %s878_s16 }
 0x206   : > { %s6168_s5 = smov %s6167_s23  ;;  %s5521_s20 = scalar_lea.hbm %s6167_s23, %s5039_s0 }
 0x207   : > { %s4492_s7 = scalar_lea.hbm %s5521_s20, 16  ;;  %s4496_s21 = scalar_lea.hbm %s6168_s5, 64 }
 0x208   : > { %p4493_p12 = scmp.ne.s32.totalorder %s5521_s20, %s4492_s7  ;;  %p4497_p2 = scmp.lt.u32.totalorder %s5521_s20, %s6168_s5 }
 0x209   : > { %p4498_p10 = scmp.lt.u32.totalorder %s4496_s21, %s4492_s7  ;;  %p4500_p1 = scmp.lt.u32.totalorder %s4492_s7, %s5521_s20 }
 0x20a   : > { %p4494_p9 = pnand %p4493_p12, %p6155_p3 }
 0x20b   : > { %p4499_p13 = por %p4498_p10, %p4497_p2 }
 0x20c   : > { %p4495_p11 = pneg %p4494_p9 }
 0x20d   : > { %p4501_p8 = por %p4500_p1, %p4499_p13 }
 0x20f   : > { %p4502_p5 = pnand %p4501_p8, %p4495_p11 }
 0x211   : > { %4505 = shalt.err (!%p4502_p5)
}
 0x212   : > { %s4506_s1 = scalar_lea.vmem %s879_s16, 16  ;;  %s4756_s23 = smov [#allocation26]  }
 0x213   : > { %p4507_p0 = scmp.ne.s32.totalorder %s879_s16, %s4506_s1  ;;  %s4510_s30 = sshll.u32 %s4756_s23, 4  ;;  %s4511_s30 = int_to_ptr.vmem [resolvable:$false] %s4510_s30 }
 0x214   : > { %s4512_s28 = scalar_lea.vmem %s4511_s30, 32  ;;  %p4513_p6 = scmp.lt.s32.totalorder %s879_s16, %s4511_s30 }
 0x215   : > { %p4508_p4 = pnand %p4507_p0, %p6155_p3  ;;  %p4514_p12 = scmp.lt.s32.totalorder %s4512_s28, %s4506_s1 }
 0x217   : > { %p4509_p7 = pneg %p4508_p4  ;;  %p4515_p9 = por %p4514_p12, %p4513_p6 }
 0x219   : > { %p4516_p2 = pnand %p4515_p9, %p4509_p7 }
 0x21b   : > { %4519 = shalt.err (!%p4516_p2)
}
 0x21c   : > { %s6169_s7 = scalar_lea.sflag [#allocation25], %s5004_s27  ;;  %s3543_s2 = sshll.u32 %s4726_s24, 6 }
 0x21d   : > { %3750 = dma.hbm_to_vmem [thread:$0]  (%p6155_p3), %s5521_s20, 16, %s879_s16, %s6169_s7  }
 0x21e   : > { %s6170_s18 = sld [smem:[#allocation74_spill]]  ;;  %s910_s1 = scalar_lea.vmem [#allocation29], %s3403_s22 }
 0x21f   : > { %s918_s30 = sshll.u32 %s910_s1, 4  ;;  %s919_s30 = int_to_ptr.vmem [resolvable:$true] %s918_s30 }
 0x224   : > { %s5548_s23 = scalar_lea.hbm %s6170_s18, %s3543_s2  ;;  %s4524_s7 = scalar_lea.hbm %s6170_s18, 256 }
 0x225   : > { %s4520_s28 = scalar_lea.hbm %s5548_s23, 64  ;;  %p4525_p1 = scmp.lt.u32.totalorder %s5548_s23, %s6170_s18 }
 0x226   : > { %p4521_p11 = scmp.ne.s32.totalorder %s5548_s23, %s4520_s28  ;;  %p4526_p8 = scmp.lt.u32.totalorder %s4524_s7, %s4520_s28 }
 0x227   : > { %p4528_p0 = scmp.lt.u32.totalorder %s4520_s28, %s5548_s23 }
 0x228   : > { %p4522_p10 = pnand %p4521_p11, %p6155_p3  ;;  %p4527_p5 = por %p4526_p8, %p4525_p1 }
 0x22a   : > { %p4523_p13 = pneg %p4522_p10  ;;  %p4529_p4 = por %p4528_p0, %p4527_p5 }
 0x22c   : > { %p4530_p7 = pnand %p4529_p4, %p4523_p13 }
 0x22e   : > { %4533 = shalt.err (!%p4530_p7)
}
 0x22f   : > { %s4534_s22 = scalar_lea.vmem %s919_s30, 64  ;;  %s4757_s19 = smov [#allocation29]  }
 0x230   : > { %p4535_p6 = scmp.ne.s32.totalorder %s919_s30, %s4534_s22  ;;  %s4538_s1 = sshll.u32 %s4757_s19, 4  ;;  %s4539_s1 = int_to_ptr.vmem [resolvable:$false] %s4538_s1 }
 0x231   : > { %s4540_s20 = scalar_lea.vmem %s4539_s1, 128  ;;  %p4541_p2 = scmp.lt.s32.totalorder %s919_s30, %s4539_s1 }
 0x232   : > { %p4536_p12 = pnand %p4535_p6, %p6155_p3  ;;  %p4542_p11 = scmp.lt.s32.totalorder %s4540_s20, %s4534_s22 }
 0x234   : > { %p4537_p9 = pneg %p4536_p12  ;;  %p4543_p10 = por %p4542_p11, %p4541_p2 }
 0x236   : > { %p4544_p1 = pnand %p4543_p10, %p4537_p9 }
 0x238   : > { %4547 = shalt.err (!%p4544_p1)
}
 0x239   : > { %s6171_s28 = scalar_lea.sflag [#allocation28], %s5004_s27  ;;  %s6172_s21 = sld [smem:[#allocation75_spill]] }
 0x23a   : > { %3752 = dma.hbm_to_vmem [thread:$0]  (%p6155_p3), %s5548_s23, 64, %s919_s30, %s6171_s28  }
 0x23b   : > { %s949_s22 = scalar_lea.vmem [#allocation32], %s5036_s26 }
 0x23c   : > { %s956_s19 = sshll.u32 %s949_s22, 4  ;;  %s957_s19 = int_to_ptr.vmem [resolvable:$true] %s956_s19 }
 0x23f   : > { %s6173_s4 = smov %s6172_s21  ;;  %s5575_s2 = scalar_lea.hbm %s6172_s21, %s5039_s0 }
 0x240   : > { %s4548_s1 = scalar_lea.hbm %s5575_s2, 16  ;;  %s4552_s23 = scalar_lea.hbm %s6173_s4, 64 }
 0x241   : > { %p4549_p13 = scmp.ne.s32.totalorder %s5575_s2, %s4548_s1  ;;  %p4553_p0 = scmp.lt.u32.totalorder %s5575_s2, %s6173_s4 }
 0x242   : > { %p4554_p4 = scmp.lt.u32.totalorder %s4552_s23, %s4548_s1  ;;  %p4556_p6 = scmp.lt.u32.totalorder %s4548_s1, %s5575_s2 }
 0x243   : > { %p4550_p8 = pnand %p4549_p13, %p6155_p3 }
 0x244   : > { %p4555_p7 = por %p4554_p4, %p4553_p0 }
 0x245   : > { %p4551_p5 = pneg %p4550_p8 }
 0x246   : > { %p4557_p12 = por %p4556_p6, %p4555_p7 }
 0x248   : > { %p4558_p9 = pnand %p4557_p12, %p4551_p5 }
 0x24a   : > { %4561 = shalt.err (!%p4558_p9)
}
 0x24b   : > { %s4562_s26 = scalar_lea.vmem %s957_s19, 16  ;;  %s4758_s0 = smov [#allocation32]  }
 0x24c   : > { %p4563_p2 = scmp.ne.s32.totalorder %s957_s19, %s4562_s26  ;;  %s4566_s16 = sshll.u32 %s4758_s0, 4  ;;  %s4567_s16 = int_to_ptr.vmem [resolvable:$false] %s4566_s16 }
 0x24d   : > { %s4568_s5 = scalar_lea.vmem %s4567_s16, 32  ;;  %p4569_p1 = scmp.lt.s32.totalorder %s957_s19, %s4567_s16 }
 0x24e   : > { %p4564_p11 = pnand %p4563_p2, %p6155_p3  ;;  %p4570_p13 = scmp.lt.s32.totalorder %s4568_s5, %s4562_s26 }
 0x250   : > { %p4565_p10 = pneg %p4564_p11  ;;  %p4571_p8 = por %p4570_p13, %p4569_p1 }
 0x252   : > { %p4572_p0 = pnand %p4571_p8, %p4565_p10 }
 0x254   : > { %4575 = shalt.err (!%p4572_p0)
}
 0x255   : > { %s6174_s7 = scalar_lea.sflag [#allocation31], %s5004_s27 }
 0x256   : > { %3754 = dma.hbm_to_vmem [thread:$0]  (%p6155_p3), %s5575_s2, 16, %s957_s19, %s6174_s7  }
 0x257 PF: > { %p3410_p5 = scmp.ge.s32.totalorder %s4734_s3, 1  ;;  %p961_p4 = scmp.lt.s32.totalorder %s4734_s3, 9 }
 0x259   : > { %p962_p7 = pnand %p3410_p5, %p961_p4 }
 0x25a   : > { %s6175_s21 = sld [smem:[#allocation48_spill]] (!%p962_p7)  ;;  %s6176_s22 = sld [smem:[#allocation55_spill]] (!%p962_p7) }
 0x25b   : > { %965 = sbr.rel (%p962_p7) target bundleno = 3017 (0xbc9), region = 96 }
 0x260   : > { %s5600_s1 = sand.u32 (!%p962_p7), 1, %s6175_s21   ;;  %p6177_p6 = scmp.ne.s32.totalorder (!%p962_p7), %s6176_s22, 0 }
 0x261   : > { %s5603_s20 = sshll.u32 (!%p962_p7), %s5600_s1, 3  ;;  %s968_s10 = scalar_lea.sflag (!%p962_p7), [#allocation4], %s5600_s1 }
 0x262   : > { %4649 = dma.done.wait (%p6177_p6), %s968_s10, 128  }
 0x263   : > { %4651 = vsyncadd (%p6177_p6), %s968_s10, 4294967168  ;;  %s6178_s2 = sld [smem:[#allocation52_spill]] }
 0x269   : > { %s5612_s19 = sand.u32 1, %s6178_s2  }
 0x26a   : > { %s977_s23 = scalar_lea.sflag [#allocation7], %s5612_s19 }
 0x26b   : > { %4653 = dma.done.wait (%p6177_p6), %s977_s23, 144  }
 0x26c   : > { %4655 = vsyncadd (%p6177_p6), %s977_s23, 4294967152  ;;  %s6179_s28 = sld [smem:[#allocation45_spill]]  ;;  %s6180_s26 = sld [smem:[#allocation58_spill]] }
 0x26d   : > { %s994_s5 = scalar_lea.sflag [#allocation10], %s5612_s19 }
 0x272   : > { %s5621_s0 = sand.u32 1, %s6179_s28   ;;  %p6181_p3 = scmp.ne.s32.totalorder %s6180_s26, 0 }
 0x274   : > { %4657 = dma.done.wait (%p6181_p3), %s994_s5, 32  }
 0x275   : > { %4659 = vsyncadd (%p6181_p3), %s994_s5, 4294967264  ;;  %s3413_s21 = sshll.u32 %s5621_s0, 6  ;;  %s1010_s10 = scalar_lea.sflag [#allocation13], %s5612_s19 }
 0x276   : > { %s5633_s2 = scalar_lea.vmem [#allocation12], %s3413_s21 }
 0x277   : > { %4661 = dma.done.wait (%p6181_p3), %s1010_s10, 1040  }
 0x278   : > { %4663 = vsyncadd (%p6181_p3), %s1010_s10, 4294966256  ;;  %s1027_s28 = scalar_lea.sflag [#allocation16], %s5612_s19  ;;  %s5641_s5 = scalar_lea.vmem [#allocation15], %s3413_s21 }
 0x279   : > { %4665 = dma.done.wait (%p6181_p3), %s1027_s28, 1040  }
 0x27a   : > { %4667 = vsyncadd (%p6181_p3), %s1027_s28, 4294966256  ;;  %s1044_s22 = scalar_lea.sflag [#allocation19], %s5612_s19  ;;  %s5649_s7 = scalar_lea.vmem [#allocation18], %s3413_s21 }
 0x27b   : > { %4669 = dma.done.wait (%p6181_p3), %s1044_s22, 1040  }
 0x27c   : > { %4671 = vsyncadd (%p6181_p3), %s1044_s22, 4294966256  ;;  %s1061_s23 = scalar_lea.sflag [#allocation22], %s5612_s19  ;;  %s5657_s30 = scalar_lea.vmem [#allocation21], %s3413_s21 }
 0x27d   : > { %4673 = dma.done.wait (%p6181_p3), %s1061_s23, 1040  }
 0x27e   : > { %4675 = vsyncadd (%p6181_p3), %s1061_s23, 4294966256  ;;  %s1078_s16 = scalar_lea.sflag [#allocation25], %s5612_s19 }
 0x27f   : > { %4677 = dma.done.wait (%p6181_p3), %s1078_s16, 32  }
 0x280   : > { %4679 = vsyncadd (%p6181_p3), %s1078_s16, 4294967264  ;;  %s3417_s21 = sshll.u32 %s5621_s0, 8  ;;  %s1094_s10 = scalar_lea.sflag [#allocation28], %s5612_s19 }
 0x281   : > { %s5673_s23 = scalar_lea.vmem [#allocation27], %s3417_s21 }
 0x282   : > { %4681 = dma.done.wait (%p6181_p3), %s1094_s10, 4160  }
 0x283   : > { %4683 = vsyncadd (%p6181_p3), %s1094_s10, 4294963136  ;;  %s3418_s27 = sshll.u32 %s5621_s0, 2  ;;  %s1112_s16 = scalar_lea.sflag [#allocation31], %s5612_s19 }
 0x284   : > { %s5680_s28 = scalar_lea.vmem [#allocation29], %s3418_s27  ;;  %s5683_s4 = scalar_lea.vmem [#allocation30], %s3417_s21 }
 0x285   : > { %4685 = dma.done.wait (%p6181_p3), %s1112_s16, 4112  }
 0x286   : > { %4687 = vsyncadd (%p6181_p3), %s1112_s16, 4294963184  ;;  %s1123_s22 = scalar_lea.vmem [#allocation32], %s5621_s0  ;;  %s1257_s6 = scalar_lea.vmem [#allocation33], %s5603_s20 }
 0x287   : > { %s6182_s8 = sld [smem:[#allocation50_spill]] }
 0x28d   : > { %p3421_p12 = scmp.ne.s32.totalorder %s6182_s8, 0 }
 0x28e   : > { %s6183_s10 = scalar_lea.vmem (!%p3421_p12), [#allocation3], %s5603_s20 }
 0x28f   : > { %1262 = sbr.rel (%p3421_p12) target bundleno = 662 (0x296), region = 176  ;;  %v1263_v0 = vld [vmem:[%s6183_s10] sm:$0xff] (!%p3421_p12) }
 0x290   : > { %1264 = vst [vmem:[#allocation2] sm:$0xff] (!%p3421_p12), %v1263_v0 }
 0x296 PF: > { %s6184_s27 = scalar_lea.vmem [#allocation6], %s5603_s20  ;;  %v3877_v3 = vld [vmem:[%s5641_s5] sm:$0xff]   ;;  %v3879_v5 = vld [vmem:[%s5641_s5 + $0x8] sm:$0xff]   ;;  %v4759_v6 = vmov 0.0   ;;  %v3881_v16 = vld [vmem:[%s5641_s5 + $0x10] sm:$0xff]   ;;  %vm4760_vm0 = vmmov 0   ;;  %v1645_v54 = vlaneseq }
 0x297   : > { %v1266_v1 = vld [vmem:[%s6184_s27] sm:$0xff]  ;;  %v3878_v4 = vld [vmem:[%s5633_s2] sm:$0xff]   ;;  %3655 = vmatprep.subr.bf16.mxu1 %v4759_v6  ;;  %3635 = vmatprep.subr.bf16.mxu0 %v4759_v6  ;;  %s6185_s8 = scalar_lea.vmem [#allocation9], %s5621_s0  ;;  %s6186_s19 = scalar_lea.vmem [#allocation11], %s5621_s0  ;;  %v4761_v57 = vmov 1966171168  }
 0x298   : > { %v1265_v2 = vld [vmem:[#allocation2] sm:$0xff]  ;;  %1297 = vadd.xlane.f32.xlu0 %v1266_v1  ;;  %v3880_v7 = vld [vmem:[%s5633_s2 + $0x8] sm:$0xff]   ;;  %3656 = vmatpush3.bf16.msra.mxu1 %v3877_v3  ;;  %v3883_v18 = vld [vmem:[%s5641_s5 + $0x18] sm:$0xff]   ;;  %v5754_v55 = vshrl.u32 %v1645_v54, 7  ;;  %v1661_v58 = vunpack.c.l.s4 %v4761_v57  ;;  %v1646_v59 = vand.u32 127, %v1645_v54  ;;  %s6187_s26 = scalar_lea.vmem [#allocation17], %s5621_s0 }
 0x299   : > { %3636 = vmatpush3.bf16.msra.mxu0 %v3878_v4  ;;  %3657 = vmatprep.subr.bf16.mxu1 %v4759_v6  ;;  %v3882_v17 = vld [vmem:[%s5633_s2 + $0x10] sm:$0xff]   ;;  %v3884_v19 = vld [vmem:[%s5633_s2 + $0x18] sm:$0xff]   ;;  %v3885_v20 = vld [vmem:[%s5641_s5 + $0x20] sm:$0xff]   ;;  %vm1936_vm4 = vcmask 1043456   ;;  %vm1831_vm5 = vcmask 64512   ;;  %s6192_s21 = scalar_lea.vmem [#allocation24], %s5621_s0 }
 0x29a   : > { %3637 = vmatprep.subr.bf16.mxu0 %v4759_v6  ;;  %v3886_v21 = vld [vmem:[%s5633_s2 + $0x20] sm:$0xff]   ;;  %v3887_v22 = vld [vmem:[%s5641_s5 + $0x28] sm:$0xff]   ;;  %3671 = vmatprep.mubr.msk.bf16.mxu1 %vm4760_vm0, %v4759_v6  ;;  %v3889_v24 = vld [vmem:[%s5641_s5 + $0x30] sm:$0xff]   ;;  %v1649_v56 = vmul.u32 16, %v5754_v55  ;;  %v1662_v61 = vunpack.c.0.s8 %v1661_v58 }
 0x29b   : > { %3651 = vmatprep.mubr.msk.bf16.mxu0 %vm4760_vm0, %v4759_v6  ;;  %v3888_v23 = vld [vmem:[%s5633_s2 + $0x28] sm:$0xff]   ;;  %v3890_v25 = vld [vmem:[%s5633_s2 + $0x30] sm:$0xff]   ;;  %v3891_v26 = vld [vmem:[%s5641_s5 + $0x38] sm:$0xff]   ;;  %s6190_s5 = scalar_lea.vmem [#allocation8], %s5600_s1 }
 0x29c   : > { %1270 = vadd.xlane.f32.xlu0 %v1265_v2  ;;  %3658 = vmatpush3.bf16.msra.mxu1 %v3879_v5  ;;  %v3892_v27 = vld [vmem:[%s5633_s2 + $0x38] sm:$0xff]   ;;  %v3422_v35 = vld [vmem:[%s6185_s8] ss:$0 sm:$0xff]  ;;  %v3893_v45 = vld [vmem:[%s5649_s7] sm:$0xff]   ;;  %v1651_v60 = vadd.s32 16, %v1649_v56  ;;  %vm1650_vm1 = vcmp.ge.s32.totalorder %v1646_v59, %v1649_v56  ;;  %v1665_v62 = vsub.s32 %v1662_v61, %v5754_v55  ;;  %s6189_s2 = scalar_lea.vmem [#allocation20], %s5621_s0 }
 0x29d   : > { %3638 = vmatpush3.bf16.msra.mxu0 %v3880_v7  ;;  %3659 = vmatprep.subr.bf16.mxu1 %v4759_v6  ;;  %v3423_v37 = vld [vmem:[%s6186_s19] ss:$0 sm:$0xff]  ;;  %v3895_v48 = vld [vmem:[%s5649_s7 + $0x10] sm:$0xff]   ;;  %v3896_v49 = vld [vmem:[%s5649_s7 + $0x18] sm:$0xff]  }
 0x29e   : > { %3639 = vmatprep.subr.bf16.mxu0 %v4759_v6  ;;  %v3894_v47 = vld [vmem:[%s5649_s7 + $0x8] sm:$0xff]   ;;  %v3897_v50 = vld [vmem:[%s5649_s7 + $0x20] sm:$0xff]   ;;  %v3899_v52 = vld [vmem:[%s5649_s7 + $0x30] sm:$0xff]   ;;  %vm1652_vm2 = vcmp.lt.s32.totalorder %v1646_v59, %v1651_v60 }
 0x29f   : > { %v3898_v51 = vld [vmem:[%s5649_s7 + $0x28] sm:$0xff]   ;;  %v3900_v53 = vld [vmem:[%s5649_s7 + $0x38] sm:$0xff]   ;;  %vm1653_vm3 = vmand %vm1650_vm1, %vm1652_vm2  ;;  %s6188_s7 = scalar_lea.vmem [#allocation14], %s5621_s0 }
 0x2a0   : > { %3660 = vmatpush3.bf16.msra.mxu1 %v3881_v16  ;;  %v3451_v63 = vsel %vm1653_vm3, 1.0, %v4759_v6  ;;  %v3433_v7 = vld [vmem:[%s6187_s26] ss:$0 sm:$0xff] }
 0x2a1   : > { %3661 = vmatprep.subr.bf16.mxu1 %v4759_v6  ;;  %3640 = vmatpush3.bf16.msra.mxu0 %v3882_v17  ;;  %v1666_v0 = vrot.slane %v3451_v63, %v1665_v62  ;;  %v3424_v16 = vld [vmem:[%s6188_s7] ss:$0 sm:$0xff] }
 0x2a2   : > { %3641 = vmatprep.subr.bf16.mxu0 %v4759_v6  ;;  %v3452_v58 = vld [vmem:[%s6190_s5] ss:$0 sm:$0xff] }
 0x2a3   : > { %v1682_v4 = vrot.slane %v1666_v0, %v1665_v62 }
 0x2a4   : > { %3662 = vmatpush3.bf16.msra.mxu1 %v3883_v18 }
 0x2a5   : > { %3663 = vmatprep.subr.bf16.mxu1 %v4759_v6  ;;  %3642 = vmatpush3.bf16.msra.mxu0 %v3884_v19 }
 0x2a6   : > { %3643 = vmatprep.subr.bf16.mxu0 %v4759_v6 }
 0x2a8   : > { %3664 = vmatpush3.bf16.msra.mxu1 %v3885_v20 }
 0x2a9   : > { %3665 = vmatprep.subr.bf16.mxu1 %v4759_v6  ;;  %3644 = vmatpush3.bf16.msra.mxu0 %v3886_v21 }
 0x2aa   : > { %3645 = vmatprep.subr.bf16.mxu0 %v4759_v6 }
 0x2ac   : > { %3666 = vmatpush3.bf16.msra.mxu1 %v3887_v22 }
 0x2ad   : > { %3667 = vmatprep.subr.bf16.mxu1 %v4759_v6  ;;  %3646 = vmatpush3.bf16.msra.mxu0 %v3888_v23 }
 0x2ae   : > { %3647 = vmatprep.subr.bf16.mxu0 %v4759_v6 }
 0x2b0   : > { %3668 = vmatpush3.bf16.msra.mxu1 %v3889_v24 }
 0x2b1   : > { %3669 = vmatprep.subr.bf16.mxu1 %v4759_v6  ;;  %3648 = vmatpush3.bf16.msra.mxu0 %v3890_v25 }
 0x2b2   : > { %3649 = vmatprep.subr.bf16.mxu0 %v4759_v6 }
 0x2b4   : > { %3670 = vmatpush3.bf16.msra.mxu1 %v3891_v26 }
 0x2b5   : > { %3650 = vmatpush3.bf16.msra.mxu0 %v3892_v27 }
 0x2b6   : > { %3675 = vmatprep.subr.bf16.mxu0 %v4759_v6 }
 0x325   : > { %v1298_v8 = vpop.xlane.xlu0 %1297 }
 0x326   : > { %v1299_v9 = vmul.f32 0.0078125, %v1298_v8 }
 0x328   : > { %v1300_v10 = vsub.f32 %v1266_v1, %v1299_v9  ;;  %v1659_v1 = vcombine.high %v3451_v63, %v3451_v63  ;;  %v5762_v9 = vsub.s32 0, %v5754_v55 }
 0x329   : > { %v1271_v11 = vpop.xlane.xlu0 %1270 }
 0x32a   : > { %v1273_v12 = vmul.f32 0.0078125, %v1271_v11  ;;  %v1301_v13 = vmul.f32 %v1300_v10, %v1300_v10  ;;  %v1673_v3 = vrot.slane %v1659_v1, %v1665_v62  ;;  %v5767_v20 = vrot.slane %v1682_v4, %v5762_v9 }
 0x32c   : > { %v1274_v14 = vsub.f32 %v1265_v2, %v1273_v12  ;;  %1302 = vadd.xlane.f32.xlu1 %v1301_v13  ;;  %v1674_v2 = vcombine.high %v1666_v0, %v1666_v0  ;;  %v1704_v13 = vcombine.high %v1682_v4, %v1682_v4  ;;  %v1689_v21 = vrot.slane %v1673_v3, %v1665_v62 }
 0x32e   : > { %v1275_v15 = vmul.f32 %v1274_v14, %v1274_v14  ;;  %v1696_v5 = vrot.slane %v1674_v2, %v1665_v62  ;;  %v5773_v26 = vrot.slane %v1704_v13, %v5762_v9 }
 0x330   : > { %1276 = vadd.xlane.f32.xlu1 %v1275_v15  ;;  %v5770_v25 = vrot.slane %v1696_v5, %v5762_v9 }
 0x3b9   : > { %v1303_v28 = vpop.xlane.xlu1 %1302 }
 0x3ba   : > { %v1304_v29 = vmul.f32 0.0078125, %v1303_v28 }
 0x3bc   : > { %v1305_v30 = vadd.f32 1e-05, %v1304_v29  ;;  %v5779_v29 = vrot.slane %v1689_v21, %v5762_v9 }
 0x3bd   : > { %v1277_v31 = vpop.xlane.xlu1 %1276 }
 0x3be   : > { %3989 = vrsqrt.f32 %v1305_v30  ;;  %v1278_v32 = vmul.f32 0.0078125, %v1277_v31 }
 0x3c0   : > { %v1279_v33 = vadd.f32 1e-05, %v1278_v32 }
 0x3c2   : > { %3991 = vrsqrt.f32 %v1279_v33  ;;  %v1705_v33 = vcombine.high %v1689_v21, %v1689_v21 }
 0x3c8   : > { %v3990_v34 = vpop.eup %3989 }
 0x3c9   : > { %v1307_v36 = vmul.f32 %v3990_v34, %v1300_v10  ;;  %v1675_v10 = vcombine.high %v1673_v3, %v1673_v3 }
 0x3cb   : > { %v1308_v38 = vmul.f32 %v3422_v35, %v1307_v36  ;;  %v1703_v22 = vrot.slane %v1675_v10, %v1665_v62 }
 0x3cc   : > { %v3992_v39 = vpop.eup %3991 }
 0x3cd   : > { %v1309_v40 = vadd.f32 %v3423_v37, %v1308_v38  ;;  %v1281_v41 = vmul.f32 %v3992_v39, %v1274_v14  ;;  %v1706_v14 = vcombine.high %v1696_v5, %v1696_v5  ;;  %v5782_v30 = vrot.slane %v1703_v22, %v5762_v9 }
 0x3ce   : > { %v1707_v34 = vcombine.high %v1703_v22, %v1703_v22 }
 0x3cf   : > { %v1310_v42 = vpack.c.bf16 %v1309_v40, %v1309_v40  ;;  %v1288_v43 = vmul.f32 %v3422_v35, %v1281_v41  ;;  %v5776_v27 = vrot.slane %v1706_v14, %v5762_v9 }
 0x3d1   : > { %3672 = vmatmul.mubr.bf16.vlgmr.msra.gmra.mrb[0].mxu1 %v1310_v42  ;;  %v1295_v44 = vadd.f32 %v3423_v37, %v1288_v43  ;;  %v5791_v43 = vrot.slane %v1705_v33, %v5762_v9 }
 0x3d3   : > { %v1296_v46 = vpack.c.bf16 %v1295_v44, %v1295_v44  ;;  %v5794_v44 = vrot.slane %v1707_v34, %v5762_v9 }
 0x3d5   : > { %3652 = vmatmul.mubr.bf16.vlgmr.msra.gmra.mrb[0].mxu0 %v1296_v46 }
 0x3d6   : > { %3676 = vmatpush3.bf16.msra.mxu0 %v3893_v45  ;;  %3691 = vmatprep.mubr.msk.bf16.mxu0 %vm4760_vm0, %v4759_v6 }
 0x3d7   : > { %3677 = vmatprep.subr.bf16.mxu0 %v4759_v6 }
 0x3da   : > { %3678 = vmatpush3.bf16.msra.mxu0 %v3894_v47 }
 0x3db   : > { %3679 = vmatprep.subr.bf16.mxu0 %v4759_v6 }
 0x3de   : > { %3680 = vmatpush3.bf16.msra.mxu0 %v3895_v48 }
 0x3df   : > { %3681 = vmatprep.subr.bf16.mxu0 %v4759_v6 }
 0x3e2   : > { %3682 = vmatpush3.bf16.msra.mxu0 %v3896_v49  ;;  %v3442_v49 = vld [vmem:[%s6189_s2] ss:$0 sm:$0xff] }
 0x3e3   : > { %3683 = vmatprep.subr.bf16.mxu0 %v4759_v6 }
 0x3e6   : > { %3684 = vmatpush3.bf16.msra.mxu0 %v3897_v50 }
 0x3e7   : > { %3685 = vmatprep.subr.bf16.mxu0 %v4759_v6 }
 0x3ea   : > { %3686 = vmatpush3.bf16.msra.mxu0 %v3898_v51 }
 0x3eb   : > { %3687 = vmatprep.subr.bf16.mxu0 %v4759_v6 }
 0x3ee   : > { %3688 = vmatpush3.bf16.msra.mxu0 %v3899_v52 }
 0x3ef   : > { %3689 = vmatprep.subr.bf16.mxu0 %v4759_v6 }
 0x3f2   : > { %3690 = vmatpush3.bf16.msra.mxu0 %v3900_v53 }
 0x3f5   : > { %3692 = vmatmul.mubr.bf16.vlgmr.msra.gmra.mrb[4].mxu0 %v1310_v42 }
 0x4a4   : > { %v1527_v8 = vpop.f32.mrb[0].mxu1 }
 0x4a5   : > { %v1528_v11 = vadd.f32 %v3433_v7, %v1527_v8  ;;  %v3673_v12 = vpop.f32.mrb[1].mxu1 }
 0x4a6   : > { %v1530_v15 = vpop.f32.mrb[2].mxu1 }
 0x4a7   : > { %v1656_v17 = vpack.c.bf16 %v1528_v11, %v1528_v11  ;;  %v3674_v18 = vpop.f32.mrb[3].mxu1 }
 0x4a8   : > { %v1416_v19 = vpop.f32.mrb[0].mxu0 }
 0x4a9   : > { %v1417_v23 = vadd.f32 %v3424_v16, %v1416_v19  ;;  %v3653_v24 = vpop.f32.mrb[1].mxu0  ;;  %3695 = vmatprep.subr.bf16.mxu0 %v1656_v17 }
 0x4aa   : > { %v1419_v28 = vpop.f32.mrb[2].mxu0  ;;  %3696 = vmatpush3.bf16.xpose.msra.mxu0 %v1656_v17 }
 0x4ab   : > { %v1644_v31 = vmul.f32 0.25, %v1417_v23  ;;  %v3654_v32 = vpop.f32.mrb[3].mxu0 }
 0x4ad   : > { %v1748_v35 = vmul.f32 %v5767_v20, %v1644_v31  ;;  %v1749_v36 = vmul.f32 %v5770_v25, %v1644_v31  ;;  %v1750_v37 = vmul.f32 %v5773_v26, %v1644_v31  ;;  %v1751_v38 = vmul.f32 %v5776_v27, %v1644_v31 }
 0x4ae   : > { %v1752_v39 = vmul.f32 %v5779_v29, %v1644_v31  ;;  %v1753_v40 = vmul.f32 %v5782_v30, %v1644_v31  ;;  %v1754_v46 = vmul.f32 %v5791_v43, %v1644_v31  ;;  %v1755_v47 = vmul.f32 %v5794_v44, %v1644_v31 }
 0x4af   : > { %v1756_v41 = vpack.c.bf16 %v1749_v36, %v1748_v35  ;;  %v1757_v42 = vpack.c.bf16 %v1751_v38, %v1750_v37 }
 0x4b0   : > { %v1758_v45 = vpack.c.bf16 %v1753_v40, %v1752_v39  ;;  %v1759_v48 = vpack.c.bf16 %v1755_v47, %v1754_v46 }
 0x4b1   : > { %3697 = vmatprep.mubr.bf16.mxu0 %v1756_v41 }
 0x4b2   : > { %3698 = vmatmul.mubr.bf16.vlgmr.msra.gmra.mrb[8].mxu0 %v1757_v42 }
 0x4b3   : > { %3701 = vmatprep.mubr.bf16.mxu0 %v1758_v45 }
 0x4ba   : > { %3702 = vmatmul.mubr.bf16.gmra.mrb[12].mxu0 %v1759_v48 }
 0x4c8   : > { %v1638_v50 = vpop.f32.mrb[4].mxu0 }
 0x4c9   : > { %v1639_v51 = vadd.f32 %v3442_v49, %v1638_v50  ;;  %v3693_v52 = vpop.f32.mrb[5].mxu0 }
 0x4ca   : > { %v1641_v53 = vpop.f32.mrb[6].mxu0 }
 0x4cb   : > { %v1657_v54 = vpack.c.bf16 %v1639_v51, %v1639_v51  ;;  %v3694_v56 = vpop.f32.mrb[7].mxu0 }
 0x4cd   : > { %v1938_v57 = vsel %vm1936_vm4, %v1657_v54, 0  ;;  %3735 = vmatprep.subr.msk.bf16.mxu1 %vm1936_vm4, %v1657_v54 }
 0x4ce   : > { %3706 = vmatpush3.bf16.msra.mxu1 %v1938_v57 }
 0x4cf   : > { %3715 = vmatprep.subr.bf16.mxu1 %v4759_v6 }
 0x585   : > { %v3699_v59 = vpop.f32.mrb[8].mxu0 }
 0x586   : > { %v1800_v60 = vpop.f32.mrb[9].mxu0  ;;  %v1809_v0 = vadd.f32 %v3699_v59, %v3452_v58 }
 0x587   : > { %v1801_v61 = vadd.f32 %v3452_v58, %v1800_v60  ;;  %v3700_v62 = vpop.f32.mrb[10].mxu0 }
 0x588   : > { %v1803_v63 = vpop.f32.mrb[11].mxu0  ;;  %v1812_v3 = vadd.f32 %v3700_v62, %v3452_v58  ;;  %v1838_v7 = vsel %vm1831_vm5, %v1809_v0, -inf }
 0x589   : > { %v1804_v1 = vadd.f32 %v3452_v58, %v1803_v63  ;;  %v1832_v2 = vsel %vm1831_vm5, %v1801_v61, -inf }
 0x58a   : > { %1833 = vmax.xlane.f32.xlu0 %v1832_v2  ;;  %v1841_v12 = vsel %vm1831_vm5, %v1812_v3, -inf }
 0x58b   : > { %v1835_v4 = vsel %vm1831_vm5, %v1804_v1, -inf }
 0x58c   : > { %1836 = vmax.xlane.f32.xlu1 %v1835_v4 }
 0x58d   : > { %v3703_v5 = vpop.f32.mrb[12].mxu0 }
 0x58e   : > { %v1816_v8 = vpop.f32.mrb[13].mxu0  ;;  %1839 = vmax.xlane.f32.xlu0 %v1838_v7  ;;  %v1825_v14 = vadd.f32 %v3703_v5, %v3452_v58 }
 0x58f   : > { %v1817_v10 = vadd.f32 %v3452_v58, %v1816_v8  ;;  %v3704_v11 = vpop.f32.mrb[14].mxu0 }
 0x590   : > { %v1819_v13 = vpop.f32.mrb[15].mxu0  ;;  %1842 = vmax.xlane.f32.xlu1 %v1841_v12  ;;  %v1828_v17 = vadd.f32 %v3704_v11, %v3452_v58  ;;  %v1850_v19 = vsel %vm1831_vm5, %v1825_v14, -inf }
 0x591   : > { %v1820_v15 = vadd.f32 %v3452_v58, %v1819_v13  ;;  %v1844_v16 = vsel %vm1831_vm5, %v1817_v10, -inf }
 0x592   : > { %1845 = vmax.xlane.f32.xlu0 %v1844_v16  ;;  %v1853_v21 = vsel %vm1831_vm5, %v1828_v17, -inf }
 0x593   : > { %v1847_v18 = vsel %vm1831_vm5, %v1820_v15, -inf }
 0x594   : > { %1848 = vmax.xlane.f32.xlu1 %v1847_v18 }
 0x596   : > { %1851 = vmax.xlane.f32.xlu0 %v1850_v19 }
 0x598   : > { %1854 = vmax.xlane.f32.xlu1 %v1853_v21 }
 0x617   : > { %v1834_v22 = vpop.xlane.xlu0 %1833 }
 0x618   : > { %v1856_v23 = vsub.f32 %v1801_v61, %v1834_v22 }
 0x619   : > { %v1837_v24 = vpop.xlane.xlu1 %1836 }
 0x61a   : > { %v1864_v28 = vmul.f32 1.442695, %v1856_v23  ;;  %v1857_v31 = vsub.f32 %v1804_v1, %v1837_v24 }
 0x61b   : > { %v1840_v32 = vpop.xlane.xlu0 %1839 }
 0x61c   : > { %3993 = vpow2.f32 %v1864_v28  ;;  %v1866_v33 = vmul.f32 1.442695, %v1857_v31  ;;  %v1858_v34 = vsub.f32 %v1809_v0, %v1840_v32  ;;  %v3901_v32 = vld [vmem:[%s5657_s30] sm:$0xff]  }
 0x61d   : > { %v1843_v35 = vpop.xlane.xlu1 %1842 }
 0x61e   : > { %3995 = vpow2.f32 %v1866_v33  ;;  %v1868_v36 = vmul.f32 1.442695, %v1858_v34  ;;  %v1859_v37 = vsub.f32 %v1812_v3, %v1843_v35 }
 0x61f   : > { %v1846_v38 = vpop.xlane.xlu0 %1845 }
 0x620   : > { %3997 = vpow2.f32 %v1868_v36  ;;  %v1870_v39 = vmul.f32 1.442695, %v1859_v37  ;;  %v1860_v40 = vsub.f32 %v1817_v10, %v1846_v38  ;;  %v3902_v38 = vld [vmem:[%s5657_s30 + $0x8] sm:$0xff]  }
 0x621   : > { %v1849_v41 = vpop.xlane.xlu1 %1848 }
 0x622   : > { %3999 = vpow2.f32 %v1870_v39  ;;  %v1872_v42 = vmul.f32 1.442695, %v1860_v40  ;;  %v1861_v45 = vsub.f32 %v1820_v15, %v1849_v41 }
 0x623   : > { %v1852_v46 = vpop.xlane.xlu0 %1851 }
 0x624   : > { %4001 = vpow2.f32 %v1872_v42  ;;  %v1874_v47 = vmul.f32 1.442695, %v1861_v45  ;;  %v1862_v48 = vsub.f32 %v1825_v14, %v1852_v46  ;;  %v3903_v45 = vld [vmem:[%s5657_s30 + $0x10] sm:$0xff]  }
 0x625   : > { %v1855_v49 = vpop.xlane.xlu1 %1854 }
 0x626   : > { %v3994_v50 = vpop.eup %3993  ;;  %4003 = vpow2.f32 %v1874_v47  ;;  %v1876_v51 = vmul.f32 1.442695, %v1862_v48  ;;  %v1863_v52 = vsub.f32 %v1828_v17, %v1855_v49  ;;  %v3904_v47 = vld [vmem:[%s5657_s30 + $0x18] sm:$0xff]   ;;  %v3905_v48 = vld [vmem:[%s5657_s30 + $0x20] sm:$0xff]   ;;  %v3906_v49 = vld [vmem:[%s5657_s30 + $0x28] sm:$0xff]  }
 0x627   : > { %v1880_v53 = vsel %vm1831_vm5, %v3994_v50, 0.0 }
 0x628   : > { %v3996_v54 = vpop.eup %3995  ;;  %4005 = vpow2.f32 %v1876_v51  ;;  %v1878_v56 = vmul.f32 1.442695, %v1863_v52  ;;  %1881 = vadd.xlane.f32.xlu0 %v1880_v53  ;;  %v3908_v51 = vld [vmem:[%s5657_s30 + $0x38] sm:$0xff]  }
 0x629   : > { %v1883_v57 = vsel %vm1831_vm5, %v3996_v54, 0.0 }
 0x62a   : > { %v3998_v58 = vpop.eup %3997  ;;  %4007 = vpow2.f32 %v1878_v56  ;;  %1884 = vadd.xlane.f32.xlu1 %v1883_v57 }
 0x62b   : > { %v1886_v59 = vsel %vm1831_vm5, %v3998_v58, 0.0 }
 0x62c   : > { %v4000_v60 = vpop.eup %3999  ;;  %1887 = vadd.xlane.f32.xlu0 %v1886_v59 }
 0x62d   : > { %v1889_v61 = vsel %vm1831_vm5, %v4000_v60, 0.0 }
 0x62e   : > { %v4002_v62 = vpop.eup %4001  ;;  %1890 = vadd.xlane.f32.xlu1 %v1889_v61 }
 0x62f   : > { %v1892_v63 = vsel %vm1831_vm5, %v4002_v62, 0.0 }
 0x630   : > { %v4004_v0 = vpop.eup %4003  ;;  %1893 = vadd.xlane.f32.xlu0 %v1892_v63 }
 0x631   : > { %v1895_v1 = vsel %vm1831_vm5, %v4004_v0, 0.0 }
 0x632   : > { %v4006_v2 = vpop.eup %4005  ;;  %1896 = vadd.xlane.f32.xlu1 %v1895_v1 }
 0x633   : > { %v1898_v3 = vsel %vm1831_vm5, %v4006_v2, 0.0 }
 0x634   : > { %v4008_v4 = vpop.eup %4007  ;;  %1899 = vadd.xlane.f32.xlu0 %v1898_v3 }
 0x635   : > { %v1901_v5 = vsel %vm1831_vm5, %v4008_v4, 0.0 }
 0x636   : > { %1902 = vadd.xlane.f32.xlu1 %v1901_v5 }
 0x6b5   : > { %v1882_v7 = vpop.xlane.xlu0 %1881 }
 0x6b6   : > { %4009 = vrcp.f32 %v1882_v7 }
 0x6b7   : > { %v1885_v8 = vpop.xlane.xlu1 %1884 }
 0x6b8   : > { %4011 = vrcp.f32 %v1885_v8 }
 0x6b9   : > { %v1888_v10 = vpop.xlane.xlu0 %1887 }
 0x6ba   : > { %4013 = vrcp.f32 %v1888_v10 }
 0x6bb   : > { %v1891_v11 = vpop.xlane.xlu1 %1890 }
 0x6bc   : > { %4015 = vrcp.f32 %v1891_v11 }
 0x6bd   : > { %v1894_v12 = vpop.xlane.xlu0 %1893 }
 0x6be   : > { %4017 = vrcp.f32 %v1894_v12  ;;  %v4043_v12 = vld [vmem:[#allocation2] sm:$0xff] }
 0x6bf   : > { %v1897_v13 = vpop.xlane.xlu1 %1896 }
 0x6c0   : > { %v4010_v14 = vpop.eup %4009  ;;  %4019 = vrcp.f32 %v1897_v13 }
 0x6c1   : > { %v1900_v15 = vpop.xlane.xlu0 %1899  ;;  %v1912_v18 = vmul.f32 %v4010_v14, %v3994_v50  ;;  %v3907_v50 = vld [vmem:[%s5657_s30 + $0x30] sm:$0xff]   ;;  %s6191_s30 = scalar_lea.vmem [#allocation23], %s5621_s0 }
 0x6c2   : > { %v4012_v16 = vpop.eup %4011  ;;  %4021 = vrcp.f32 %v1900_v15  ;;  %v3909_v14 = vld [vmem:[%s5673_s23] ss:$16 sps:$4 sm:$0xff]   ;;  %v3911_v15 = vld [vmem:[%s5673_s23 + $0x4] ss:$16 sps:$4 sm:$0xff]  }
 0x6c3   : > { %v1903_v17 = vpop.xlane.xlu1 %1902  ;;  %v1913_v19 = vmul.f32 %v4012_v16, %v3996_v54  ;;  %v3912_v16 = vld [vmem:[%s5673_s23 + $0x8] ss:$16 sps:$4 sm:$0xff]   ;;  %2375 = vmatprep.subr.bf16.mxu0 %v3911_v15  ;;  %v3972_v15 = vld [vmem:[%s5683_s4 + $0x98] sm:$0xff]  }
 0x6c4   : > { %v4014_v21 = vpop.eup %4013  ;;  %4023 = vrcp.f32 %v1903_v17  ;;  %v3914_v17 = vld [vmem:[%s5673_s23 + $0xc] ss:$16 sps:$4 sm:$0xff]   ;;  %2376 = vmatpush1.bf16.msra.mxu0 %v3909_v14  ;;  %v3971_v14 = vld [vmem:[%s5683_s4 + $0x18] sm:$0xff]  }
 0x6c5   : > { %v1920_v22 = vpack.c.bf16 %v1913_v19, %v1912_v18  ;;  %v1914_v24 = vmul.f32 %v4014_v21, %v3998_v58  ;;  %v3917_v18 = vld [vmem:[%s5673_s23 + $0x24] ss:$16 sps:$4 sm:$0xff]   ;;  %v3920_v19 = vld [vmem:[%s5673_s23 + $0x2c] ss:$16 sps:$4 sm:$0xff]   ;;  %v3915_v21 = vld [vmem:[%s5673_s23 + $0x20] ss:$16 sps:$4 sm:$0xff]  }
 0x6c6   : > { %v4016_v23 = vpop.eup %4015  ;;  %2377 = vmatprep.subr.bf16.mxu0 %v3917_v18  ;;  %v3975_v18 = vld [vmem:[%s5683_s4 + $0x20] sm:$0xff]  }
 0x6c7   : > { %v1915_v28 = vmul.f32 %v4016_v23, %v4000_v60  ;;  %3707 = vmatprep.mubr.msk.bf16.mxu1 %vm1831_vm5, %v1920_v22  ;;  %v3918_v22 = vld [vmem:[%s5673_s23 + $0x28] ss:$16 sps:$4 sm:$0xff]   ;;  %v3923_v23 = vld [vmem:[%s5673_s23 + $0x44] ss:$16 sps:$4 sm:$0xff]  }
 0x6c8   : > { %v4018_v31 = vpop.eup %4017  ;;  %2378 = vmatpush1.bf16.msra.mxu0 %v3915_v21  ;;  %v3977_v21 = vld [vmem:[%s5683_s4 + $0x68] sm:$0xff]  }
 0x6c9   : > { %v1921_v33 = vpack.c.bf16 %v1915_v28, %v1914_v24  ;;  %v1916_v35 = vmul.f32 %v4018_v31, %v4002_v62  ;;  %v3926_v24 = vld [vmem:[%s5673_s23 + $0x4c] ss:$16 sps:$4 sm:$0xff]   ;;  %v3921_v28 = vld [vmem:[%s5673_s23 + $0x40] ss:$16 sps:$4 sm:$0xff]   ;;  %2379 = vmatprep.subr.bf16.mxu0 %v3923_v23  ;;  %v3924_v31 = vld [vmem:[%s5673_s23 + $0x48] ss:$16 sps:$4 sm:$0xff]  }
 0x6ca   : > { %v4020_v34 = vpop.eup %4019  ;;  %v3979_v23 = vld [vmem:[%s5683_s4 + $0x28] sm:$0xff]  }
 0x6cb   : > { %3708 = vmatmul.mubr.msk.bf16.vlgmr.msra.gmra.mrb[4].mxu1 %vm1831_vm5, %v1921_v33  ;;  %v1917_v36 = vmul.f32 %v4020_v34, %v4004_v0 }
 0x6cc   : > { %v4022_v37 = vpop.eup %4021  ;;  %3716 = vmatpush3.bf16.msra.mxu1 %v3901_v32  ;;  %2380 = vmatpush1.bf16.msra.mxu0 %v3921_v28  ;;  %v3981_v28 = vld [vmem:[%s5683_s4 + $0x70] sm:$0xff]  }
 0x6cd   : > { %v1922_v39 = vpack.c.bf16 %v1917_v36, %v1916_v35  ;;  %3717 = vmatprep.subr.bf16.mxu1 %v4759_v6  ;;  %v1918_v41 = vmul.f32 %v4022_v37, %v4006_v2  ;;  %v3929_v36 = vld [vmem:[%s5673_s23 + $0x64] ss:$16 sps:$4 sm:$0xff]   ;;  %v3932_v37 = vld [vmem:[%s5673_s23 + $0x6c] ss:$16 sps:$4 sm:$0xff]  }
 0x6ce   : > { %v4024_v40 = vpop.eup %4023  ;;  %2381 = vmatprep.subr.bf16.mxu0 %v3929_v36  ;;  %v3987_v36 = vld [vmem:[%s5683_s4 + $0x38] sm:$0xff]  }
 0x6cf   : > { %3711 = vmatprep.mubr.msk.bf16.mxu1 %vm1831_vm5, %v1922_v39  ;;  %v1919_v42 = vmul.f32 %v4024_v40, %v4008_v4  ;;  %v3930_v39 = vld [vmem:[%s5673_s23 + $0x68] ss:$16 sps:$4 sm:$0xff]   ;;  %v3935_v40 = vld [vmem:[%s5673_s23 + $0x84] ss:$16 sps:$4 sm:$0xff]  }
 0x6d0   : > { %3718 = vmatpush3.bf16.msra.mxu1 %v3902_v38  ;;  %v3927_v38 = vld [vmem:[%s5673_s23 + $0x60] ss:$16 sps:$4 sm:$0xff]  }
 0x6d1   : > { %v1923_v46 = vpack.c.bf16 %v1919_v42, %v1918_v41  ;;  %3719 = vmatprep.subr.bf16.mxu1 %v4759_v6  ;;  %2382 = vmatpush1.bf16.msra.mxu0 %v3927_v38  ;;  %v3938_v41 = vld [vmem:[%s5673_s23 + $0x8c] ss:$16 sps:$4 sm:$0xff]   ;;  %v3933_v42 = vld [vmem:[%s5673_s23 + $0x80] ss:$16 sps:$4 sm:$0xff]   ;;  %v2205_v38 = vsub.s32 2, %v5754_v55 }
 0x6d2   : > { %2383 = vmatprep.subr.bf16.mxu0 %v3935_v40  ;;  %v2201_v40 = vsub.s32 1, %v5754_v55 }
 0x6d3   : > { %3712 = vmatmul.mubr.msk.bf16.gmra.mrb[8].mxu1 %vm1831_vm5, %v1923_v46  ;;  %v3941_v46 = vld [vmem:[%s5673_s23 + $0xa4] ss:$16 sps:$4 sm:$0xff]  }
 0x6d4   : > { %3720 = vmatpush3.bf16.msra.mxu1 %v3903_v45  ;;  %3731 = vmatprep.mubr.msk.bf16.mxu1 %vm4760_vm0, %v4759_v6  ;;  %v3936_v45 = vld [vmem:[%s5673_s23 + $0x88] ss:$16 sps:$4 sm:$0xff]  }
 0x6d5   : > { %3721 = vmatprep.subr.bf16.mxu1 %v4759_v6  ;;  %2384 = vmatpush1.bf16.msra.mxu0 %v3933_v42 }
 0x6d6   : > { %2385 = vmatprep.subr.bf16.mxu0 %v3941_v46 }
 0x6d8   : > { %3722 = vmatpush3.bf16.msra.mxu1 %v3904_v47  ;;  %v3944_v47 = vld [vmem:[%s5673_s23 + $0xac] ss:$16 sps:$4 sm:$0xff]  }
 0x6d9   : > { %3723 = vmatprep.subr.bf16.mxu1 %v4759_v6 }
 0x6dc   : > { %3724 = vmatpush3.bf16.msra.mxu1 %v3905_v48  ;;  %v3939_v48 = vld [vmem:[%s5673_s23 + $0xa0] ss:$16 sps:$4 sm:$0xff]  }
 0x6dd   : > { %3725 = vmatprep.subr.bf16.mxu1 %v4759_v6  ;;  %2386 = vmatpush1.bf16.msra.mxu0 %v3939_v48 }
 0x6e0   : > { %3726 = vmatpush3.bf16.msra.mxu1 %v3906_v49  ;;  %v3942_v49 = vld [vmem:[%s5673_s23 + $0xa8] ss:$16 sps:$4 sm:$0xff]  }
 0x6e1   : > { %3727 = vmatprep.subr.bf16.mxu1 %v4759_v6 }
 0x6e4   : > { %3728 = vmatpush3.bf16.msra.mxu1 %v3907_v50  ;;  %v3947_v50 = vld [vmem:[%s5673_s23 + $0xc4] ss:$16 sps:$4 sm:$0xff]  }
 0x6e5   : > { %3729 = vmatprep.subr.bf16.mxu1 %v4759_v6  ;;  %2387 = vmatprep.subr.bf16.mxu0 %v3947_v50 }
 0x6e8   : > { %3730 = vmatpush3.bf16.msra.mxu1 %v3908_v51  ;;  %v3950_v51 = vld [vmem:[%s5673_s23 + $0xcc] ss:$16 sps:$4 sm:$0xff]  }
 0x6e9   : > { %2416 = vmatprep.subr.bf16.mxu1 %v3914_v17  ;;  %v3974_v17 = vld [vmem:[%s5683_s4 + $0xe0] sm:$0xff]  }
 0x79e   : > { %v3709_v52 = vpop.f32.mrb[4].mxu1 }
 0x79f   : > { %v1974_v53 = vpop.f32.mrb[5].mxu1  ;;  %v2007_v59 = vmul.f32 %v3709_v52, %v5773_v26  ;;  %v3945_v52 = vld [vmem:[%s5673_s23 + $0xc0] ss:$16 sps:$4 sm:$0xff]  }
 0x7a0   : > { %v3710_v54 = vpop.f32.mrb[6].mxu1  ;;  %v2005_v57 = vmul.f32 %v1974_v53, %v5767_v20  ;;  %v3948_v53 = vld [vmem:[%s5673_s23 + $0xc8] ss:$16 sps:$4 sm:$0xff]   ;;  %2388 = vmatpush1.bf16.msra.mxu0 %v3945_v52 }
 0x7a1   : > { %v1977_v56 = vpop.f32.mrb[7].mxu1  ;;  %v2008_v61 = vmul.f32 %v3710_v54, %v5776_v27  ;;  %v3951_v54 = vld [vmem:[%s5673_s23 + $0xe0] ss:$16 sps:$4 sm:$0xff]  }
 0x7a2   : > { %v2006_v58 = vmul.f32 %v1977_v56, %v5770_v25  ;;  %v3953_v56 = vld [vmem:[%s5673_s23 + $0xe4] ss:$16 sps:$4 sm:$0xff]  }
 0x7a3   : > { %2389 = vmatprep.subr.bf16.mxu0 %v3953_v56 }
 0x7a4   : > { %v2013_v60 = vadd.f32 %v2006_v58, %v2005_v57  ;;  %v3954_v57 = vld [vmem:[%s5673_s23 + $0xe8] ss:$16 sps:$4 sm:$0xff]   ;;  %v3956_v58 = vld [vmem:[%s5673_s23 + $0xec] ss:$16 sps:$4 sm:$0xff]   ;;  %2390 = vmatpush1.bf16.msra.mxu0 %v3951_v54  ;;  %s6193_s23 = scalar_lea.vmem [#allocation26], %s5621_s0 }
 0x7a6   : > { %v2014_v62 = vadd.f32 %v2013_v60, %v2007_v59  ;;  %v3713_v63 = vpop.f32.mrb[8].mxu1  ;;  %v4762_v59 = vmov 0  }
 0x7a7   : > { %v1990_v0 = vpop.f32.mrb[9].mxu1  ;;  %v2011_v20 = vmul.f32 %v3713_v63, %v5791_v43  ;;  %2407 = vmatprep.mubr.bf16.mxu0 %v4762_v59 }
 0x7a8   : > { %v2009_v6 = vmul.f32 %v1990_v0, %v5779_v29  ;;  %v2015_v1 = vadd.f32 %v2014_v62, %v2008_v61  ;;  %v3714_v2 = vpop.f32.mrb[10].mxu1  ;;  %v3457_v29 = vld [vmem:[%s6191_s30] ss:$0 sm:$0xff] }
 0x7a9   : > { %v1993_v3 = vpop.f32.mrb[11].mxu1  ;;  %v2012_v26 = vmul.f32 %v3714_v2, %v5794_v44  ;;  %v3466_v0 = vld [vmem:[%s6192_s21] ss:$0 sm:$0xff] }
 0x7aa   : > { %v2016_v4 = vadd.f32 %v2015_v1, %v2009_v6  ;;  %v2010_v5 = vmul.f32 %v1993_v3, %v5782_v30  ;;  %v3467_v1 = vld [vmem:[%s6193_s23] ss:$0 sm:$0xff] }
 0x7ac   : > { %v2017_v25 = vadd.f32 %v2016_v4, %v2010_v5  ;;  %v3957_v5 = vld [vmem:[%s5683_s4 + $0x40] sm:$0xff]  }
 0x7ad   : > { %3591 = vmatprep.subr.bf16.mxu0 %v3957_v5 }
 0x7ae   : > { %v2018_v27 = vadd.f32 %v2017_v25, %v2011_v20  ;;  %v3958_v20 = vld [vmem:[%s5683_s4 + $0xc0] sm:$0xff]  }
 0x7af   : > { %v3959_v25 = vld [vmem:[%s5683_s4] sm:$0xff]  }
 0x7b0   : > { %v2019_v7 = vadd.f32 %v2018_v27, %v2012_v26  ;;  %v3960_v26 = vld [vmem:[%s5683_s4 + $0x80] sm:$0xff]   ;;  %v3961_v27 = vld [vmem:[%s5683_s4 + $0x48] sm:$0xff]  }
 0x7b2   : > { %v2020_v8 = vpack.c.bf16 %v2019_v7, %v2019_v7  ;;  %v3962_v7 = vld [vmem:[%s5683_s4 + $0xc8] sm:$0xff]  }
 0x7b4   : > { %3732 = vmatmul.mubr.bf16.vlgmr.msra.gmra.mrb[12].mxu1 %v2020_v8  ;;  %v3963_v8 = vld [vmem:[%s5683_s4 + $0x8] sm:$0xff]  }
 0x7b5   : > { %2417 = vmatpush1.bf16.msra.mxu1 %v3912_v16  ;;  %2448 = vmatprep.mubr.bf16.mxu1 %v4762_v59  ;;  %v3973_v16 = vld [vmem:[%s5683_s4 + $0x60] sm:$0xff]  }
 0x7b6   : > { %2418 = vmatprep.subr.bf16.mxu1 %v3920_v19  ;;  %v3976_v19 = vld [vmem:[%s5683_s4 + $0xa0] sm:$0xff]  }
 0x7b9   : > { %2419 = vmatpush1.bf16.msra.mxu1 %v3918_v22  ;;  %v3978_v22 = vld [vmem:[%s5683_s4 + $0xe8] sm:$0xff]  }
 0x7ba   : > { %2420 = vmatprep.subr.bf16.mxu1 %v3926_v24  ;;  %v3980_v24 = vld [vmem:[%s5683_s4 + $0xa8] sm:$0xff]  }
 0x7bd   : > { %2421 = vmatpush1.bf16.msra.mxu1 %v3924_v31  ;;  %v3982_v31 = vld [vmem:[%s5683_s4 + $0xf0] sm:$0xff]  }
 0x7be   : > { %2422 = vmatprep.subr.bf16.mxu1 %v3932_v37  ;;  %v3988_v37 = vld [vmem:[%s5683_s4 + $0xb8] sm:$0xff]  }
 0x7c1   : > { %2423 = vmatpush1.bf16.msra.mxu1 %v3930_v39  ;;  %v2193_v39 = vld [vmem:[%s5680_s28] sm:$0xf] }
 0x7c2   : > { %2424 = vmatprep.subr.bf16.mxu1 %v3938_v41  ;;  %v2209_v41 = vsub.s32 3, %v5754_v55  ;;  %v2198_v42 = vrot.slane %v2193_v39, %v5762_v9  ;;  %v2202_v46 = vrot.slane %v2193_v39, %v2201_v40 }
 0x7c5   : > { %2425 = vmatpush1.bf16.msra.mxu1 %v3936_v45  ;;  %v2206_v45 = vrot.slane %v2193_v39, %v2205_v38 }
 0x7c6   : > { %2426 = vmatprep.subr.bf16.mxu1 %v3944_v47  ;;  %v2210_v47 = vrot.slane %v2193_v39, %v2209_v41 }
 0x7c9   : > { %2427 = vmatpush1.bf16.msra.mxu1 %v3942_v49 }
 0x7ca   : > { %2428 = vmatprep.subr.bf16.mxu1 %v3950_v51 }
 0x7cd   : > { %2429 = vmatpush1.bf16.msra.mxu1 %v3948_v53 }
 0x7ce   : > { %2430 = vmatprep.subr.bf16.mxu1 %v3956_v58 }
 0x7d1   : > { %2431 = vmatpush1.bf16.msra.mxu1 %v3954_v57 }
 0x7d2   : > { %3613 = vmatprep.subr.bf16.mxu1 %v3958_v20 }
 0x887   : > { %v2126_v10 = vpop.f32.mrb[12].mxu1 }
 0x888   : > { %v2127_v11 = vadd.f32 %v3457_v29, %v2126_v10  ;;  %v3733_v30 = vpop.f32.mrb[13].mxu1  ;;  %v3964_v29 = vld [vmem:[%s5683_s4 + $0x88] sm:$0xff]   ;;  %v3965_v10 = vld [vmem:[%s5683_s4 + $0x50] sm:$0xff]  }
 0x889   : > { %v2129_v43 = vpop.f32.mrb[14].mxu1  ;;  %v3967_v30 = vld [vmem:[%s5683_s4 + $0x10] sm:$0xff]  }
 0x88a   : > { %v5850_v13 = vadd.f32 %v4043_v12, %v2127_v11  ;;  %v3734_v44 = vpop.f32.mrb[15].mxu1  ;;  %v3966_v11 = vld [vmem:[%s5683_s4 + $0xd0] sm:$0xff]   ;;  %v3969_v12 = vld [vmem:[%s5683_s4 + $0x58] sm:$0xff]  }
 0x88b   : > { %v3968_v43 = vld [vmem:[%s5683_s4 + $0x90] sm:$0xff]   ;;  %v3970_v44 = vld [vmem:[%s5683_s4 + $0xd8] sm:$0xff]  }
 0x88c   : > { %2135 = vadd.xlane.f32.xlu0 %v5850_v13 }
 0x919   : > { %v2136_v32 = vpop.xlane.xlu0 %2135 }
 0x91a   : > { %v2137_v33 = vmul.f32 0.0078125, %v2136_v32  ;;  %v3983_v32 = vld [vmem:[%s5683_s4 + $0x30] sm:$0xff]  }
 0x91c   : > { %v2138_v34 = vsub.f32 %v5850_v13, %v2137_v33  ;;  %v3984_v33 = vld [vmem:[%s5683_s4 + $0xb0] sm:$0xff]  }
 0x91e   : > { %v2139_v35 = vmul.f32 %v2138_v34, %v2138_v34 }
 0x920   : > { %2140 = vadd.xlane.f32.xlu1 %v2139_v35  ;;  %v3986_v35 = vld [vmem:[%s5683_s4 + $0xf8] sm:$0xff]  }
 0x9ad   : > { %v2141_v60 = vpop.xlane.xlu1 %2140 }
 0x9ae   : > { %v2142_v61 = vmul.f32 0.0078125, %v2141_v60 }
 0x9b0   : > { %v2143_v62 = vadd.f32 1e-05, %v2142_v61 }
 0x9b2   : > { %4025 = vrsqrt.f32 %v2143_v62 }
 0x9bc   : > { %v4026_v63 = vpop.eup %4025 }
 0x9bd   : > { %v2145_v6 = vmul.f32 %v4026_v63, %v2138_v34  ;;  %v3985_v34 = vld [vmem:[%s5683_s4 + $0x78] sm:$0xff]   ;;  %s6194_s4 = sld [smem:[#allocation50_spill]] }
 0x9bf   : > { %v2152_v2 = vmul.f32 %v3466_v0, %v2145_v6 }
 0x9c1   : > { %v2159_v3 = vadd.f32 %v3467_v1, %v2152_v2 }
 0x9c3   : > { %v2160_v4 = vpack.c.bf16 %v2159_v3, %v2159_v3  ;;  %p3533_p9 = scmp.ne.s32.totalorder %s6194_s4, 3 }
 0x9c5   : > { %2408 = vmatmul.mubr.bf16.vlgmr.msra.gmra.mrb[16].mxu0 %v2160_v4  ;;  %2449 = vmatmul.mubr.bf16.vlgmr.msra.gmra.mrb[16].mxu1 %v2160_v4 }
 0x9c6   : > { %3592 = vmatpush3.bf16.msra.mxu0 %v3959_v25  ;;  %3614 = vmatpush3.bf16.msra.mxu1 %v3960_v26 }
 0x9c7   : > { %3593 = vmatprep.subr.bf16.mxu0 %v3961_v27  ;;  %3615 = vmatprep.subr.bf16.mxu1 %v3962_v7 }
 0x9ca   : > { %3594 = vmatpush3.bf16.msra.mxu0 %v3963_v8  ;;  %3616 = vmatpush3.bf16.msra.mxu1 %v3964_v29 }
 0x9cb   : > { %3595 = vmatprep.subr.bf16.mxu0 %v3965_v10  ;;  %3617 = vmatprep.subr.bf16.mxu1 %v3966_v11 }
 0x9ce   : > { %3596 = vmatpush3.bf16.msra.mxu0 %v3967_v30  ;;  %3618 = vmatpush3.bf16.msra.mxu1 %v3968_v43 }
 0x9cf   : > { %3597 = vmatprep.subr.bf16.mxu0 %v3969_v12  ;;  %3619 = vmatprep.subr.bf16.mxu1 %v3970_v44 }
 0x9d2   : > { %3598 = vmatpush3.bf16.msra.mxu0 %v3971_v14  ;;  %3620 = vmatpush3.bf16.msra.mxu1 %v3972_v15 }
 0x9d3   : > { %3599 = vmatprep.subr.bf16.mxu0 %v3973_v16  ;;  %3621 = vmatprep.subr.bf16.mxu1 %v3974_v17 }
 0x9d6   : > { %3600 = vmatpush3.bf16.msra.mxu0 %v3975_v18  ;;  %3622 = vmatpush3.bf16.msra.mxu1 %v3976_v19 }
 0x9d7   : > { %3601 = vmatprep.subr.bf16.mxu0 %v3977_v21  ;;  %3623 = vmatprep.subr.bf16.mxu1 %v3978_v22 }
 0x9da   : > { %3602 = vmatpush3.bf16.msra.mxu0 %v3979_v23  ;;  %3624 = vmatpush3.bf16.msra.mxu1 %v3980_v24 }
 0x9db   : > { %3603 = vmatprep.subr.bf16.mxu0 %v3981_v28  ;;  %3625 = vmatprep.subr.bf16.mxu1 %v3982_v31 }
 0x9de   : > { %3604 = vmatpush3.bf16.msra.mxu0 %v3983_v32  ;;  %3626 = vmatpush3.bf16.msra.mxu1 %v3984_v33 }
 0x9df   : > { %3605 = vmatprep.subr.bf16.mxu0 %v3985_v34  ;;  %3627 = vmatprep.subr.bf16.mxu1 %v3986_v35 }
 0x9e2   : > { %3606 = vmatpush3.bf16.msra.mxu0 %v3987_v36  ;;  %3628 = vmatpush3.bf16.msra.mxu1 %v3988_v37 }
 0xa98   : > { %v2409_v48 = vpop.f32.mrb[16].mxu0  ;;  %v2450_v49 = vpop.f32.mrb[16].mxu1 }
 0xa99   : > { %v5927_v50 = vadd.f32 %v2409_v48, %v2198_v42  ;;  %v5929_v51 = vadd.f32 %v2450_v49, %v2206_v45  ;;  %v2411_v52 = vpop.f32.mrb[17].mxu0  ;;  %v2452_v53 = vpop.f32.mrb[17].mxu1 }
 0xa9a   : > { %v5931_v54 = vadd.f32 %v2411_v52, %v2202_v46  ;;  %v5933_v56 = vadd.f32 %v2452_v53, %v2210_v47  ;;  %v2413_v57 = vpop.f32.mrb[18].mxu0  ;;  %v2454_v58 = vpop.f32.mrb[18].mxu1 }
 0xa9b   : > { %v5936_v55 = vmul.f32 0.70710677, %v5927_v50  ;;  %v5939_v9 = vmul.f32 0.70710677, %v5929_v51  ;;  %v2414_v20 = vpop.f32.mrb[19].mxu0  ;;  %v2455_v25 = vpop.f32.mrb[19].mxu1 }
 0xa9c   : > { %v5942_v59 = vmul.f32 0.70710677, %v5931_v54  ;;  %v5945_v60 = vmul.f32 0.70710677, %v5933_v56 }
 0xa9d   : > { %v2465_v61 = vand.u32 2147483647, %v5936_v55  ;;  %v2467_v62 = vand.u32 2147483647, %v5939_v9  ;;  %vm2545_vm6 = vcmp.ge.f32.partialorder %v5936_v55, 0.0  ;;  %vm2547_vm7 = vcmp.ge.f32.partialorder %v5939_v9, 0.0 }
 0xa9e   : > { %v2466_v63 = vand.u32 2147483647, %v5942_v59  ;;  %v2468_v0 = vand.u32 2147483647, %v5945_v60  ;;  %vm2546_vm8 = vcmp.ge.f32.partialorder %v5942_v59, 0.0  ;;  %vm2548_vm9 = vcmp.ge.f32.partialorder %v5945_v60, 0.0 }
 0xa9f   : > { %v2469_v6 = vmul.f32 0.3275911, %v2465_v61  ;;  %v2471_v1 = vmul.f32 0.3275911, %v2467_v62  ;;  %v2521_v7 = vsub.f32 0.0, %v2465_v61  ;;  %v2523_v8 = vsub.f32 0.0, %v2467_v62 }
 0xaa0   : > { %v2470_v2 = vmul.f32 0.3275911, %v2466_v63  ;;  %v2472_v5 = vmul.f32 0.3275911, %v2468_v0  ;;  %v2522_v11 = vsub.f32 0.0, %v2466_v63  ;;  %v2524_v14 = vsub.f32 0.0, %v2468_v0 }
 0xaa1   : > { %v2473_v3 = vadd.f32 1.0, %v2469_v6  ;;  %v2475_v4 = vadd.f32 1.0, %v2471_v1  ;;  %v2525_v10 = vmul.f32 %v2521_v7, %v2465_v61  ;;  %v2527_v12 = vmul.f32 %v2523_v8, %v2467_v62  ;;  %v3500_v60 = vld [vmem:[%s1123_s22] ss:$0 sm:$0xff] }
 0xaa2   : > { %v2474_v26 = vadd.f32 1.0, %v2470_v2  ;;  %v2476_v27 = vadd.f32 1.0, %v2472_v5  ;;  %v2526_v19 = vmul.f32 %v2522_v11, %v2466_v63  ;;  %v2528_v31 = vmul.f32 %v2524_v14, %v2468_v0 }
 0xaa3   : > { %4027 = vrcp.f32 %v2473_v3  ;;  %v2529_v17 = vmul.f32 1.442695, %v2525_v10  ;;  %v2533_v22 = vmul.f32 1.442695, %v2527_v12  ;;  %v2459_v9 = vmul.f32 0.5, %v5929_v51 }
 0xaa4   : > { %4029 = vrcp.f32 %v2475_v4  ;;  %v2531_v36 = vmul.f32 1.442695, %v2526_v19  ;;  %v2535_v41 = vmul.f32 1.442695, %v2528_v31 }
 0xaa5   : > { %4031 = vrcp.f32 %v2474_v26 }
 0xaa6   : > { %4033 = vrcp.f32 %v2476_v27 }
 0xaa7   : > { %4035 = vpow2.f32 %v2529_v17 }
 0xaa8   : > { %4037 = vpow2.f32 %v2533_v22 }
 0xaa9   : > { %4039 = vpow2.f32 %v2531_v36 }
 0xaaa   : > { %4041 = vpow2.f32 %v2535_v41 }
 0xaad   : > { %v4028_v29 = vpop.eup %4027 }
 0xaae   : > { %v4030_v30 = vpop.eup %4029  ;;  %v2485_v43 = vmul.f32 1.0614054, %v4028_v29 }
 0xaaf   : > { %v2487_v44 = vmul.f32 1.0614054, %v4030_v30  ;;  %v4032_v16 = vpop.eup %4031 }
 0xab0   : > { %v2489_v15 = vadd.f32 -1.4531521, %v2485_v43  ;;  %v2486_v23 = vmul.f32 1.0614054, %v4032_v16  ;;  %v4034_v24 = vpop.eup %4033 }
 0xab1   : > { %v2491_v18 = vadd.f32 -1.4531521, %v2487_v44  ;;  %v2488_v34 = vmul.f32 1.0614054, %v4034_v24  ;;  %v4036_v1 = vpop.eup %4035 }
 0xab2   : > { %v2493_v21 = vmul.f32 %v4028_v29, %v2489_v15  ;;  %v2490_v33 = vadd.f32 -1.4531521, %v2486_v23  ;;  %v4038_v3 = vpop.eup %4037 }
 0xab3   : > { %v2495_v28 = vmul.f32 %v4030_v30, %v2491_v18  ;;  %v2492_v39 = vadd.f32 -1.4531521, %v2488_v34  ;;  %v4040_v8 = vpop.eup %4039 }
 0xab4   : > { %v2497_v32 = vadd.f32 1.4214138, %v2493_v21  ;;  %v2494_v38 = vmul.f32 %v4032_v16, %v2490_v33  ;;  %v4042_v44 = vpop.eup %4041  ;;  %v2460_v33 = vmul.f32 0.5, %v5933_v56 }
 0xab5   : > { %v2499_v35 = vadd.f32 1.4214138, %v2495_v28  ;;  %v2496_v46 = vmul.f32 %v4034_v24, %v2492_v39  ;;  %v2458_v28 = vmul.f32 0.5, %v5931_v54 }
 0xab6   : > { %v2501_v37 = vmul.f32 %v4028_v29, %v2497_v32  ;;  %v2498_v45 = vadd.f32 1.4214138, %v2494_v38 }
 0xab7   : > { %v2503_v40 = vmul.f32 %v4030_v30, %v2499_v35  ;;  %v2500_v52 = vadd.f32 1.4214138, %v2496_v46 }
 0xab8   : > { %v2505_v42 = vadd.f32 -0.28449672, %v2501_v37  ;;  %v2502_v49 = vmul.f32 %v4032_v16, %v2498_v45 }
 0xab9   : > { %v2507_v47 = vadd.f32 -0.28449672, %v2503_v40  ;;  %v2504_v61 = vmul.f32 %v4034_v24, %v2500_v52 }
 0xaba   : > { %v2509_v48 = vmul.f32 %v4028_v29, %v2505_v42  ;;  %v2506_v58 = vadd.f32 -0.28449672, %v2502_v49 }
 0xabb   : > { %v2511_v53 = vmul.f32 %v4030_v30, %v2507_v47  ;;  %v2508_v6 = vadd.f32 -0.28449672, %v2504_v61 }
 0xabc   : > { %v2513_v57 = vadd.f32 0.2548296, %v2509_v48  ;;  %v2510_v0 = vmul.f32 %v4032_v16, %v2506_v58 }
 0xabd   : > { %v2515_v62 = vadd.f32 0.2548296, %v2511_v53  ;;  %v2512_v20 = vmul.f32 %v4034_v24, %v2508_v6 }
 0xabe   : > { %v2517_v63 = vmul.f32 %v4028_v29, %v2513_v57  ;;  %v2514_v5 = vadd.f32 0.2548296, %v2510_v0 }
 0xabf   : > { %v2519_v2 = vmul.f32 %v4030_v30, %v2515_v62  ;;  %v2516_v7 = vadd.f32 0.2548296, %v2512_v20 }
 0xac0   : > { %v2537_v4 = vmul.f32 %v4036_v1, %v2517_v63  ;;  %v2518_v27 = vmul.f32 %v4032_v16, %v2514_v5  ;;  %v2457_v16 = vmul.f32 0.5, %v5927_v50 }
 0xac1   : > { %v2539_v25 = vmul.f32 %v4038_v3, %v2519_v2  ;;  %v2520_v12 = vmul.f32 %v4034_v24, %v2516_v7 }
 0xac2   : > { %v2541_v26 = vsub.f32 1.0, %v2537_v4  ;;  %v2538_v43 = vmul.f32 %v4040_v8, %v2518_v27 }
 0xac3   : > { %v2543_v10 = vsub.f32 1.0, %v2539_v25  ;;  %v2540_v15 = vmul.f32 %v4042_v44, %v2520_v12 }
 0xac4   : > { %v2549_v11 = vsub.f32 0.0, %v2541_v26  ;;  %v2542_v30 = vsub.f32 1.0, %v2538_v43 }
 0xac5   : > { %v2551_v29 = vsub.f32 0.0, %v2543_v10  ;;  %v2544_v21 = vsub.f32 1.0, %v2540_v15 }
 0xac6   : > { %v2553_v14 = vsel %vm2545_vm6, %v2541_v26, %v2549_v11  ;;  %v2550_v19 = vsub.f32 0.0, %v2542_v30 }
 0xac7   : > { %v2555_v17 = vsel %vm2547_vm7, %v2543_v10, %v2551_v29  ;;  %v2557_v18 = vadd.f32 1.0, %v2553_v14  ;;  %v2552_v24 = vsub.f32 0.0, %v2544_v21 }
 0xac8   : > { %v2559_v22 = vadd.f32 1.0, %v2555_v17  ;;  %v2554_v23 = vsel %vm2546_vm8, %v2542_v30, %v2550_v19 }
 0xac9   : > { %v2558_v55 = vadd.f32 1.0, %v2554_v23  ;;  %v2561_v31 = vmul.f32 %v2557_v18, %v2457_v16  ;;  %v2556_v32 = vsel %vm2548_vm9, %v2544_v21, %v2552_v24 }
 0xaca   : > { %v2560_v35 = vadd.f32 1.0, %v2556_v32  ;;  %v2563_v59 = vmul.f32 %v2559_v22, %v2459_v9 }
 0xacb   : > { %v2562_v34 = vmul.f32 %v2558_v55, %v2458_v28  ;;  %v2565_v37 = vpack.c.bf16 %v2561_v31, %v2561_v31 }
 0xacc   : > { %v2564_v50 = vmul.f32 %v2560_v35, %v2460_v33  ;;  %v2567_v39 = vpack.c.bf16 %v2563_v59, %v2563_v59 }
 0xacd   : > { %v2566_v36 = vpack.c.bf16 %v2562_v34, %v2562_v34 }
 0xace   : > { %v2568_v38 = vpack.c.bf16 %v2564_v50, %v2564_v50 }
 0xacf   : > { %2864 = vmatprep.mubr.bf16.mxu0 %v2566_v36 }
 0xad0   : > { %2865 = vmatmul.mubr.bf16.vlgmr.msra.gmra.mrb[20].mxu0 %v2565_v37  ;;  %2904 = vmatprep.mubr.bf16.mxu1 %v2568_v38 }
 0xad1   : > { %2905 = vmatmul.mubr.bf16.vlgmr.msra.gmra.mrb[20].mxu1 %v2567_v39 }
 0xba3   : > { %v3607_v54 = vpop.f32.mrb[20].mxu0 }
 0xba4   : > { %v3608_v51 = vpop.f32.mrb[21].mxu0  ;;  %v3629_v40 = vpop.f32.mrb[20].mxu1 }
 0xba5   : > { %v3609_v41 = vadd.f32 %v3608_v51, %v3607_v54  ;;  %v3610_v42 = vpop.f32.mrb[22].mxu0  ;;  %v3630_v56 = vpop.f32.mrb[21].mxu1 }
 0xba6   : > { %v3611_v45 = vpop.f32.mrb[23].mxu0  ;;  %v3631_v47 = vadd.f32 %v3630_v56, %v3629_v40  ;;  %v3632_v48 = vpop.f32.mrb[22].mxu1 }
 0xba7   : > { %v2867_v46 = vadd.f32 %v3609_v41, %v3500_v60  ;;  %v3633_v49 = vpop.f32.mrb[23].mxu1  ;;  %2917 = sbr.rel (%p3533_p9) target bundleno = 2990 (0xbae), region = 180 }
 0xba9   : > { %v2907_v52 = vadd.f32 %v3631_v47, %v2867_v46 }
 0xbab   : > { %v2912_v53 = vadd.f32 %v2907_v52, %v5850_v13 }
 0xbad   : > { %2913 = vst [vmem:[#allocation2] sm:$0xff] %v2912_v53  ;;  %2918 = vst [vmem:[%s1257_s6] sm:$0xff] (!%p3533_p9), %v2912_v53 }
 0xbae PF: > { %s6195_s0 = sld [smem:[#allocation51_spill]]  ;;  %s6196_s28 = sld [smem:[#allocation59_spill]] }
 0xbaf   : > { %s6197_s27 = sld [smem:[#allocation76_spill]]  ;;  %s2933_s19 = sshll.u32 %s1257_s6, 4  ;;  %s2934_s19 = int_to_ptr.vmem [resolvable:$true] %s2933_s19 }
 0xbb0   : > { %s2920_s26 = scalar_lea.sflag [#allocation5], %s5600_s1  ;;  %s4576_s7 = scalar_lea.vmem %s2934_s19, 128 }
 0xbb1   : > { %p4577_p2 = scmp.ne.s32.totalorder %s2934_s19, %s4576_s7  ;;  %s4763_s2 = smov [#allocation33]  }
 0xbb2   : > { %s4580_s5 = sshll.u32 %s4763_s2, 4  ;;  %s4581_s5 = int_to_ptr.vmem [resolvable:$false] %s4580_s5 }
 0xbb3   : > { %s4582_s30 = scalar_lea.vmem %s4581_s5, 256  ;;  %p4583_p13 = scmp.lt.s32.totalorder %s2934_s19, %s4581_s5 }
 0xbb4   : > { %s3535_s22 = sshll.u32 %s6195_s0, 7  ;;  %p6198_p11 = scmp.ne.s32.totalorder %s6196_s28, 0 }
 0xbb5   : > { %s5969_s8 = scalar_lea.hbm %s6197_s27, %s3535_s22  ;;  %p4584_p8 = scmp.lt.s32.totalorder %s4582_s30, %s4576_s7 }
 0xbb6   : > { %p4578_p10 = pnand %p4577_p2, %p6198_p11 }
 0xbb7   : > { %p4585_p0 = por %p4584_p8, %p4583_p13 }
 0xbb8   : > { %p4579_p1 = pneg %p4578_p10 }
 0xbba   : > { %p4586_p5 = pnand %p4585_p0, %p4579_p1 }
 0xbbc   : > { %4589 = shalt.err (!%p4586_p5)
}
 0xbbd   : > { %s4590_s6 = scalar_lea.hbm %s5969_s8, 128  ;;  %s4594_s21 = scalar_lea.hbm %s6197_s27, 256 }
 0xbbe   : > { %p4591_p4 = scmp.ne.s32.totalorder %s5969_s8, %s4590_s6  ;;  %p4595_p3 = scmp.lt.u32.totalorder %s5969_s8, %s6197_s27 }
 0xbbf   : > { %p4596_p12 = scmp.lt.u32.totalorder %s4594_s21, %s4590_s6  ;;  %p4598_p2 = scmp.lt.u32.totalorder %s4590_s6, %s5969_s8 }
 0xbc0   : > { %p4592_p7 = pnand %p4591_p4, %p6198_p11 }
 0xbc1   : > { %p4597_p9 = por %p4596_p12, %p4595_p3 }
 0xbc2   : > { %p4593_p6 = pneg %p4592_p7 }
 0xbc3   : > { %p4599_p10 = por %p4598_p2, %p4597_p9 }
 0xbc5   : > { %p4600_p1 = pnand %p4599_p10, %p4593_p6 }
 0xbc7   : > { %4603 = shalt.err (!%p4600_p1)
}
 0xbc8   : > { %3774 = dma.vmem_to_hbm [thread:$0]  (%p6198_p11), %s2934_s19, 128, %s5969_s8, %s2920_s26  }
 0xbc9 PF: > { %s6199_s0 = sld [smem:[#allocation47_spill]]  ;;  %s6200_s22 = sld [smem:[#allocation60_spill]] }
 0xbca   : > { %p3780_p13 = scmp.ge.s32.totalorder %s4734_s3, 2 }
 0xbcf   : > { %s2945_s16 = sand.u32 1, %s6199_s0   ;;  %p6201_p8 = scmp.ne.s32.totalorder %s6200_s22, 0 }
 0xbd0   : > { %s2946_s10 = scalar_lea.sflag [#allocation5], %s2945_s16 }
 0xbd1   : > { %p3777_p0 = pnand %p3780_p13, %p6201_p8 }
 0xbd3   : > { %4689 = dma.done.wait (!%p3777_p0), %s2946_s10, 128  }
 0xbd4   : > { %4691 = vsyncadd (!%p3777_p0), %s2946_s10, 4294967168  ;;  %s62_s3 = sadd.s32 1, %s4734_s3   ;;  %s6202_s0 = sld [smem:[#allocation45_spill]] }
 0xbd5   : > { %p59_p5 = scmp.ge.s32.totalorder %s62_s3, 10   ;;  %s6203_s30 = sld [smem:[#allocation46_spill]] }
 0xbd6   : > { %s6204_s20 = sld [smem:[#allocation56_spill]]  ;;  %s6205_s21 = sld [smem:[#allocation48_spill]] }
 0xbd7   : > { %s6206_s1 = sld [smem:[#allocation49_spill]]  ;;  %s6207_s22 = sld [smem:[#allocation57_spill]] }
 0xbd8   : > { %s6208_s28 = sld [smem:[#allocation53_spill]]  ;;  %s6209_s8 = sld [smem:[#allocation54_spill]] }
 0xbd9   : > { %s6210_s2 = smov %s4726_s24  ;;  %s6211_s23 = smov %s4730_s25 }
 0xbda   :  { %61 = sbr.rel (!%p59_p5) target bundleno = 44 (0x2c), region = 365 }
 0xbde   : > { %s6212_s24 = smov %s6208_s28  ;;  %s6213_s25 = smov %s6209_s8 }
 0xbe1   :  { %2951 = vsyncpa [#allocation4], 1 }
 0xbe2   :  { %2953 = vsyncpa [#allocation4 + $0x1], 1 }
 0xbe3   :  { %2954 = vsyncpa [#allocation7], 1 }
 0xbe4   :  { %2956 = vsyncpa [#allocation7 + $0x1], 1 }
 0xbe5   :  { %2957 = vsyncpa [#allocation10], 1 }
 0xbe6   :  { %2959 = vsyncpa [#allocation10 + $0x1], 1 }
 0xbe7   :  { %2960 = vsyncpa [#allocation13], 1 }
 0xbe8   :  { %2962 = vsyncpa [#allocation13 + $0x1], 1 }
 0xbe9   :  { %2963 = vsyncpa [#allocation16], 1 }
 0xbea   :  { %2965 = vsyncpa [#allocation16 + $0x1], 1 }
 0xbeb   :  { %2966 = vsyncpa [#allocation19], 1 }
 0xbec   :  { %2968 = vsyncpa [#allocation19 + $0x1], 1 }
 0xbed   :  { %2969 = vsyncpa [#allocation22], 1 }
 0xbee   :  { %2971 = vsyncpa [#allocation22 + $0x1], 1 }
 0xbef   :  { %2972 = vsyncpa [#allocation25], 1 }
 0xbf0   :  { %2974 = vsyncpa [#allocation25 + $0x1], 1 }
 0xbf1   :  { %2975 = vsyncpa [#allocation28], 1 }
 0xbf2   :  { %2977 = vsyncpa [#allocation28 + $0x1], 1 }
 0xbf3   :  { %2978 = vsyncpa [#allocation31], 1 }
 0xbf4   :  { %2980 = vsyncpa [#allocation31 + $0x1], 1 }
 0xbf5   :  { %2981 = vsyncpa [#allocation5], 1 }
 0xbf6   :  { %2983 = vsyncpa [#allocation5 + $0x1], 1 }

</bundles_post_ra>
